<compile_context>
chip_gen: v6e
topology: v6e:2x2x1
jax: 0.10.0
libtpu: 0.0.40
codegen_flags: <defaults>
</compile_context>

<pallas_src>
import functools

import jax
import jax.numpy as jnp
from jax import lax
from jax.experimental import pallas as pl
from jax.experimental.pallas import tpu as pltpu

EPS = 1e-5
LANE = 128
VMEM_LIMIT_BYTES = 32 * 1024 * 1024  # fits v5e/v6e defaults and v7x's 64 MiB/TC


# ----------------------------------------------------------------------------- small helpers
def _round_up(n, m):
    return ((n + m - 1) // m) * m


def _pad_last(x, c_to):
    c = x.shape[-1]
    if c == c_to:
        return x
    pad = [(0, 0)] * (x.ndim - 1) + [(0, c_to - c)]
    return jnp.pad(x, pad)


def _pick_cout_tile(cout_p):
    for t in (256, 128):
        if cout_p % t == 0:
            return t
    return LANE


def _bn_scale_shift(gamma, beta, mean, var):
    scale = gamma / jnp.sqrt(var + EPS)
    shift = beta - mean * scale
    return scale.reshape(1, -1), shift.reshape(1, -1)


def _make_tap_phases(x, stride):
    """x: (B, H, W, C) NHWC (channel-padded). Returns (B*s*s, Hph, Wph, C) and (Ho, Wo).

    Zero-pads spatially by 1 and (for stride > 1) phase-decomposes so that every
    3x3 tap inside the kernel is a contiguous static slice. Plain-JAX glue: costs
    one read+write of x (vs. 9x for im2col)."""
    B, H, W, C = x.shape
    s = int(stride)
    xp = jnp.pad(x, ((0, 0), (1, 1), (1, 1), (0, 0)))
    Hp, Wp = H + 2, W + 2
    Ho = (H - 1) // s + 1
    Wo = (W - 1) // s + 1
    Hph = -(-Hp // s)
    Wph = -(-Wp // s)
    xp = jnp.pad(xp, ((0, 0), (0, Hph * s - Hp), (0, Wph * s - Wp), (0, 0)))
    ph = xp.reshape(B, Hph, s, Wph, s, C).transpose(0, 2, 4, 1, 3, 5)
    return ph.reshape(B * s * s, Hph, Wph, C), (Ho, Wo)


# ----------------------------------------------------------------------------- kernels
def _conv1_kernel(stride, H, W, with_shortcut, *refs):
    """Fused: BN1+ReLU -> 3x3 conv (stride) as 9 MXU matmuls -> BN2+ReLU,
    plus the optional 1x1 strided shortcut conv on the same activation."""
    if with_shortcut:
        (ph_ref, s1_ref, sh1_ref, w1_ref, s2_ref, sh2_ref, wsc_ref,
         out_ref, sc_ref) = refs
    else:
        ph_ref, s1_ref, sh1_ref, w1_ref, s2_ref, sh2_ref, out_ref = refs

    s = stride
    _, Ho, Wo, tn = out_ref.shape
    _, Hph, Wph, cin = ph_ref.shape
    w_dtype = w1_ref.dtype

    # --- fused BN1 + ReLU prologue over the whole (padded, phase-decomposed) slab
    x = ph_ref[...].astype(jnp.float32)
    act4 = jnp.maximum(
        x * s1_ref[...].reshape(1, 1, 1, cin) + sh1_ref[...].reshape(1, 1, 1, cin),
        0.0)

    # Zero out positions that fall on the conv's spatial zero-padding border
    # (BN(0) != 0).  Done ONCE per stride phase instead of per tap.
    row = lax.broadcasted_iota(jnp.int32, (Hph, Wph, cin), 0)
    col = lax.broadcasted_iota(jnp.int32, (Hph, Wph, cin), 1)
    acts = []
    for p in range(s * s):
        pi, pj = p // s, p % s
        r = row * s + pi            # padded-row coordinate of this phase's rows
        c = col * s + pj            # padded-col coordinate
        valid = (r >= 1) & (r <= H) & (c >= 1) & (c <= W)
        acts.append(jnp.where(valid, act4[p], 0.0))

    # --- 3x3 strided conv as 9 accumulating MXU matmuls over shifted windows
    acc = jnp.zeros((Ho * Wo, tn), jnp.float32)
    for di in range(3):
        for dj in range(3):
            p = (di % s) * s + (dj % s)
            qi, qj = di // s, dj // s
            a = acts[p][qi:qi + Ho, qj:qj + Wo, :].reshape(Ho * Wo, cin)
            acc = acc + jnp.dot(a.astype(w_dtype), w1_ref[di, dj],
                                preferred_element_type=jnp.float32)

    # --- fused BN2 + ReLU epilogue
    out2 = jnp.maximum(acc * s2_ref[...] + sh2_ref[...], 0.0)
    out_ref[...] = out2.reshape(1, Ho, Wo, tn).astype(out_ref.dtype)

    if with_shortcut:
        # 1x1 strided shortcut conv on the same fused activation (center tap);
        # those positions are interior, so masking leaves them unchanged.
        p = (1 % s) * s + (1 % s)
        q = 1 // s
        a = acts[p][q:q + Ho, q:q + Wo, :].reshape(Ho * Wo, cin)
        sc = jnp.dot(a.astype(w_dtype), wsc_ref[...],
                     preferred_element_type=jnp.float32)
        sc_ref[...] = sc.reshape(1, Ho, Wo, tn).astype(sc_ref.dtype)


def _conv2_kernel(xp_ref, w_ref, r_ref, out_ref):
    """3x3 conv, stride 1, on an already zero-padded input + fused residual add."""
    _, Ho, Wo, tn = out_ref.shape
    cin = xp_ref.shape[-1]
    w_dtype = w_ref.dtype

    x = xp_ref[...]
    acc = jnp.zeros((Ho * Wo, tn), jnp.float32)
    for di in range(3):
        for dj in range(3):
            a = x[0, di:di + Ho, dj:dj + Wo, :].reshape(Ho * Wo, cin)
            acc = acc + jnp.dot(a.astype(w_dtype), w_ref[di, dj],
                                preferred_element_type=jnp.float32)
    acc = acc + r_ref[...].reshape(Ho * Wo, tn).astype(jnp.float32)
    out_ref[...] = acc.reshape(1, Ho, Wo, tn).astype(out_ref.dtype)


# ----------------------------------------------------------------------------- pallas_call wrappers
def _conv1_call(ph, s1, sh1, w1, s2, sh2, wsc, *, stride, H, W, Ho, Wo, tn, out_dtype):
    nblk, Hph, Wph, cin = ph.shape
    s = int(stride)
    B = nblk // (s * s)
    cout = w1.shape[-1]
    nj = cout // tn
    with_sc = wsc is not None

    kern = functools.partial(_conv1_kernel, s, H, W, with_sc)
    in_specs = [
        pl.BlockSpec((s * s, Hph, Wph, cin), lambda b, j: (b, 0, 0, 0)),
        pl.BlockSpec((1, cin), lambda b, j: (0, 0)),
        pl.BlockSpec((1, cin), lambda b, j: (0, 0)),
        pl.BlockSpec((3, 3, cin, tn), lambda b, j: (0, 0, 0, j)),
        pl.BlockSpec((1, tn), lambda b, j: (0, j)),
        pl.BlockSpec((1, tn), lambda b, j: (0, j)),
    ]
    args = [ph, s1, sh1, w1, s2, sh2]
    out_sds = jax.ShapeDtypeStruct((B, Ho, Wo, cout), out_dtype)
    out_spec = pl.BlockSpec((1, Ho, Wo, tn), lambda b, j: (b, 0, 0, j))
    if with_sc:
        in_specs.append(pl.BlockSpec((cin, tn), lambda b, j: (0, j)))
        args.append(wsc)
        out_shape = (out_sds, out_sds)
        out_specs = (out_spec, out_spec)
    else:
        out_shape = out_sds
        out_specs = out_spec

    res = pl.pallas_call(
        kern,
        out_shape=out_shape,
        grid=(B, nj),
        in_specs=in_specs,
        out_specs=out_specs,
        compiler_params=pltpu.CompilerParams(
            dimension_semantics=("parallel", "parallel"),
            vmem_limit_bytes=VMEM_LIMIT_BYTES),
    )(*args)
    if with_sc:
        return res[0], res[1]
    return res, None


def _conv2_call(xp, w2, residual, *, tn, out_dtype):
    B, Hp2, Wp2, cin = xp.shape
    Ho, Wo = Hp2 - 2, Wp2 - 2
    cout = w2.shape[-1]
    nj = cout // tn
    return pl.pallas_call(
        _conv2_kernel,
        out_shape=jax.ShapeDtypeStruct((B, Ho, Wo, cout), out_dtype),
        grid=(B, nj),
        in_specs=[
            pl.BlockSpec((1, Hp2, Wp2, cin), lambda b, j: (b, 0, 0, 0)),
            pl.BlockSpec((3, 3, cin, tn), lambda b, j: (0, 0, 0, j)),
            pl.BlockSpec((1, Ho, Wo, tn), lambda b, j: (b, 0, 0, j)),
        ],
        out_specs=pl.BlockSpec((1, Ho, Wo, tn), lambda b, j: (b, 0, 0, j)),
        compiler_params=pltpu.CompilerParams(
            dimension_semantics=("parallel", "parallel"),
            vmem_limit_bytes=VMEM_LIMIT_BYTES),
    )(xp, w2, residual)


# ----------------------------------------------------------------------------- model
def init_basic_block(key, in_planes, out_planes, stride, drop_rate=0.0):
    ks = jax.random.split(key, 12)

    def conv_init(k, kh, kw, ci, co):
        fan_in = kh * kw * ci
        return (jax.random.normal(k, (kh, kw, ci, co), jnp.float32)
                * jnp.sqrt(2.0 / fan_in))

    p = {
        "bn1_gamma": 1.0 + 0.1 * jax.random.normal(ks[0], (in_planes,), jnp.float32),
        "bn1_beta": 0.1 * jax.random.normal(ks[1], (in_planes,), jnp.float32),
        "bn1_mean": 0.1 * jax.random.normal(ks[2], (in_planes,), jnp.float32),
        "bn1_var": 1.0 + 0.1 * jnp.abs(jax.random.normal(ks[3], (in_planes,), jnp.float32)),
        "conv1_w": conv_init(ks[4], 3, 3, in_planes, out_planes),
        "bn2_gamma": 1.0 + 0.1 * jax.random.normal(ks[5], (out_planes,), jnp.float32),
        "bn2_beta": 0.1 * jax.random.normal(ks[6], (out_planes,), jnp.float32),
        "bn2_mean": 0.1 * jax.random.normal(ks[7], (out_planes,), jnp.float32),
        "bn2_var": 1.0 + 0.1 * jnp.abs(jax.random.normal(ks[8], (out_planes,), jnp.float32)),
        "conv2_w": conv_init(ks[9], 3, 3, out_planes, out_planes),
        "stride": int(stride),
        "equal": in_planes == out_planes,
        "drop_rate": float(drop_rate),
    }
    if not p["equal"]:
        p["convsc_w"] = conv_init(ks[10], 1, 1, in_planes, out_planes)
    return p


def _prep_block(p, mxu_dtype):
    """Precompute channel-padded BN scale/shift and weights (lane-dense, 128-mult)."""
    cin = p["conv1_w"].shape[2]
    cout = p["conv1_w"].shape[3]
    cin_p = _round_up(cin, LANE)
    cout_p = _round_up(cout, LANE)

    s1, sh1 = _bn_scale_shift(p["bn1_gamma"], p["bn1_beta"], p["bn1_mean"], p["bn1_var"])
    s2, sh2 = _bn_scale_shift(p["bn2_gamma"], p["bn2_beta"], p["bn2_mean"], p["bn2_var"])

    w1 = jnp.pad(p["conv1_w"],
                 ((0, 0), (0, 0), (0, cin_p - cin), (0, cout_p - cout))).astype(mxu_dtype)
    w2 = jnp.pad(p["conv2_w"],
                 ((0, 0), (0, 0), (0, cout_p - cout), (0, cout_p - cout))).astype(mxu_dtype)

    prep = dict(
        stride=p["stride"], equal=p["equal"],
        cin_p=cin_p, cout_p=cout_p,
        s1=_pad_last(s1, cin_p), sh1=_pad_last(sh1, cin_p),
        s2=_pad_last(s2, cout_p), sh2=_pad_last(sh2, cout_p),
        w1=w1, w2=w2, wsc=None)
    if not p["equal"]:
        wsc = p["convsc_w"].reshape(cin, cout)
        prep["wsc"] = jnp.pad(wsc, ((0, cin_p - cin), (0, cout_p - cout))).astype(mxu_dtype)
    return prep


def basic_block_forward(x, prep):
    """x: (B, H, W, Cp) NHWC, channel-padded to prep['cin_p']."""
    B, H, W, _ = x.shape
    s = prep["stride"]
    tn = _pick_cout_tile(prep["cout_p"])

    ph, (Ho, Wo) = _make_tap_phases(x, s)
    out2, shortcut = _conv1_call(
        ph, prep["s1"], prep["sh1"], prep["w1"], prep["s2"], prep["sh2"], prep["wsc"],
        stride=s, H=H, W=W, Ho=Ho, Wo=Wo, tn=tn, out_dtype=x.dtype)
    if prep["equal"]:
        shortcut = x

    # drop_rate == 0.0 -> dropout is the identity
    # TODO(synk): dropout (drop_rate > 0, training mode) not implemented in-kernel.

    ph2, _ = _make_tap_phases(out2, 1)
    return _conv2_call(ph2, prep["w2"], shortcut, tn=tn, out_dtype=x.dtype)


class NetworkBlockPallas:
    """Pallas equivalent of NetworkBlock(nb_layers, in_planes, out_planes, BasicBlock, stride)."""

    def __init__(self, nb_layers, in_planes, out_planes, stride, key,
                 drop_rate=0.0, mxu_dtype=jnp.float32):
        # mxu_dtype=jnp.bfloat16 is recommended on v6e/v7x (f32 accumulation kept).
        keys = jax.random.split(key, int(nb_layers))
        self.out_planes = int(out_planes)
        self.blocks = []
        self.prepped = []
        for i in range(int(nb_layers)):
            ip = in_planes if i == 0 else out_planes
            st = stride if i == 0 else 1
            p = init_basic_block(keys[i], ip, out_planes, st, drop_rate)
            assert not (p["equal"] and p["stride"] != 1), (
                "equal in/out planes with stride != 1 is unsupported "
                "(would also shape-mismatch in the PyTorch module)")
            self.blocks.append(p)
            self.prepped.append(_prep_block(p, mxu_dtype))

    def __call__(self, x_nchw):
        # layout: NCHW in / NCHW out (PyTorch convention); NHWC + lane-padded channels internally.
        x = jnp.transpose(x_nchw, (0, 2, 3, 1))
        x = _pad_last(x, self.prepped[0]["cin_p"])
        for prep in self.prepped:
            x = basic_block_forward(x, prep)
        x = x[..., :self.out_planes]
        return jnp.transpose(x, (0, 3, 1, 2))


# ----------------------------------------------------------------------------- reference (plain JAX, for verification)
def _ref_conv(x, w_hwio, stride, padding):
    return jax.lax.conv_general_dilated(
        x, w_hwio, window_strides=(stride, stride),
        padding=[(padding, padding), (padding, padding)],
        dimension_numbers=("NHWC", "HWIO", "NHWC"),
        precision=jax.lax.Precision.HIGHEST)


def _ref_block(x, p):
    s1, sh1 = _bn_scale_shift(p["bn1_gamma"], p["bn1_beta"], p["bn1_mean"], p["bn1_var"])
    act = jnp.maximum(x * s1.reshape(1, 1, 1, -1) + sh1.reshape(1, 1, 1, -1), 0.0)
    out = _ref_conv(act, p["conv1_w"], p["stride"], 1)
    s2, sh2 = _bn_scale_shift(p["bn2_gamma"], p["bn2_beta"], p["bn2_mean"], p["bn2_var"])
    out = jnp.maximum(out * s2.reshape(1, 1, 1, -1) + sh2.reshape(1, 1, 1, -1), 0.0)
    shortcut = x if p["equal"] else _ref_conv(act, p["convsc_w"], p["stride"], 0)
    return _ref_conv(out, p["conv2_w"], 1, 1) + shortcut


def _ref_network_block(model, x_nchw):
    x = jnp.transpose(x_nchw, (0, 2, 3, 1))
    for p in model.blocks:
        x = _ref_block(x, p)
    return jnp.transpose(x, (0, 3, 1, 2))


# ----------------------------------------------------------------------------- main
if __name__ == "__main__":
    key = jax.random.PRNGKey(0)
    k_x, k_w = jax.random.split(key)

    # Small shapes: batch=2, in_planes=4, out_planes=8, spatial=16x16,
    # nb_layers=2, stride=2 (typical WideResNet stage).
    B, C_IN, H, W = 2, 4, 16, 16
    NB_LAYERS, OUT_PLANES, STRIDE = 2, 8, 2

    x = jax.random.normal(k_x, (B, C_IN, H, W), jnp.float32)  # layout: NCHW input

    model = NetworkBlockPallas(NB_LAYERS, C_IN, OUT_PLANES, STRIDE, k_w, drop_rate=0.0)

    fwd = jax.jit(model.__call__)
    out = jax.block_until_ready(fwd(x))

    # sanity: shape matches PyTorch semantics (stride-2 first block halves H, W)
    assert out.shape == (B, OUT_PLANES, H // STRIDE, W // STRIDE), out.shape

    # numerical check against a plain-JAX reference of the same NetworkBlock
    ref = jax.block_until_ready(_ref_network_block(model, x))
    max_err = float(jnp.max(jnp.abs(out - ref)))
    assert jnp.allclose(out, ref, atol=1e-3, rtol=1e-3), max_err

    print("KERNEL_OK")
</pallas_src>

<mosaic_0001>
module attributes {stable_mosaic.version = 11 : i64} {
  func.func @_conv1_kernel(%arg0: i32, %arg1: i32, %arg2: memref<4x9x9x128xf32, #tpu.memory_space<vmem>>, %arg3: memref<1x128xf32, #tpu.memory_space<vmem>>, %arg4: memref<1x128xf32, #tpu.memory_space<vmem>>, %arg5: memref<3x3x128x128xf32, #tpu.memory_space<vmem>>, %arg6: memref<1x128xf32, #tpu.memory_space<vmem>>, %arg7: memref<1x128xf32, #tpu.memory_space<vmem>>, %arg8: memref<128x128xf32, #tpu.memory_space<vmem>>, %arg9: memref<1x8x8x128xf32, #tpu.memory_space<vmem>>, %arg10: memref<1x8x8x128xf32, #tpu.memory_space<vmem>>) attributes {dimension_semantics = [#tpu.dimension_semantics<parallel>, #tpu.dimension_semantics<parallel>], iteration_bounds = array<i64: 2, 1>, scalar_prefetch = 0 : i64, scratch_operands = 0 : i64, tpu.core_type = #tpu.core_type<tc>, window_params = [{transform_indices = @transform_0, window_bounds = array<i64: 4, 9, 9, 128>}, {pipeline_mode = #tpu.pipeline_mode<synchronous>, transform_indices = @transform_1, window_bounds = array<i64: 1, 128>}, {pipeline_mode = #tpu.pipeline_mode<synchronous>, transform_indices = @transform_2, window_bounds = array<i64: 1, 128>}, {transform_indices = @transform_3, window_bounds = array<i64: 3, 3, 128, 128>}, {transform_indices = @transform_4, window_bounds = array<i64: 1, 128>}, {transform_indices = @transform_5, window_bounds = array<i64: 1, 128>}, {transform_indices = @transform_6, window_bounds = array<i64: 128, 128>}, {transform_indices = @transform_7, window_bounds = array<i64: 1, 8, 8, 128>}, {transform_indices = @transform_8, window_bounds = array<i64: 1, 8, 8, 128>}]} {
    %c0 = arith.constant 0 : index
    %c0_0 = arith.constant 0 : index
    %c0_1 = arith.constant 0 : index
    %c0_2 = arith.constant 0 : index
    %0 = vector.load %arg2[%c0, %c0_0, %c0_1, %c0_2] : memref<4x9x9x128xf32, #tpu.memory_space<vmem>>, vector<4x9x9x128xf32>
    %c0_3 = arith.constant 0 : index
    %c0_4 = arith.constant 0 : index
    %1 = vector.load %arg3[%c0_3, %c0_4] : memref<1x128xf32, #tpu.memory_space<vmem>>, vector<1x128xf32>
    %2 = vector.shape_cast %1 : vector<1x128xf32> to vector<1x1x1x128xf32>
    %3 = vector.broadcast %2 : vector<1x1x1x128xf32> to vector<4x9x9x128xf32>
    %4 = arith.mulf %0, %3 : vector<4x9x9x128xf32>
    %c0_5 = arith.constant 0 : index
    %c0_6 = arith.constant 0 : index
    %5 = vector.load %arg4[%c0_5, %c0_6] : memref<1x128xf32, #tpu.memory_space<vmem>>, vector<1x128xf32>
    %6 = vector.shape_cast %5 : vector<1x128xf32> to vector<1x1x1x128xf32>
    %7 = vector.broadcast %6 : vector<1x1x1x128xf32> to vector<4x9x9x128xf32>
    %8 = arith.addf %4, %7 : vector<4x9x9x128xf32>
    %cst = arith.constant 0.000000e+00 : f32
    %9 = vector.broadcast %cst : f32 to vector<4x9x9x128xf32>
    %10 = arith.maximumf %8, %9 : vector<4x9x9x128xf32>
    %11 = tpu.iota {dimensions = array<i32: 0>} : vector<9x9x128xi32>
    %12 = tpu.iota {dimensions = array<i32: 1>} : vector<9x9x128xi32>
    %c2_i32 = arith.constant 2 : i32
    %13 = vector.broadcast %c2_i32 : i32 to vector<9x9x128xi32>
    %14 = arith.muli %11, %13 : vector<9x9x128xi32>
    %c0_i32 = arith.constant 0 : i32
    %15 = vector.broadcast %c0_i32 : i32 to vector<9x9x128xi32>
    %16 = arith.addi %14, %15 : vector<9x9x128xi32>
    %c2_i32_7 = arith.constant 2 : i32
    %17 = vector.broadcast %c2_i32_7 : i32 to vector<9x9x128xi32>
    %18 = arith.muli %12, %17 : vector<9x9x128xi32>
    %c0_i32_8 = arith.constant 0 : i32
    %19 = vector.broadcast %c0_i32_8 : i32 to vector<9x9x128xi32>
    %20 = arith.addi %18, %19 : vector<9x9x128xi32>
    %c1_i32 = arith.constant 1 : i32
    %21 = vector.broadcast %c1_i32 : i32 to vector<9x9x128xi32>
    %22 = arith.cmpi sge, %16, %21 : vector<9x9x128xi32>
    %c16_i32 = arith.constant 16 : i32
    %23 = vector.broadcast %c16_i32 : i32 to vector<9x9x128xi32>
    %24 = arith.cmpi sle, %16, %23 : vector<9x9x128xi32>
    %25 = arith.andi %22, %24 : vector<9x9x128xi1>
    %c1_i32_9 = arith.constant 1 : i32
    %26 = vector.broadcast %c1_i32_9 : i32 to vector<9x9x128xi32>
    %27 = arith.cmpi sge, %20, %26 : vector<9x9x128xi32>
    %28 = arith.andi %25, %27 : vector<9x9x128xi1>
    %c16_i32_10 = arith.constant 16 : i32
    %29 = vector.broadcast %c16_i32_10 : i32 to vector<9x9x128xi32>
    %30 = arith.cmpi sle, %20, %29 : vector<9x9x128xi32>
    %31 = arith.andi %28, %30 : vector<9x9x128xi1>
    %32 = vector.extract_strided_slice %10 {offsets = [0, 0, 0, 0], sizes = [1, 9, 9, 128], strides = [1, 1, 1, 1]} : vector<4x9x9x128xf32> to vector<1x9x9x128xf32>
    %33 = vector.shape_cast %32 : vector<1x9x9x128xf32> to vector<9x9x128xf32>
    %cst_11 = arith.constant 0.000000e+00 : f32
    %34 = vector.broadcast %cst_11 : f32 to vector<9x9x128xf32>
    %35 = arith.select %31, %33, %34 : vector<9x9x128xi1>, vector<9x9x128xf32>
    %c2_i32_12 = arith.constant 2 : i32
    %36 = vector.broadcast %c2_i32_12 : i32 to vector<9x9x128xi32>
    %37 = arith.muli %11, %36 : vector<9x9x128xi32>
    %c0_i32_13 = arith.constant 0 : i32
    %38 = vector.broadcast %c0_i32_13 : i32 to vector<9x9x128xi32>
    %39 = arith.addi %37, %38 : vector<9x9x128xi32>
    %c2_i32_14 = arith.constant 2 : i32
    %40 = vector.broadcast %c2_i32_14 : i32 to vector<9x9x128xi32>
    %41 = arith.muli %12, %40 : vector<9x9x128xi32>
    %c1_i32_15 = arith.constant 1 : i32
    %42 = vector.broadcast %c1_i32_15 : i32 to vector<9x9x128xi32>
    %43 = arith.addi %41, %42 : vector<9x9x128xi32>
    %c1_i32_16 = arith.constant 1 : i32
    %44 = vector.broadcast %c1_i32_16 : i32 to vector<9x9x128xi32>
    %45 = arith.cmpi sge, %39, %44 : vector<9x9x128xi32>
    %c16_i32_17 = arith.constant 16 : i32
    %46 = vector.broadcast %c16_i32_17 : i32 to vector<9x9x128xi32>
    %47 = arith.cmpi sle, %39, %46 : vector<9x9x128xi32>
    %48 = arith.andi %45, %47 : vector<9x9x128xi1>
    %c1_i32_18 = arith.constant 1 : i32
    %49 = vector.broadcast %c1_i32_18 : i32 to vector<9x9x128xi32>
    %50 = arith.cmpi sge, %43, %49 : vector<9x9x128xi32>
    %51 = arith.andi %48, %50 : vector<9x9x128xi1>
    %c16_i32_19 = arith.constant 16 : i32
    %52 = vector.broadcast %c16_i32_19 : i32 to vector<9x9x128xi32>
    %53 = arith.cmpi sle, %43, %52 : vector<9x9x128xi32>
    %54 = arith.andi %51, %53 : vector<9x9x128xi1>
    %55 = vector.extract_strided_slice %10 {offsets = [1, 0, 0, 0], sizes = [1, 9, 9, 128], strides = [1, 1, 1, 1]} : vector<4x9x9x128xf32> to vector<1x9x9x128xf32>
    %56 = vector.shape_cast %55 : vector<1x9x9x128xf32> to vector<9x9x128xf32>
    %cst_20 = arith.constant 0.000000e+00 : f32
    %57 = vector.broadcast %cst_20 : f32 to vector<9x9x128xf32>
    %58 = arith.select %54, %56, %57 : vector<9x9x128xi1>, vector<9x9x128xf32>
    %c2_i32_21 = arith.constant 2 : i32
    %59 = vector.broadcast %c2_i32_21 : i32 to vector<9x9x128xi32>
    %60 = arith.muli %11, %59 : vector<9x9x128xi32>
    %c1_i32_22 = arith.constant 1 : i32
    %61 = vector.broadcast %c1_i32_22 : i32 to vector<9x9x128xi32>
    %62 = arith.addi %60, %61 : vector<9x9x128xi32>
    %c2_i32_23 = arith.constant 2 : i32
    %63 = vector.broadcast %c2_i32_23 : i32 to vector<9x9x128xi32>
    %64 = arith.muli %12, %63 : vector<9x9x128xi32>
    %c0_i32_24 = arith.constant 0 : i32
    %65 = vector.broadcast %c0_i32_24 : i32 to vector<9x9x128xi32>
    %66 = arith.addi %64, %65 : vector<9x9x128xi32>
    %c1_i32_25 = arith.constant 1 : i32
    %67 = vector.broadcast %c1_i32_25 : i32 to vector<9x9x128xi32>
    %68 = arith.cmpi sge, %62, %67 : vector<9x9x128xi32>
    %c16_i32_26 = arith.constant 16 : i32
    %69 = vector.broadcast %c16_i32_26 : i32 to vector<9x9x128xi32>
    %70 = arith.cmpi sle, %62, %69 : vector<9x9x128xi32>
    %71 = arith.andi %68, %70 : vector<9x9x128xi1>
    %c1_i32_27 = arith.constant 1 : i32
    %72 = vector.broadcast %c1_i32_27 : i32 to vector<9x9x128xi32>
    %73 = arith.cmpi sge, %66, %72 : vector<9x9x128xi32>
    %74 = arith.andi %71, %73 : vector<9x9x128xi1>
    %c16_i32_28 = arith.constant 16 : i32
    %75 = vector.broadcast %c16_i32_28 : i32 to vector<9x9x128xi32>
    %76 = arith.cmpi sle, %66, %75 : vector<9x9x128xi32>
    %77 = arith.andi %74, %76 : vector<9x9x128xi1>
    %78 = vector.extract_strided_slice %10 {offsets = [2, 0, 0, 0], sizes = [1, 9, 9, 128], strides = [1, 1, 1, 1]} : vector<4x9x9x128xf32> to vector<1x9x9x128xf32>
    %79 = vector.shape_cast %78 : vector<1x9x9x128xf32> to vector<9x9x128xf32>
    %cst_29 = arith.constant 0.000000e+00 : f32
    %80 = vector.broadcast %cst_29 : f32 to vector<9x9x128xf32>
    %81 = arith.select %77, %79, %80 : vector<9x9x128xi1>, vector<9x9x128xf32>
    %c2_i32_30 = arith.constant 2 : i32
    %82 = vector.broadcast %c2_i32_30 : i32 to vector<9x9x128xi32>
    %83 = arith.muli %11, %82 : vector<9x9x128xi32>
    %c1_i32_31 = arith.constant 1 : i32
    %84 = vector.broadcast %c1_i32_31 : i32 to vector<9x9x128xi32>
    %85 = arith.addi %83, %84 : vector<9x9x128xi32>
    %c2_i32_32 = arith.constant 2 : i32
    %86 = vector.broadcast %c2_i32_32 : i32 to vector<9x9x128xi32>
    %87 = arith.muli %12, %86 : vector<9x9x128xi32>
    %c1_i32_33 = arith.constant 1 : i32
    %88 = vector.broadcast %c1_i32_33 : i32 to vector<9x9x128xi32>
    %89 = arith.addi %87, %88 : vector<9x9x128xi32>
    %c1_i32_34 = arith.constant 1 : i32
    %90 = vector.broadcast %c1_i32_34 : i32 to vector<9x9x128xi32>
    %91 = arith.cmpi sge, %85, %90 : vector<9x9x128xi32>
    %c16_i32_35 = arith.constant 16 : i32
    %92 = vector.broadcast %c16_i32_35 : i32 to vector<9x9x128xi32>
    %93 = arith.cmpi sle, %85, %92 : vector<9x9x128xi32>
    %94 = arith.andi %91, %93 : vector<9x9x128xi1>
    %c1_i32_36 = arith.constant 1 : i32
    %95 = vector.broadcast %c1_i32_36 : i32 to vector<9x9x128xi32>
    %96 = arith.cmpi sge, %89, %95 : vector<9x9x128xi32>
    %97 = arith.andi %94, %96 : vector<9x9x128xi1>
    %c16_i32_37 = arith.constant 16 : i32
    %98 = vector.broadcast %c16_i32_37 : i32 to vector<9x9x128xi32>
    %99 = arith.cmpi sle, %89, %98 : vector<9x9x128xi32>
    %100 = arith.andi %97, %99 : vector<9x9x128xi1>
    %101 = vector.extract_strided_slice %10 {offsets = [3, 0, 0, 0], sizes = [1, 9, 9, 128], strides = [1, 1, 1, 1]} : vector<4x9x9x128xf32> to vector<1x9x9x128xf32>
    %102 = vector.shape_cast %101 : vector<1x9x9x128xf32> to vector<9x9x128xf32>
    %cst_38 = arith.constant 0.000000e+00 : f32
    %103 = vector.broadcast %cst_38 : f32 to vector<9x9x128xf32>
    %104 = arith.select %100, %102, %103 : vector<9x9x128xi1>, vector<9x9x128xf32>
    %cst_39 = arith.constant 0.000000e+00 : f32
    %105 = vector.broadcast %cst_39 : f32 to vector<64x128xf32>
    %106 = vector.extract_strided_slice %35 {offsets = [0, 0, 0], sizes = [8, 8, 128], strides = [1, 1, 1]} : vector<9x9x128xf32> to vector<8x8x128xf32>
    %107 = vector.shape_cast %106 : vector<8x8x128xf32> to vector<64x128xf32>
    %c0_40 = arith.constant 0 : index
    %c0_41 = arith.constant 0 : index
    %c0_42 = arith.constant 0 : index
    %c0_43 = arith.constant 0 : index
    %108 = vector.load %arg5[%c0_40, %c0_41, %c0_42, %c0_43] : memref<3x3x128x128xf32, #tpu.memory_space<vmem>>, vector<1x1x128x128xf32>
    %109 = vector.shape_cast %108 : vector<1x1x128x128xf32> to vector<128x128xf32>
    %cst_44 = arith.constant dense<0.000000e+00> : vector<64x128xf32>
    %110 = tpu.matmul %107, %109, %cst_44 {dimension_numbers = #tpu.dot_dimension_numbers<[1], [0], [0], [1], [0, 0, 1, 1], [], []>} : vector<64x128xf32>, vector<128x128xf32>, vector<64x128xf32> -> vector<64x128xf32>
    %111 = arith.addf %105, %110 : vector<64x128xf32>
    %112 = vector.extract_strided_slice %58 {offsets = [0, 0, 0], sizes = [8, 8, 128], strides = [1, 1, 1]} : vector<9x9x128xf32> to vector<8x8x128xf32>
    %113 = vector.shape_cast %112 : vector<8x8x128xf32> to vector<64x128xf32>
    %c0_45 = arith.constant 0 : index
    %c1 = arith.constant 1 : index
    %c0_46 = arith.constant 0 : index
    %c0_47 = arith.constant 0 : index
    %114 = vector.load %arg5[%c0_45, %c1, %c0_46, %c0_47] : memref<3x3x128x128xf32, #tpu.memory_space<vmem>>, vector<1x1x128x128xf32>
    %115 = vector.shape_cast %114 : vector<1x1x128x128xf32> to vector<128x128xf32>
    %cst_48 = arith.constant dense<0.000000e+00> : vector<64x128xf32>
    %116 = tpu.matmul %113, %115, %cst_48 {dimension_numbers = #tpu.dot_dimension_numbers<[1], [0], [0], [1], [0, 0, 1, 1], [], []>} : vector<64x128xf32>, vector<128x128xf32>, vector<64x128xf32> -> vector<64x128xf32>
    %117 = arith.addf %111, %116 : vector<64x128xf32>
    %118 = vector.extract_strided_slice %35 {offsets = [0, 1, 0], sizes = [8, 8, 128], strides = [1, 1, 1]} : vector<9x9x128xf32> to vector<8x8x128xf32>
    %119 = vector.shape_cast %118 : vector<8x8x128xf32> to vector<64x128xf32>
    %c0_49 = arith.constant 0 : index
    %c2 = arith.constant 2 : index
    %c0_50 = arith.constant 0 : index
    %c0_51 = arith.constant 0 : index
    %120 = vector.load %arg5[%c0_49, %c2, %c0_50, %c0_51] : memref<3x3x128x128xf32, #tpu.memory_space<vmem>>, vector<1x1x128x128xf32>
    %121 = vector.shape_cast %120 : vector<1x1x128x128xf32> to vector<128x128xf32>
    %cst_52 = arith.constant dense<0.000000e+00> : vector<64x128xf32>
    %122 = tpu.matmul %119, %121, %cst_52 {dimension_numbers = #tpu.dot_dimension_numbers<[1], [0], [0], [1], [0, 0, 1, 1], [], []>} : vector<64x128xf32>, vector<128x128xf32>, vector<64x128xf32> -> vector<64x128xf32>
    %123 = arith.addf %117, %122 : vector<64x128xf32>
    %124 = vector.extract_strided_slice %81 {offsets = [0, 0, 0], sizes = [8, 8, 128], strides = [1, 1, 1]} : vector<9x9x128xf32> to vector<8x8x128xf32>
    %125 = vector.shape_cast %124 : vector<8x8x128xf32> to vector<64x128xf32>
    %c1_53 = arith.constant 1 : index
    %c0_54 = arith.constant 0 : index
    %c0_55 = arith.constant 0 : index
    %c0_56 = arith.constant 0 : index
    %126 = vector.load %arg5[%c1_53, %c0_54, %c0_55, %c0_56] : memref<3x3x128x128xf32, #tpu.memory_space<vmem>>, vector<1x1x128x128xf32>
    %127 = vector.shape_cast %126 : vector<1x1x128x128xf32> to vector<128x128xf32>
    %cst_57 = arith.constant dense<0.000000e+00> : vector<64x128xf32>
    %128 = tpu.matmul %125, %127, %cst_57 {dimension_numbers = #tpu.dot_dimension_numbers<[1], [0], [0], [1], [0, 0, 1, 1], [], []>} : vector<64x128xf32>, vector<128x128xf32>, vector<64x128xf32> -> vector<64x128xf32>
    %129 = arith.addf %123, %128 : vector<64x128xf32>
    %130 = vector.extract_strided_slice %104 {offsets = [0, 0, 0], sizes = [8, 8, 128], strides = [1, 1, 1]} : vector<9x9x128xf32> to vector<8x8x128xf32>
    %131 = vector.shape_cast %130 : vector<8x8x128xf32> to vector<64x128xf32>
    %c1_58 = arith.constant 1 : index
    %c1_59 = arith.constant 1 : index
    %c0_60 = arith.constant 0 : index
    %c0_61 = arith.constant 0 : index
    %132 = vector.load %arg5[%c1_58, %c1_59, %c0_60, %c0_61] : memref<3x3x128x128xf32, #tpu.memory_space<vmem>>, vector<1x1x128x128xf32>
    %133 = vector.shape_cast %132 : vector<1x1x128x128xf32> to vector<128x128xf32>
    %cst_62 = arith.constant dense<0.000000e+00> : vector<64x128xf32>
    %134 = tpu.matmul %131, %133, %cst_62 {dimension_numbers = #tpu.dot_dimension_numbers<[1], [0], [0], [1], [0, 0, 1, 1], [], []>} : vector<64x128xf32>, vector<128x128xf32>, vector<64x128xf32> -> vector<64x128xf32>
    %135 = arith.addf %129, %134 : vector<64x128xf32>
    %136 = vector.extract_strided_slice %81 {offsets = [0, 1, 0], sizes = [8, 8, 128], strides = [1, 1, 1]} : vector<9x9x128xf32> to vector<8x8x128xf32>
    %137 = vector.shape_cast %136 : vector<8x8x128xf32> to vector<64x128xf32>
    %c1_63 = arith.constant 1 : index
    %c2_64 = arith.constant 2 : index
    %c0_65 = arith.constant 0 : index
    %c0_66 = arith.constant 0 : index
    %138 = vector.load %arg5[%c1_63, %c2_64, %c0_65, %c0_66] : memref<3x3x128x128xf32, #tpu.memory_space<vmem>>, vector<1x1x128x128xf32>
    %139 = vector.shape_cast %138 : vector<1x1x128x128xf32> to vector<128x128xf32>
    %cst_67 = arith.constant dense<0.000000e+00> : vector<64x128xf32>
    %140 = tpu.matmul %137, %139, %cst_67 {dimension_numbers = #tpu.dot_dimension_numbers<[1], [0], [0], [1], [0, 0, 1, 1], [], []>} : vector<64x128xf32>, vector<128x128xf32>, vector<64x128xf32> -> vector<64x128xf32>
    %141 = arith.addf %135, %140 : vector<64x128xf32>
    %142 = vector.extract_strided_slice %35 {offsets = [1, 0, 0], sizes = [8, 8, 128], strides = [1, 1, 1]} : vector<9x9x128xf32> to vector<8x8x128xf32>
    %143 = vector.shape_cast %142 : vector<8x8x128xf32> to vector<64x128xf32>
    %c2_68 = arith.constant 2 : index
    %c0_69 = arith.constant 0 : index
    %c0_70 = arith.constant 0 : index
    %c0_71 = arith.constant 0 : index
    %144 = vector.load %arg5[%c2_68, %c0_69, %c0_70, %c0_71] : memref<3x3x128x128xf32, #tpu.memory_space<vmem>>, vector<1x1x128x128xf32>
    %145 = vector.shape_cast %144 : vector<1x1x128x128xf32> to vector<128x128xf32>
    %cst_72 = arith.constant dense<0.000000e+00> : vector<64x128xf32>
    %146 = tpu.matmul %143, %145, %cst_72 {dimension_numbers = #tpu.dot_dimension_numbers<[1], [0], [0], [1], [0, 0, 1, 1], [], []>} : vector<64x128xf32>, vector<128x128xf32>, vector<64x128xf32> -> vector<64x128xf32>
    %147 = arith.addf %141, %146 : vector<64x128xf32>
    %148 = vector.extract_strided_slice %58 {offsets = [1, 0, 0], sizes = [8, 8, 128], strides = [1, 1, 1]} : vector<9x9x128xf32> to vector<8x8x128xf32>
    %149 = vector.shape_cast %148 : vector<8x8x128xf32> to vector<64x128xf32>
    %c2_73 = arith.constant 2 : index
    %c1_74 = arith.constant 1 : index
    %c0_75 = arith.constant 0 : index
    %c0_76 = arith.constant 0 : index
    %150 = vector.load %arg5[%c2_73, %c1_74, %c0_75, %c0_76] : memref<3x3x128x128xf32, #tpu.memory_space<vmem>>, vector<1x1x128x128xf32>
    %151 = vector.shape_cast %150 : vector<1x1x128x128xf32> to vector<128x128xf32>
    %cst_77 = arith.constant dense<0.000000e+00> : vector<64x128xf32>
    %152 = tpu.matmul %149, %151, %cst_77 {dimension_numbers = #tpu.dot_dimension_numbers<[1], [0], [0], [1], [0, 0, 1, 1], [], []>} : vector<64x128xf32>, vector<128x128xf32>, vector<64x128xf32> -> vector<64x128xf32>
    %153 = arith.addf %147, %152 : vector<64x128xf32>
    %154 = vector.extract_strided_slice %35 {offsets = [1, 1, 0], sizes = [8, 8, 128], strides = [1, 1, 1]} : vector<9x9x128xf32> to vector<8x8x128xf32>
    %155 = vector.shape_cast %154 : vector<8x8x128xf32> to vector<64x128xf32>
    %c2_78 = arith.constant 2 : index
    %c2_79 = arith.constant 2 : index
    %c0_80 = arith.constant 0 : index
    %c0_81 = arith.constant 0 : index
    %156 = vector.load %arg5[%c2_78, %c2_79, %c0_80, %c0_81] : memref<3x3x128x128xf32, #tpu.memory_space<vmem>>, vector<1x1x128x128xf32>
    %157 = vector.shape_cast %156 : vector<1x1x128x128xf32> to vector<128x128xf32>
    %cst_82 = arith.constant dense<0.000000e+00> : vector<64x128xf32>
    %158 = tpu.matmul %155, %157, %cst_82 {dimension_numbers = #tpu.dot_dimension_numbers<[1], [0], [0], [1], [0, 0, 1, 1], [], []>} : vector<64x128xf32>, vector<128x128xf32>, vector<64x128xf32> -> vector<64x128xf32>
    %159 = arith.addf %153, %158 : vector<64x128xf32>
    %c0_83 = arith.constant 0 : index
    %c0_84 = arith.constant 0 : index
    %160 = vector.load %arg6[%c0_83, %c0_84] : memref<1x128xf32, #tpu.memory_space<vmem>>, vector<1x128xf32>
    %161 = vector.broadcast %160 : vector<1x128xf32> to vector<64x128xf32>
    %162 = arith.mulf %159, %161 : vector<64x128xf32>
    %c0_85 = arith.constant 0 : index
    %c0_86 = arith.constant 0 : index
    %163 = vector.load %arg7[%c0_85, %c0_86] : memref<1x128xf32, #tpu.memory_space<vmem>>, vector<1x128xf32>
    %164 = vector.broadcast %163 : vector<1x128xf32> to vector<64x128xf32>
    %165 = arith.addf %162, %164 : vector<64x128xf32>
    %cst_87 = arith.constant 0.000000e+00 : f32
    %166 = vector.broadcast %cst_87 : f32 to vector<64x128xf32>
    %167 = arith.maximumf %165, %166 : vector<64x128xf32>
    %168 = vector.shape_cast %167 : vector<64x128xf32> to vector<1x8x8x128xf32>
    %c0_88 = arith.constant 0 : index
    %c0_89 = arith.constant 0 : index
    %c0_90 = arith.constant 0 : index
    %c0_91 = arith.constant 0 : index
    %169 = vector.load %arg9[%c0_88, %c0_89, %c0_90, %c0_91] : memref<1x8x8x128xf32, #tpu.memory_space<vmem>>, vector<1x8x8x128xf32>
    tpu.vector_store %arg9[%c0_88, %c0_89, %c0_90, %c0_91], %168 {strides = array<i32>} : memref<1x8x8x128xf32, #tpu.memory_space<vmem>>, vector<1x8x8x128xf32>,
    %170 = vector.extract_strided_slice %104 {offsets = [0, 0, 0], sizes = [8, 8, 128], strides = [1, 1, 1]} : vector<9x9x128xf32> to vector<8x8x128xf32>
    %171 = vector.shape_cast %170 : vector<8x8x128xf32> to vector<64x128xf32>
    %c0_92 = arith.constant 0 : index
    %c0_93 = arith.constant 0 : index
    %172 = vector.load %arg8[%c0_92, %c0_93] : memref<128x128xf32, #tpu.memory_space<vmem>>, vector<128x128xf32>
    %cst_94 = arith.constant dense<0.000000e+00> : vector<64x128xf32>
    %173 = tpu.matmul %171, %172, %cst_94 {dimension_numbers = #tpu.dot_dimension_numbers<[1], [0], [0], [1], [0, 0, 1, 1], [], []>} : vector<64x128xf32>, vector<128x128xf32>, vector<64x128xf32> -> vector<64x128xf32>
    %174 = vector.shape_cast %173 : vector<64x128xf32> to vector<1x8x8x128xf32>
    %c0_95 = arith.constant 0 : index
    %c0_96 = arith.constant 0 : index
    %c0_97 = arith.constant 0 : index
    %c0_98 = arith.constant 0 : index
    %175 = vector.load %arg10[%c0_95, %c0_96, %c0_97, %c0_98] : memref<1x8x8x128xf32, #tpu.memory_space<vmem>>, vector<1x8x8x128xf32>
    tpu.vector_store %arg10[%c0_95, %c0_96, %c0_97, %c0_98], %174 {strides = array<i32>} : memref<1x8x8x128xf32, #tpu.memory_space<vmem>>, vector<1x8x8x128xf32>,
    return
  }
  func.func @transform_0(%arg0: i32, %arg1: i32) -> (i32, i32, i32, i32) {
    %c0_i32 = arith.constant 0 : i32
    %c0_i32_0 = arith.constant 0 : i32
    %c0_i32_1 = arith.constant 0 : i32
    %c0_i32_2 = arith.constant 0 : i32
    return %arg0, %c0_i32, %c0_i32_0, %c0_i32_1 : i32, i32, i32, i32
  }
  func.func @transform_1(%arg0: i32, %arg1: i32) -> (i32, i32) {
    %c0_i32 = arith.constant 0 : i32
    %c0_i32_0 = arith.constant 0 : i32
    %c0_i32_1 = arith.constant 0 : i32
    return %c0_i32, %c0_i32_0 : i32, i32
  }
  func.func @transform_2(%arg0: i32, %arg1: i32) -> (i32, i32) {
    %c0_i32 = arith.constant 0 : i32
    %c0_i32_0 = arith.constant 0 : i32
    %c0_i32_1 = arith.constant 0 : i32
    return %c0_i32, %c0_i32_0 : i32, i32
  }
  func.func @transform_3(%arg0: i32, %arg1: i32) -> (i32, i32, i32, i32) {
    %c0_i32 = arith.constant 0 : i32
    %c0_i32_0 = arith.constant 0 : i32
    %c0_i32_1 = arith.constant 0 : i32
    %c0_i32_2 = arith.constant 0 : i32
    return %c0_i32, %c0_i32_0, %c0_i32_1, %arg1 : i32, i32, i32, i32
  }
  func.func @transform_4(%arg0: i32, %arg1: i32) -> (i32, i32) {
    %c0_i32 = arith.constant 0 : i32
    %c0_i32_0 = arith.constant 0 : i32
    return %c0_i32, %arg1 : i32, i32
  }
  func.func @transform_5(%arg0: i32, %arg1: i32) -> (i32, i32) {
    %c0_i32 = arith.constant 0 : i32
    %c0_i32_0 = arith.constant 0 : i32
    return %c0_i32, %arg1 : i32, i32
  }
  func.func @transform_6(%arg0: i32, %arg1: i32) -> (i32, i32) {
    %c0_i32 = arith.constant 0 : i32
    %c0_i32_0 = arith.constant 0 : i32
    return %c0_i32, %arg1 : i32, i32
  }
  func.func @transform_7(%arg0: i32, %arg1: i32) -> (i32, i32, i32, i32) {
    %c0_i32 = arith.constant 0 : i32
    %c0_i32_0 = arith.constant 0 : i32
    %c0_i32_1 = arith.constant 0 : i32
    return %arg0, %c0_i32, %c0_i32_0, %arg1 : i32, i32, i32, i32
  }
  func.func @transform_8(%arg0: i32, %arg1: i32) -> (i32, i32, i32, i32) {
    %c0_i32 = arith.constant 0 : i32
    %c0_i32_0 = arith.constant 0 : i32
    %c0_i32_1 = arith.constant 0 : i32
    return %arg0, %c0_i32, %c0_i32_0, %arg1 : i32, i32, i32, i32
  }
}

module attributes {stable_mosaic.version = 11 : i64} {
  func.func @_conv1_kernel(%arg0: i32, %arg1: i32, %arg2: memref<1x10x10x128xf32, #tpu.memory_space<vmem>>, %arg3: memref<1x128xf32, #tpu.memory_space<vmem>>, %arg4: memref<1x128xf32, #tpu.memory_space<vmem>>, %arg5: memref<3x3x128x128xf32, #tpu.memory_space<vmem>>, %arg6: memref<1x128xf32, #tpu.memory_space<vmem>>, %arg7: memref<1x128xf32, #tpu.memory_space<vmem>>, %arg8: memref<1x8x8x128xf32, #tpu.memory_space<vmem>>) attributes {dimension_semantics = [#tpu.dimension_semantics<parallel>, #tpu.dimension_semantics<parallel>], iteration_bounds = array<i64: 2, 1>, scalar_prefetch = 0 : i64, scratch_operands = 0 : i64, tpu.core_type = #tpu.core_type<tc>, window_params = [{transform_indices = @transform_0, window_bounds = array<i64: 1, 10, 10, 128>}, {pipeline_mode = #tpu.pipeline_mode<synchronous>, transform_indices = @transform_1, window_bounds = array<i64: 1, 128>}, {pipeline_mode = #tpu.pipeline_mode<synchronous>, transform_indices = @transform_2, window_bounds = array<i64: 1, 128>}, {transform_indices = @transform_3, window_bounds = array<i64: 3, 3, 128, 128>}, {transform_indices = @transform_4, window_bounds = array<i64: 1, 128>}, {transform_indices = @transform_5, window_bounds = array<i64: 1, 128>}, {transform_indices = @transform_6, window_bounds = array<i64: 1, 8, 8, 128>}]} {
    %c0 = arith.constant 0 : index
    %c0_0 = arith.constant 0 : index
    %c0_1 = arith.constant 0 : index
    %c0_2 = arith.constant 0 : index
    %0 = vector.load %arg2[%c0, %c0_0, %c0_1, %c0_2] : memref<1x10x10x128xf32, #tpu.memory_space<vmem>>, vector<1x10x10x128xf32>
    %c0_3 = arith.constant 0 : index
    %c0_4 = arith.constant 0 : index
    %1 = vector.load %arg3[%c0_3, %c0_4] : memref<1x128xf32, #tpu.memory_space<vmem>>, vector<1x128xf32>
    %2 = vector.shape_cast %1 : vector<1x128xf32> to vector<1x1x1x128xf32>
    %3 = vector.broadcast %2 : vector<1x1x1x128xf32> to vector<1x10x10x128xf32>
    %4 = arith.mulf %0, %3 : vector<1x10x10x128xf32>
    %c0_5 = arith.constant 0 : index
    %c0_6 = arith.constant 0 : index
    %5 = vector.load %arg4[%c0_5, %c0_6] : memref<1x128xf32, #tpu.memory_space<vmem>>, vector<1x128xf32>
    %6 = vector.shape_cast %5 : vector<1x128xf32> to vector<1x1x1x128xf32>
    %7 = vector.broadcast %6 : vector<1x1x1x128xf32> to vector<1x10x10x128xf32>
    %8 = arith.addf %4, %7 : vector<1x10x10x128xf32>
    %cst = arith.constant 0.000000e+00 : f32
    %9 = vector.broadcast %cst : f32 to vector<1x10x10x128xf32>
    %10 = arith.maximumf %8, %9 : vector<1x10x10x128xf32>
    %11 = tpu.iota {dimensions = array<i32: 0>} : vector<10x10x128xi32>
    %12 = tpu.iota {dimensions = array<i32: 1>} : vector<10x10x128xi32>
    %c1_i32 = arith.constant 1 : i32
    %13 = vector.broadcast %c1_i32 : i32 to vector<10x10x128xi32>
    %14 = arith.muli %11, %13 : vector<10x10x128xi32>
    %c0_i32 = arith.constant 0 : i32
    %15 = vector.broadcast %c0_i32 : i32 to vector<10x10x128xi32>
    %16 = arith.addi %14, %15 : vector<10x10x128xi32>
    %c1_i32_7 = arith.constant 1 : i32
    %17 = vector.broadcast %c1_i32_7 : i32 to vector<10x10x128xi32>
    %18 = arith.muli %12, %17 : vector<10x10x128xi32>
    %c0_i32_8 = arith.constant 0 : i32
    %19 = vector.broadcast %c0_i32_8 : i32 to vector<10x10x128xi32>
    %20 = arith.addi %18, %19 : vector<10x10x128xi32>
    %c1_i32_9 = arith.constant 1 : i32
    %21 = vector.broadcast %c1_i32_9 : i32 to vector<10x10x128xi32>
    %22 = arith.cmpi sge, %16, %21 : vector<10x10x128xi32>
    %c8_i32 = arith.constant 8 : i32
    %23 = vector.broadcast %c8_i32 : i32 to vector<10x10x128xi32>
    %24 = arith.cmpi sle, %16, %23 : vector<10x10x128xi32>
    %25 = arith.andi %22, %24 : vector<10x10x128xi1>
    %c1_i32_10 = arith.constant 1 : i32
    %26 = vector.broadcast %c1_i32_10 : i32 to vector<10x10x128xi32>
    %27 = arith.cmpi sge, %20, %26 : vector<10x10x128xi32>
    %28 = arith.andi %25, %27 : vector<10x10x128xi1>
    %c8_i32_11 = arith.constant 8 : i32
    %29 = vector.broadcast %c8_i32_11 : i32 to vector<10x10x128xi32>
    %30 = arith.cmpi sle, %20, %29 : vector<10x10x128xi32>
    %31 = arith.andi %28, %30 : vector<10x10x128xi1>
    %32 = vector.shape_cast %10 : vector<1x10x10x128xf32> to vector<10x10x128xf32>
    %cst_12 = arith.constant 0.000000e+00 : f32
    %33 = vector.broadcast %cst_12 : f32 to vector<10x10x128xf32>
    %34 = arith.select %31, %32, %33 : vector<10x10x128xi1>, vector<10x10x128xf32>
    %cst_13 = arith.constant 0.000000e+00 : f32
    %35 = vector.broadcast %cst_13 : f32 to vector<64x128xf32>
    %36 = vector.extract_strided_slice %34 {offsets = [0, 0, 0], sizes = [8, 8, 128], strides = [1, 1, 1]} : vector<10x10x128xf32> to vector<8x8x128xf32>
    %37 = vector.shape_cast %36 : vector<8x8x128xf32> to vector<64x128xf32>
    %c0_14 = arith.constant 0 : index
    %c0_15 = arith.constant 0 : index
    %c0_16 = arith.constant 0 : index
    %c0_17 = arith.constant 0 : index
    %38 = vector.load %arg5[%c0_14, %c0_15, %c0_16, %c0_17] : memref<3x3x128x128xf32, #tpu.memory_space<vmem>>, vector<1x1x128x128xf32>
    %39 = vector.shape_cast %38 : vector<1x1x128x128xf32> to vector<128x128xf32>
    %cst_18 = arith.constant dense<0.000000e+00> : vector<64x128xf32>
    %40 = tpu.matmul %37, %39, %cst_18 {dimension_numbers = #tpu.dot_dimension_numbers<[1], [0], [0], [1], [0, 0, 1, 1], [], []>} : vector<64x128xf32>, vector<128x128xf32>, vector<64x128xf32> -> vector<64x128xf32>
    %41 = arith.addf %35, %40 : vector<64x128xf32>
    %42 = vector.extract_strided_slice %34 {offsets = [0, 1, 0], sizes = [8, 8, 128], strides = [1, 1, 1]} : vector<10x10x128xf32> to vector<8x8x128xf32>
    %43 = vector.shape_cast %42 : vector<8x8x128xf32> to vector<64x128xf32>
    %c0_19 = arith.constant 0 : index
    %c1 = arith.constant 1 : index
    %c0_20 = arith.constant 0 : index
    %c0_21 = arith.constant 0 : index
    %44 = vector.load %arg5[%c0_19, %c1, %c0_20, %c0_21] : memref<3x3x128x128xf32, #tpu.memory_space<vmem>>, vector<1x1x128x128xf32>
    %45 = vector.shape_cast %44 : vector<1x1x128x128xf32> to vector<128x128xf32>
    %cst_22 = arith.constant dense<0.000000e+00> : vector<64x128xf32>
    %46 = tpu.matmul %43, %45, %cst_22 {dimension_numbers = #tpu.dot_dimension_numbers<[1], [0], [0], [1], [0, 0, 1, 1], [], []>} : vector<64x128xf32>, vector<128x128xf32>, vector<64x128xf32> -> vector<64x128xf32>
    %47 = arith.addf %41, %46 : vector<64x128xf32>
    %48 = vector.extract_strided_slice %34 {offsets = [0, 2, 0], sizes = [8, 8, 128], strides = [1, 1, 1]} : vector<10x10x128xf32> to vector<8x8x128xf32>
    %49 = vector.shape_cast %48 : vector<8x8x128xf32> to vector<64x128xf32>
    %c0_23 = arith.constant 0 : index
    %c2 = arith.constant 2 : index
    %c0_24 = arith.constant 0 : index
    %c0_25 = arith.constant 0 : index
    %50 = vector.load %arg5[%c0_23, %c2, %c0_24, %c0_25] : memref<3x3x128x128xf32, #tpu.memory_space<vmem>>, vector<1x1x128x128xf32>
    %51 = vector.shape_cast %50 : vector<1x1x128x128xf32> to vector<128x128xf32>
    %cst_26 = arith.constant dense<0.000000e+00> : vector<64x128xf32>
    %52 = tpu.matmul %49, %51, %cst_26 {dimension_numbers = #tpu.dot_dimension_numbers<[1], [0], [0], [1], [0, 0, 1, 1], [], []>} : vector<64x128xf32>, vector<128x128xf32>, vector<64x128xf32> -> vector<64x128xf32>
    %53 = arith.addf %47, %52 : vector<64x128xf32>
    %54 = vector.extract_strided_slice %34 {offsets = [1, 0, 0], sizes = [8, 8, 128], strides = [1, 1, 1]} : vector<10x10x128xf32> to vector<8x8x128xf32>
    %55 = vector.shape_cast %54 : vector<8x8x128xf32> to vector<64x128xf32>
    %c1_27 = arith.constant 1 : index
    %c0_28 = arith.constant 0 : index
    %c0_29 = arith.constant 0 : index
    %c0_30 = arith.constant 0 : index
    %56 = vector.load %arg5[%c1_27, %c0_28, %c0_29, %c0_30] : memref<3x3x128x128xf32, #tpu.memory_space<vmem>>, vector<1x1x128x128xf32>
    %57 = vector.shape_cast %56 : vector<1x1x128x128xf32> to vector<128x128xf32>
    %cst_31 = arith.constant dense<0.000000e+00> : vector<64x128xf32>
    %58 = tpu.matmul %55, %57, %cst_31 {dimension_numbers = #tpu.dot_dimension_numbers<[1], [0], [0], [1], [0, 0, 1, 1], [], []>} : vector<64x128xf32>, vector<128x128xf32>, vector<64x128xf32> -> vector<64x128xf32>
    %59 = arith.addf %53, %58 : vector<64x128xf32>
    %60 = vector.extract_strided_slice %34 {offsets = [1, 1, 0], sizes = [8, 8, 128], strides = [1, 1, 1]} : vector<10x10x128xf32> to vector<8x8x128xf32>
    %61 = vector.shape_cast %60 : vector<8x8x128xf32> to vector<64x128xf32>
    %c1_32 = arith.constant 1 : index
    %c1_33 = arith.constant 1 : index
    %c0_34 = arith.constant 0 : index
    %c0_35 = arith.constant 0 : index
    %62 = vector.load %arg5[%c1_32, %c1_33, %c0_34, %c0_35] : memref<3x3x128x128xf32, #tpu.memory_space<vmem>>, vector<1x1x128x128xf32>
    %63 = vector.shape_cast %62 : vector<1x1x128x128xf32> to vector<128x128xf32>
    %cst_36 = arith.constant dense<0.000000e+00> : vector<64x128xf32>
    %64 = tpu.matmul %61, %63, %cst_36 {dimension_numbers = #tpu.dot_dimension_numbers<[1], [0], [0], [1], [0, 0, 1, 1], [], []>} : vector<64x128xf32>, vector<128x128xf32>, vector<64x128xf32> -> vector<64x128xf32>
    %65 = arith.addf %59, %64 : vector<64x128xf32>
    %66 = vector.extract_strided_slice %34 {offsets = [1, 2, 0], sizes = [8, 8, 128], strides = [1, 1, 1]} : vector<10x10x128xf32> to vector<8x8x128xf32>
    %67 = vector.shape_cast %66 : vector<8x8x128xf32> to vector<64x128xf32>
    %c1_37 = arith.constant 1 : index
    %c2_38 = arith.constant 2 : index
    %c0_39 = arith.constant 0 : index
    %c0_40 = arith.constant 0 : index
    %68 = vector.load %arg5[%c1_37, %c2_38, %c0_39, %c0_40] : memref<3x3x128x128xf32, #tpu.memory_space<vmem>>, vector<1x1x128x128xf32>
    %69 = vector.shape_cast %68 : vector<1x1x128x128xf32> to vector<128x128xf32>
    %cst_41 = arith.constant dense<0.000000e+00> : vector<64x128xf32>
    %70 = tpu.matmul %67, %69, %cst_41 {dimension_numbers = #tpu.dot_dimension_numbers<[1], [0], [0], [1], [0, 0, 1, 1], [], []>} : vector<64x128xf32>, vector<128x128xf32>, vector<64x128xf32> -> vector<64x128xf32>
    %71 = arith.addf %65, %70 : vector<64x128xf32>
    %72 = vector.extract_strided_slice %34 {offsets = [2, 0, 0], sizes = [8, 8, 128], strides = [1, 1, 1]} : vector<10x10x128xf32> to vector<8x8x128xf32>
    %73 = vector.shape_cast %72 : vector<8x8x128xf32> to vector<64x128xf32>
    %c2_42 = arith.constant 2 : index
    %c0_43 = arith.constant 0 : index
    %c0_44 = arith.constant 0 : index
    %c0_45 = arith.constant 0 : index
    %74 = vector.load %arg5[%c2_42, %c0_43, %c0_44, %c0_45] : memref<3x3x128x128xf32, #tpu.memory_space<vmem>>, vector<1x1x128x128xf32>
    %75 = vector.shape_cast %74 : vector<1x1x128x128xf32> to vector<128x128xf32>
    %cst_46 = arith.constant dense<0.000000e+00> : vector<64x128xf32>
    %76 = tpu.matmul %73, %75, %cst_46 {dimension_numbers = #tpu.dot_dimension_numbers<[1], [0], [0], [1], [0, 0, 1, 1], [], []>} : vector<64x128xf32>, vector<128x128xf32>, vector<64x128xf32> -> vector<64x128xf32>
    %77 = arith.addf %71, %76 : vector<64x128xf32>
    %78 = vector.extract_strided_slice %34 {offsets = [2, 1, 0], sizes = [8, 8, 128], strides = [1, 1, 1]} : vector<10x10x128xf32> to vector<8x8x128xf32>
    %79 = vector.shape_cast %78 : vector<8x8x128xf32> to vector<64x128xf32>
    %c2_47 = arith.constant 2 : index
    %c1_48 = arith.constant 1 : index
    %c0_49 = arith.constant 0 : index
    %c0_50 = arith.constant 0 : index
    %80 = vector.load %arg5[%c2_47, %c1_48, %c0_49, %c0_50] : memref<3x3x128x128xf32, #tpu.memory_space<vmem>>, vector<1x1x128x128xf32>
    %81 = vector.shape_cast %80 : vector<1x1x128x128xf32> to vector<128x128xf32>
    %cst_51 = arith.constant dense<0.000000e+00> : vector<64x128xf32>
    %82 = tpu.matmul %79, %81, %cst_51 {dimension_numbers = #tpu.dot_dimension_numbers<[1], [0], [0], [1], [0, 0, 1, 1], [], []>} : vector<64x128xf32>, vector<128x128xf32>, vector<64x128xf32> -> vector<64x128xf32>
    %83 = arith.addf %77, %82 : vector<64x128xf32>
    %84 = vector.extract_strided_slice %34 {offsets = [2, 2, 0], sizes = [8, 8, 128], strides = [1, 1, 1]} : vector<10x10x128xf32> to vector<8x8x128xf32>
    %85 = vector.shape_cast %84 : vector<8x8x128xf32> to vector<64x128xf32>
    %c2_52 = arith.constant 2 : index
    %c2_53 = arith.constant 2 : index
    %c0_54 = arith.constant 0 : index
    %c0_55 = arith.constant 0 : index
    %86 = vector.load %arg5[%c2_52, %c2_53, %c0_54, %c0_55] : memref<3x3x128x128xf32, #tpu.memory_space<vmem>>, vector<1x1x128x128xf32>
    %87 = vector.shape_cast %86 : vector<1x1x128x128xf32> to vector<128x128xf32>
    %cst_56 = arith.constant dense<0.000000e+00> : vector<64x128xf32>
    %88 = tpu.matmul %85, %87, %cst_56 {dimension_numbers = #tpu.dot_dimension_numbers<[1], [0], [0], [1], [0, 0, 1, 1], [], []>} : vector<64x128xf32>, vector<128x128xf32>, vector<64x128xf32> -> vector<64x128xf32>
    %89 = arith.addf %83, %88 : vector<64x128xf32>
    %c0_57 = arith.constant 0 : index
    %c0_58 = arith.constant 0 : index
    %90 = vector.load %arg6[%c0_57, %c0_58] : memref<1x128xf32, #tpu.memory_space<vmem>>, vector<1x128xf32>
    %91 = vector.broadcast %90 : vector<1x128xf32> to vector<64x128xf32>
    %92 = arith.mulf %89, %91 : vector<64x128xf32>
    %c0_59 = arith.constant 0 : index
    %c0_60 = arith.constant 0 : index
    %93 = vector.load %arg7[%c0_59, %c0_60] : memref<1x128xf32, #tpu.memory_space<vmem>>, vector<1x128xf32>
    %94 = vector.broadcast %93 : vector<1x128xf32> to vector<64x128xf32>
    %95 = arith.addf %92, %94 : vector<64x128xf32>
    %cst_61 = arith.constant 0.000000e+00 : f32
    %96 = vector.broadcast %cst_61 : f32 to vector<64x128xf32>
    %97 = arith.maximumf %95, %96 : vector<64x128xf32>
    %98 = vector.shape_cast %97 : vector<64x128xf32> to vector<1x8x8x128xf32>
    %c0_62 = arith.constant 0 : index
    %c0_63 = arith.constant 0 : index
    %c0_64 = arith.constant 0 : index
    %c0_65 = arith.constant 0 : index
    %99 = vector.load %arg8[%c0_62, %c0_63, %c0_64, %c0_65] : memref<1x8x8x128xf32, #tpu.memory_space<vmem>>, vector<1x8x8x128xf32>
    tpu.vector_store %arg8[%c0_62, %c0_63, %c0_64, %c0_65], %98 {strides = array<i32>} : memref<1x8x8x128xf32, #tpu.memory_space<vmem>>, vector<1x8x8x128xf32>,
    return
  }
  func.func @transform_0(%arg0: i32, %arg1: i32) -> (i32, i32, i32, i32) {
    %c0_i32 = arith.constant 0 : i32
    %c0_i32_0 = arith.constant 0 : i32
    %c0_i32_1 = arith.constant 0 : i32
    %c0_i32_2 = arith.constant 0 : i32
    return %arg0, %c0_i32, %c0_i32_0, %c0_i32_1 : i32, i32, i32, i32
  }
  func.func @transform_1(%arg0: i32, %arg1: i32) -> (i32, i32) {
    %c0_i32 = arith.constant 0 : i32
    %c0_i32_0 = arith.constant 0 : i32
    %c0_i32_1 = arith.constant 0 : i32
    return %c0_i32, %c0_i32_0 : i32, i32
  }
  func.func @transform_2(%arg0: i32, %arg1: i32) -> (i32, i32) {
    %c0_i32 = arith.constant 0 : i32
    %c0_i32_0 = arith.constant 0 : i32
    %c0_i32_1 = arith.constant 0 : i32
    return %c0_i32, %c0_i32_0 : i32, i32
  }
  func.func @transform_3(%arg0: i32, %arg1: i32) -> (i32, i32, i32, i32) {
    %c0_i32 = arith.constant 0 : i32
    %c0_i32_0 = arith.constant 0 : i32
    %c0_i32_1 = arith.constant 0 : i32
    %c0_i32_2 = arith.constant 0 : i32
    return %c0_i32, %c0_i32_0, %c0_i32_1, %arg1 : i32, i32, i32, i32
  }
  func.func @transform_4(%arg0: i32, %arg1: i32) -> (i32, i32) {
    %c0_i32 = arith.constant 0 : i32
    %c0_i32_0 = arith.constant 0 : i32
    return %c0_i32, %arg1 : i32, i32
  }
  func.func @transform_5(%arg0: i32, %arg1: i32) -> (i32, i32) {
    %c0_i32 = arith.constant 0 : i32
    %c0_i32_0 = arith.constant 0 : i32
    return %c0_i32, %arg1 : i32, i32
  }
  func.func @transform_6(%arg0: i32, %arg1: i32) -> (i32, i32, i32, i32) {
    %c0_i32 = arith.constant 0 : i32
    %c0_i32_0 = arith.constant 0 : i32
    %c0_i32_1 = arith.constant 0 : i32
    return %arg0, %c0_i32, %c0_i32_0, %arg1 : i32, i32, i32, i32
  }
}

module attributes {stable_mosaic.version = 11 : i64} {
  func.func @_conv2_kernel(%arg0: i32, %arg1: i32, %arg2: memref<1x10x10x128xf32, #tpu.memory_space<vmem>>, %arg3: memref<3x3x128x128xf32, #tpu.memory_space<vmem>>, %arg4: memref<1x8x8x128xf32, #tpu.memory_space<vmem>>, %arg5: memref<1x8x8x128xf32, #tpu.memory_space<vmem>>) attributes {dimension_semantics = [#tpu.dimension_semantics<parallel>, #tpu.dimension_semantics<parallel>], iteration_bounds = array<i64: 2, 1>, scalar_prefetch = 0 : i64, scratch_operands = 0 : i64, tpu.core_type = #tpu.core_type<tc>, window_params = [{transform_indices = @transform_0, window_bounds = array<i64: 1, 10, 10, 128>}, {transform_indices = @transform_1, window_bounds = array<i64: 3, 3, 128, 128>}, {transform_indices = @transform_2, window_bounds = array<i64: 1, 8, 8, 128>}, {transform_indices = @transform_3, window_bounds = array<i64: 1, 8, 8, 128>}]} {
    %c0 = arith.constant 0 : index
    %c0_0 = arith.constant 0 : index
    %c0_1 = arith.constant 0 : index
    %c0_2 = arith.constant 0 : index
    %0 = vector.load %arg2[%c0, %c0_0, %c0_1, %c0_2] : memref<1x10x10x128xf32, #tpu.memory_space<vmem>>, vector<1x10x10x128xf32>
    %cst = arith.constant 0.000000e+00 : f32
    %1 = vector.broadcast %cst : f32 to vector<64x128xf32>
    %2 = vector.extract_strided_slice %0 {offsets = [0, 0, 0, 0], sizes = [1, 8, 8, 128], strides = [1, 1, 1, 1]} : vector<1x10x10x128xf32> to vector<1x8x8x128xf32>
    %3 = vector.shape_cast %2 : vector<1x8x8x128xf32> to vector<8x8x128xf32>
    %4 = vector.shape_cast %3 : vector<8x8x128xf32> to vector<64x128xf32>
    %c0_3 = arith.constant 0 : index
    %c0_4 = arith.constant 0 : index
    %c0_5 = arith.constant 0 : index
    %c0_6 = arith.constant 0 : index
    %5 = vector.load %arg3[%c0_3, %c0_4, %c0_5, %c0_6] : memref<3x3x128x128xf32, #tpu.memory_space<vmem>>, vector<1x1x128x128xf32>
    %6 = vector.shape_cast %5 : vector<1x1x128x128xf32> to vector<128x128xf32>
    %cst_7 = arith.constant dense<0.000000e+00> : vector<64x128xf32>
    %7 = tpu.matmul %4, %6, %cst_7 {dimension_numbers = #tpu.dot_dimension_numbers<[1], [0], [0], [1], [0, 0, 1, 1], [], []>} : vector<64x128xf32>, vector<128x128xf32>, vector<64x128xf32> -> vector<64x128xf32>
    %8 = arith.addf %1, %7 : vector<64x128xf32>
    %9 = vector.extract_strided_slice %0 {offsets = [0, 0, 1, 0], sizes = [1, 8, 8, 128], strides = [1, 1, 1, 1]} : vector<1x10x10x128xf32> to vector<1x8x8x128xf32>
    %10 = vector.shape_cast %9 : vector<1x8x8x128xf32> to vector<8x8x128xf32>
    %11 = vector.shape_cast %10 : vector<8x8x128xf32> to vector<64x128xf32>
    %c0_8 = arith.constant 0 : index
    %c1 = arith.constant 1 : index
    %c0_9 = arith.constant 0 : index
    %c0_10 = arith.constant 0 : index
    %12 = vector.load %arg3[%c0_8, %c1, %c0_9, %c0_10] : memref<3x3x128x128xf32, #tpu.memory_space<vmem>>, vector<1x1x128x128xf32>
    %13 = vector.shape_cast %12 : vector<1x1x128x128xf32> to vector<128x128xf32>
    %cst_11 = arith.constant dense<0.000000e+00> : vector<64x128xf32>
    %14 = tpu.matmul %11, %13, %cst_11 {dimension_numbers = #tpu.dot_dimension_numbers<[1], [0], [0], [1], [0, 0, 1, 1], [], []>} : vector<64x128xf32>, vector<128x128xf32>, vector<64x128xf32> -> vector<64x128xf32>
    %15 = arith.addf %8, %14 : vector<64x128xf32>
    %16 = vector.extract_strided_slice %0 {offsets = [0, 0, 2, 0], sizes = [1, 8, 8, 128], strides = [1, 1, 1, 1]} : vector<1x10x10x128xf32> to vector<1x8x8x128xf32>
    %17 = vector.shape_cast %16 : vector<1x8x8x128xf32> to vector<8x8x128xf32>
    %18 = vector.shape_cast %17 : vector<8x8x128xf32> to vector<64x128xf32>
    %c0_12 = arith.constant 0 : index
    %c2 = arith.constant 2 : index
    %c0_13 = arith.constant 0 : index
    %c0_14 = arith.constant 0 : index
    %19 = vector.load %arg3[%c0_12, %c2, %c0_13, %c0_14] : memref<3x3x128x128xf32, #tpu.memory_space<vmem>>, vector<1x1x128x128xf32>
    %20 = vector.shape_cast %19 : vector<1x1x128x128xf32> to vector<128x128xf32>
    %cst_15 = arith.constant dense<0.000000e+00> : vector<64x128xf32>
    %21 = tpu.matmul %18, %20, %cst_15 {dimension_numbers = #tpu.dot_dimension_numbers<[1], [0], [0], [1], [0, 0, 1, 1], [], []>} : vector<64x128xf32>, vector<128x128xf32>, vector<64x128xf32> -> vector<64x128xf32>
    %22 = arith.addf %15, %21 : vector<64x128xf32>
    %23 = vector.extract_strided_slice %0 {offsets = [0, 1, 0, 0], sizes = [1, 8, 8, 128], strides = [1, 1, 1, 1]} : vector<1x10x10x128xf32> to vector<1x8x8x128xf32>
    %24 = vector.shape_cast %23 : vector<1x8x8x128xf32> to vector<8x8x128xf32>
    %25 = vector.shape_cast %24 : vector<8x8x128xf32> to vector<64x128xf32>
    %c1_16 = arith.constant 1 : index
    %c0_17 = arith.constant 0 : index
    %c0_18 = arith.constant 0 : index
    %c0_19 = arith.constant 0 : index
    %26 = vector.load %arg3[%c1_16, %c0_17, %c0_18, %c0_19] : memref<3x3x128x128xf32, #tpu.memory_space<vmem>>, vector<1x1x128x128xf32>
    %27 = vector.shape_cast %26 : vector<1x1x128x128xf32> to vector<128x128xf32>
    %cst_20 = arith.constant dense<0.000000e+00> : vector<64x128xf32>
    %28 = tpu.matmul %25, %27, %cst_20 {dimension_numbers = #tpu.dot_dimension_numbers<[1], [0], [0], [1], [0, 0, 1, 1], [], []>} : vector<64x128xf32>, vector<128x128xf32>, vector<64x128xf32> -> vector<64x128xf32>
    %29 = arith.addf %22, %28 : vector<64x128xf32>
    %30 = vector.extract_strided_slice %0 {offsets = [0, 1, 1, 0], sizes = [1, 8, 8, 128], strides = [1, 1, 1, 1]} : vector<1x10x10x128xf32> to vector<1x8x8x128xf32>
    %31 = vector.shape_cast %30 : vector<1x8x8x128xf32> to vector<8x8x128xf32>
    %32 = vector.shape_cast %31 : vector<8x8x128xf32> to vector<64x128xf32>
    %c1_21 = arith.constant 1 : index
    %c1_22 = arith.constant 1 : index
    %c0_23 = arith.constant 0 : index
    %c0_24 = arith.constant 0 : index
    %33 = vector.load %arg3[%c1_21, %c1_22, %c0_23, %c0_24] : memref<3x3x128x128xf32, #tpu.memory_space<vmem>>, vector<1x1x128x128xf32>
    %34 = vector.shape_cast %33 : vector<1x1x128x128xf32> to vector<128x128xf32>
    %cst_25 = arith.constant dense<0.000000e+00> : vector<64x128xf32>
    %35 = tpu.matmul %32, %34, %cst_25 {dimension_numbers = #tpu.dot_dimension_numbers<[1], [0], [0], [1], [0, 0, 1, 1], [], []>} : vector<64x128xf32>, vector<128x128xf32>, vector<64x128xf32> -> vector<64x128xf32>
    %36 = arith.addf %29, %35 : vector<64x128xf32>
    %37 = vector.extract_strided_slice %0 {offsets = [0, 1, 2, 0], sizes = [1, 8, 8, 128], strides = [1, 1, 1, 1]} : vector<1x10x10x128xf32> to vector<1x8x8x128xf32>
    %38 = vector.shape_cast %37 : vector<1x8x8x128xf32> to vector<8x8x128xf32>
    %39 = vector.shape_cast %38 : vector<8x8x128xf32> to vector<64x128xf32>
    %c1_26 = arith.constant 1 : index
    %c2_27 = arith.constant 2 : index
    %c0_28 = arith.constant 0 : index
    %c0_29 = arith.constant 0 : index
    %40 = vector.load %arg3[%c1_26, %c2_27, %c0_28, %c0_29] : memref<3x3x128x128xf32, #tpu.memory_space<vmem>>, vector<1x1x128x128xf32>
    %41 = vector.shape_cast %40 : vector<1x1x128x128xf32> to vector<128x128xf32>
    %cst_30 = arith.constant dense<0.000000e+00> : vector<64x128xf32>
    %42 = tpu.matmul %39, %41, %cst_30 {dimension_numbers = #tpu.dot_dimension_numbers<[1], [0], [0], [1], [0, 0, 1, 1], [], []>} : vector<64x128xf32>, vector<128x128xf32>, vector<64x128xf32> -> vector<64x128xf32>
    %43 = arith.addf %36, %42 : vector<64x128xf32>
    %44 = vector.extract_strided_slice %0 {offsets = [0, 2, 0, 0], sizes = [1, 8, 8, 128], strides = [1, 1, 1, 1]} : vector<1x10x10x128xf32> to vector<1x8x8x128xf32>
    %45 = vector.shape_cast %44 : vector<1x8x8x128xf32> to vector<8x8x128xf32>
    %46 = vector.shape_cast %45 : vector<8x8x128xf32> to vector<64x128xf32>
    %c2_31 = arith.constant 2 : index
    %c0_32 = arith.constant 0 : index
    %c0_33 = arith.constant 0 : index
    %c0_34 = arith.constant 0 : index
    %47 = vector.load %arg3[%c2_31, %c0_32, %c0_33, %c0_34] : memref<3x3x128x128xf32, #tpu.memory_space<vmem>>, vector<1x1x128x128xf32>
    %48 = vector.shape_cast %47 : vector<1x1x128x128xf32> to vector<128x128xf32>
    %cst_35 = arith.constant dense<0.000000e+00> : vector<64x128xf32>
    %49 = tpu.matmul %46, %48, %cst_35 {dimension_numbers = #tpu.dot_dimension_numbers<[1], [0], [0], [1], [0, 0, 1, 1], [], []>} : vector<64x128xf32>, vector<128x128xf32>, vector<64x128xf32> -> vector<64x128xf32>
    %50 = arith.addf %43, %49 : vector<64x128xf32>
    %51 = vector.extract_strided_slice %0 {offsets = [0, 2, 1, 0], sizes = [1, 8, 8, 128], strides = [1, 1, 1, 1]} : vector<1x10x10x128xf32> to vector<1x8x8x128xf32>
    %52 = vector.shape_cast %51 : vector<1x8x8x128xf32> to vector<8x8x128xf32>
    %53 = vector.shape_cast %52 : vector<8x8x128xf32> to vector<64x128xf32>
    %c2_36 = arith.constant 2 : index
    %c1_37 = arith.constant 1 : index
    %c0_38 = arith.constant 0 : index
    %c0_39 = arith.constant 0 : index
    %54 = vector.load %arg3[%c2_36, %c1_37, %c0_38, %c0_39] : memref<3x3x128x128xf32, #tpu.memory_space<vmem>>, vector<1x1x128x128xf32>
    %55 = vector.shape_cast %54 : vector<1x1x128x128xf32> to vector<128x128xf32>
    %cst_40 = arith.constant dense<0.000000e+00> : vector<64x128xf32>
    %56 = tpu.matmul %53, %55, %cst_40 {dimension_numbers = #tpu.dot_dimension_numbers<[1], [0], [0], [1], [0, 0, 1, 1], [], []>} : vector<64x128xf32>, vector<128x128xf32>, vector<64x128xf32> -> vector<64x128xf32>
    %57 = arith.addf %50, %56 : vector<64x128xf32>
    %58 = vector.extract_strided_slice %0 {offsets = [0, 2, 2, 0], sizes = [1, 8, 8, 128], strides = [1, 1, 1, 1]} : vector<1x10x10x128xf32> to vector<1x8x8x128xf32>
    %59 = vector.shape_cast %58 : vector<1x8x8x128xf32> to vector<8x8x128xf32>
    %60 = vector.shape_cast %59 : vector<8x8x128xf32> to vector<64x128xf32>
    %c2_41 = arith.constant 2 : index
    %c2_42 = arith.constant 2 : index
    %c0_43 = arith.constant 0 : index
    %c0_44 = arith.constant 0 : index
    %61 = vector.load %arg3[%c2_41, %c2_42, %c0_43, %c0_44] : memref<3x3x128x128xf32, #tpu.memory_space<vmem>>, vector<1x1x128x128xf32>
    %62 = vector.shape_cast %61 : vector<1x1x128x128xf32> to vector<128x128xf32>
    %cst_45 = arith.constant dense<0.000000e+00> : vector<64x128xf32>
    %63 = tpu.matmul %60, %62, %cst_45 {dimension_numbers = #tpu.dot_dimension_numbers<[1], [0], [0], [1], [0, 0, 1, 1], [], []>} : vector<64x128xf32>, vector<128x128xf32>, vector<64x128xf32> -> vector<64x128xf32>
    %64 = arith.addf %57, %63 : vector<64x128xf32>
    %c0_46 = arith.constant 0 : index
    %c0_47 = arith.constant 0 : index
    %c0_48 = arith.constant 0 : index
    %c0_49 = arith.constant 0 : index
    %65 = vector.load %arg4[%c0_46, %c0_47, %c0_48, %c0_49] : memref<1x8x8x128xf32, #tpu.memory_space<vmem>>, vector<1x8x8x128xf32>
    %66 = vector.shape_cast %65 : vector<1x8x8x128xf32> to vector<64x128xf32>
    %67 = arith.addf %64, %66 : vector<64x128xf32>
    %68 = vector.shape_cast %67 : vector<64x128xf32> to vector<1x8x8x128xf32>
    %c0_50 = arith.constant 0 : index
    %c0_51 = arith.constant 0 : index
    %c0_52 = arith.constant 0 : index
    %c0_53 = arith.constant 0 : index
    %69 = vector.load %arg5[%c0_50, %c0_51, %c0_52, %c0_53] : memref<1x8x8x128xf32, #tpu.memory_space<vmem>>, vector<1x8x8x128xf32>
    tpu.vector_store %arg5[%c0_50, %c0_51, %c0_52, %c0_53], %68 {strides = array<i32>} : memref<1x8x8x128xf32, #tpu.memory_space<vmem>>, vector<1x8x8x128xf32>,
    return
  }
  func.func @transform_0(%arg0: i32, %arg1: i32) -> (i32, i32, i32, i32) {
    %c0_i32 = arith.constant 0 : i32
    %c0_i32_0 = arith.constant 0 : i32
    %c0_i32_1 = arith.constant 0 : i32
    %c0_i32_2 = arith.constant 0 : i32
    return %arg0, %c0_i32, %c0_i32_0, %c0_i32_1 : i32, i32, i32, i32
  }
  func.func @transform_1(%arg0: i32, %arg1: i32) -> (i32, i32, i32, i32) {
    %c0_i32 = arith.constant 0 : i32
    %c0_i32_0 = arith.constant 0 : i32
    %c0_i32_1 = arith.constant 0 : i32
    %c0_i32_2 = arith.constant 0 : i32
    return %c0_i32, %c0_i32_0, %c0_i32_1, %arg1 : i32, i32, i32, i32
  }
  func.func @transform_2(%arg0: i32, %arg1: i32) -> (i32, i32, i32, i32) {
    %c0_i32 = arith.constant 0 : i32
    %c0_i32_0 = arith.constant 0 : i32
    %c0_i32_1 = arith.constant 0 : i32
    return %arg0, %c0_i32, %c0_i32_0, %arg1 : i32, i32, i32, i32
  }
  func.func @transform_3(%arg0: i32, %arg1: i32) -> (i32, i32, i32, i32) {
    %c0_i32 = arith.constant 0 : i32
    %c0_i32_0 = arith.constant 0 : i32
    %c0_i32_1 = arith.constant 0 : i32
    return %arg0, %c0_i32, %c0_i32_0, %arg1 : i32, i32, i32, i32
  }
}

</mosaic_0001>

<bundles_post_ra>
// kernel: a_call__.4
= control target key start
LH: loop header
LB: loop body
LE: loop exit
PB: predicated region body
PF: predicated region fallthrough
CT: control target
= control target key end

     0   :  { %s3298_s27 = smov 0   ;;  %s3300_s28 = smov 0   ;;  %s4554_s0 = inlined_call_operand.vmem [shape: f32[8,9,9,128], index: 0, kind: input, shape index: {}]   ;;  %s4555_s1 = inlined_call_operand.vmem [shape: f32[1,128], index: 1, kind: input, shape index: {}]   ;;  %s4556_s2 = inlined_call_operand.vmem [shape: f32[1,128], index: 2, kind: input, shape index: {}]   ;;  %s4557_s3 = inlined_call_operand.vmem [shape: f32[3,3,128,128], index: 3, kind: input, shape index: {}]   ;;  %s4558_s4 = inlined_call_operand.vmem [shape: f32[1,128], index: 4, kind: input, shape index: {}]   ;;  %s4559_s5 = inlined_call_operand.vmem [shape: f32[1,128], index: 5, kind: input, shape index: {}]   ;;  %s4560_s6 = inlined_call_operand.vmem [shape: f32[128,128], index: 6, kind: input, shape index: {}]   ;;  %s4561_s7 = inlined_call_operand.vmem [shape: f32[2,8,8,128], index: 7, kind: output, shape index: {0}]   ;;  %s4562_s8 = inlined_call_operand.vmem [shape: f32[2,8,8,128], index: 8, kind: output, shape index: {1}]  }
   0x1   :  { %s3302_s29 = smov 0  }
   0x2 LB: > { %s31_s30 = sadd.s32 1, %s3246_s28  ;;  %p2325_p0 = scmp.ge.s32.totalorder %s3250_s29, 1  ;;  %s3250_s29 = sphi %s3302_s29, %s19_s29   ;;  %s3246_s28 = sphi %s3300_s28, %s4628_s28   ;;  %s3242_s27 = sphi %s3298_s27, %s4627_s27  }
   0x3   : > { %p33_p1 = scmp.ge.s32.totalorder %s31_s30, 2  ;;  %p317_p2 = scmp.lt.s32.totalorder %s3250_s29, 3 }
   0x5   : > { %s4630_s30 = smov (%p33_p1, %s31_s30), 0  ;;  %p318_p3 = pnand %p2325_p0, %p317_p2 }
   0x7   : > { %321 = sbr.rel (%p318_p3) target bundleno = 418 (0x1a2), region = 48 }
   0xc   : > { %v2349_v0 = vld [vmem:[%s4557_s3 + $0xf8] sm:$0xff]  ;;  %v2348_v2 = vld [vmem:[%s4557_s3 + $0xf0] sm:$0xff]  ;;  %s2326_s17 = sshll.u32 %s3242_s27, 2  ;;  %v2347_v4 = vld [vmem:[%s4557_s3 + $0xe8] sm:$0xff]  ;;  %v632_v16 = vlaneseq  ;;  %v3252_v48 = vmov 0.0   ;;  %vm966_vm8 = vcmask 1046528  }
   0xd   : > { %v722_v1 = vld [vmem:[%s4557_s3 + $0x78] sm:$0xff]  ;;  %2762 = vmatprep.subr.mxu0 %v2349_v0  ;;  %v721_v3 = vld [vmem:[%s4557_s3 + $0x70] sm:$0xff]  ;;  %v720_v5 = vld [vmem:[%s4557_s3 + $0x68] sm:$0xff]  ;;  %p378_p4 = scmp.lt.s32.totalorder %s2326_s17, 7  ;;  %2794 = vmatprep.mubr.f32.mxu0 %v3252_v48  ;;  %p398_p5 = scmp.lt.s32.totalorder %s3242_s27, 1 }
   0xe   : > { %2806 = vmatprep.subr.mxu1 %v722_v1  ;;  %2763 = vmatpush3.msra.mxu0 %v2349_v0  ;;  %v2346_v6 = vld [vmem:[%s4557_s3 + $0xe0] sm:$0xff]  ;;  %v2345_v8 = vld [vmem:[%s4557_s3 + $0xd8] sm:$0xff]  ;;  %v2344_v10 = vld [vmem:[%s4557_s3 + $0xd0] sm:$0xff]  ;;  %v3384_v21 = vshrl.u32 %v632_v16, 7 }
   0xf   : > { %2807 = vmatpush3.msra.mxu1 %v722_v1  ;;  %2764 = vmatprep.subr.mxu0 %v2348_v2  ;;  %v719_v7 = vld [vmem:[%s4557_s3 + $0x60] sm:$0xff]  ;;  %v718_v9 = vld [vmem:[%s4557_s3 + $0x58] sm:$0xff]  ;;  %v717_v11 = vld [vmem:[%s4557_s3 + $0x50] sm:$0xff]  ;;  %s4632_s17 = smov (!%p378_p4, %s2326_s17), 7  ;;  %s4634_s27 = smov (!%p398_p5, %s3242_s27), 1 }
  0x10   : > { %2808 = vmatprep.subr.mxu1 %v721_v3  ;;  %2765 = vmatpush3.msra.mxu0 %v2348_v2  ;;  %v2343_v12 = vld [vmem:[%s4557_s3 + $0xc8] sm:$0xff]  ;;  %v2342_v14 = vld [vmem:[%s4557_s3 + $0xc0] sm:$0xff]  ;;  %s3202_s25 = smul.u32 144, %s4632_s17  ;;  %v2341_v17 = vld [vmem:[%s4557_s3 + $0xb8] sm:$0xff]  ;;  %v635_v29 = vmul.u32 2, %v3384_v21  ;;  %v3491_v62 = vadd.s32 8, %v3384_v21 }
  0x11   : > { %2809 = vmatpush3.msra.mxu1 %v721_v3  ;;  %2766 = vmatprep.subr.mxu0 %v2347_v4  ;;  %v716_v13 = vld [vmem:[%s4557_s3 + $0x48] sm:$0xff]  ;;  %v715_v15 = vld [vmem:[%s4557_s3 + $0x40] sm:$0xff]  ;;  %v714_v18 = vld [vmem:[%s4557_s3 + $0x38] sm:$0xff] }
  0x12   : > { %2810 = vmatprep.subr.mxu1 %v720_v5  ;;  %2767 = vmatpush3.msra.mxu0 %v2347_v4  ;;  %v2340_v19 = vld [vmem:[%s4557_s3 + $0xb0] sm:$0xff]  ;;  %s3382_s18 = scalar_lea.vmem %s4554_s0, %s3202_s25  ;;  %v2339_v22 = vld [vmem:[%s4557_s3 + $0xa8] sm:$0xff]  ;;  %v3396_v25 = vld [vmem:[%s4555_s1] ss:$0 sm:$0xff]  ;;  %v667_v37 = vadd.s32 1, %v635_v29  ;;  %vm637_vm0 = vcmp.ge.s32.totalorder %v635_v29, 1 }
  0x13   : > { %2811 = vmatpush3.msra.mxu1 %v720_v5  ;;  %2768 = vmatprep.subr.mxu0 %v2346_v6  ;;  %v713_v20 = vld [vmem:[%s4557_s3 + $0x30] sm:$0xff]  ;;  %v712_v23 = vld [vmem:[%s4557_s3 + $0x28] sm:$0xff]  ;;  %v433_v24 = vld [vmem:[%s3382_s18 + $0xa0] sm:$0xff]  ;;  %vm643_vm1 = vcmp.le.s32.totalorder %v635_v29, 16 }
  0x14   : > { %2812 = vmatprep.subr.mxu1 %v719_v7  ;;  %2769 = vmatpush3.msra.mxu0 %v2346_v6  ;;  %v416_v26 = vld [vmem:[%s3382_s18 + $0x10] sm:$0xff]  ;;  %v2338_v27 = vld [vmem:[%s4557_s3 + $0xa0] sm:$0xff]  ;;  %v2337_v30 = vld [vmem:[%s4557_s3 + $0x98] sm:$0xff]  ;;  %v491_v32 = vmul.f32 %v3396_v25, %v433_v24  ;;  %vm668_vm2 = vcmp.ge.s32.totalorder %v667_v37, 1  ;;  %vm671_vm3 = vcmp.le.s32.totalorder %v667_v37, 16 }
  0x15   : > { %2813 = vmatpush3.msra.mxu1 %v719_v7  ;;  %2770 = vmatprep.subr.mxu0 %v2345_v8  ;;  %v711_v28 = vld [vmem:[%s4557_s3 + $0x20] sm:$0xff]  ;;  %v710_v31 = vld [vmem:[%s4557_s3 + $0x18] sm:$0xff]  ;;  %v474_v33 = vmul.f32 %v3396_v25, %v416_v26  ;;  %v2336_v35 = vld [vmem:[%s4557_s3 + $0x90] sm:$0xff] }
  0x16   : > { %2814 = vmatprep.subr.mxu1 %v718_v9  ;;  %2771 = vmatpush3.msra.mxu0 %v2345_v8  ;;  %v3417_v34 = vld [vmem:[%s4556_s2] ss:$0 sm:$0xff]  ;;  %v709_v36 = vld [vmem:[%s4557_s3 + $0x10] sm:$0xff]  ;;  %v2335_v38 = vld [vmem:[%s4557_s3 + $0x88] sm:$0xff] }
  0x17   : > { %2815 = vmatpush3.msra.mxu1 %v718_v9  ;;  %2772 = vmatprep.subr.mxu0 %v2344_v10  ;;  %v708_v39 = vld [vmem:[%s4557_s3 + $0x8] sm:$0xff]  ;;  %v3432_v40 = vadd.f32 %v3417_v34, %v491_v32  ;;  %v532_v41 = vadd.f32 %v3417_v34, %v474_v33  ;;  %v2334_v42 = vld [vmem:[%s4557_s3 + $0x80] sm:$0xff]  ;;  %vm3442_vm4 = vmand %vm637_vm0, %vm643_vm1 }
  0x18   : > { %2816 = vmatprep.subr.mxu1 %v717_v11  ;;  %2773 = vmatpush3.msra.mxu0 %v2344_v10  ;;  %v707_v43 = vld [vmem:[%s4557_s3] sm:$0xff]  ;;  %vm3448_vm5 = vmand %vm668_vm2, %vm671_vm3  ;;  %v2379_v49 = vld [vmem:[%s4557_s3 + $0x178] sm:$0xff] }
  0x19   : > { %2817 = vmatpush3.msra.mxu1 %v717_v11  ;;  %2774 = vmatprep.subr.mxu0 %v2343_v12  ;;  %v4569_v44 = vmax.f32 %v3432_v40, 0.0  ;;  %v3446_v46 = vmax.f32 %v532_v41, 0.0  ;;  %v2395_v50 = vld [vmem:[%s4557_s3 + $0x1f8] sm:$0xff]  ;;  %v2378_v51 = vld [vmem:[%s4557_s3 + $0x170] sm:$0xff]  ;;  %v2377_v53 = vld [vmem:[%s4557_s3 + $0x168] sm:$0xff] }
  0x1a   : > { %2818 = vmatprep.subr.mxu1 %v716_v13  ;;  %2775 = vmatpush3.msra.mxu0 %v2343_v12  ;;  %v2394_v52 = vld [vmem:[%s4557_s3 + $0x1f0] sm:$0xff]  ;;  %v2393_v54 = vld [vmem:[%s4557_s3 + $0x1e8] sm:$0xff]  ;;  %v2376_v56 = vld [vmem:[%s4557_s3 + $0x160] sm:$0xff]  ;;  %v636_v12 = vmul.u32 2, %v3491_v62 }
  0x1b   : > { %2819 = vmatpush3.msra.mxu1 %v716_v13  ;;  %2776 = vmatprep.subr.mxu0 %v2342_v14  ;;  %v434_v55 = vld [vmem:[%s3382_s18 + $0xb0] sm:$0xff]  ;;  %v418_v57 = vld [vmem:[%s3382_s18 + $0x20] sm:$0xff]  ;;  %v2375_v63 = vld [vmem:[%s4557_s3 + $0x158] sm:$0xff] }
  0x1c   : > { %2820 = vmatprep.subr.mxu1 %v715_v15  ;;  %2777 = vmatpush3.msra.mxu0 %v2342_v14  ;;  %v2392_v58 = vld [vmem:[%s4557_s3 + $0x1e0] sm:$0xff]  ;;  %v420_v60 = vld [vmem:[%s3382_s18 + $0x30] sm:$0xff]  ;;  %v492_v61 = vmul.f32 %v3396_v25, %v434_v55  ;;  %v2391_v0 = vld [vmem:[%s4557_s3 + $0x1d8] sm:$0xff]  ;;  %v476_v1 = vmul.f32 %v3396_v25, %v418_v57  ;;  %vm3554_vm6 = vcmp.ge.s32.totalorder %v636_v12, 1  ;;  %vm3608_vm7 = vcmp.le.s32.totalorder %v636_v12, 16 }
  0x1d   : > { %2821 = vmatpush3.msra.mxu1 %v715_v15  ;;  %2778 = vmatprep.subr.mxu0 %v2341_v17  ;;  %v435_v59 = vld [vmem:[%s3382_s18 + $0xc0] sm:$0xff]  ;;  %v478_v3 = vmul.f32 %v3396_v25, %v420_v60  ;;  %v436_v4 = vld [vmem:[%s3382_s18 + $0xd0] sm:$0xff]  ;;  %v2373_v7 = vld [vmem:[%s4557_s3 + $0x148] sm:$0xff] }
  0x1e   : > { %2822 = vmatprep.subr.mxu1 %v714_v18  ;;  %2779 = vmatpush3.msra.mxu0 %v2341_v17  ;;  %v493_v2 = vmul.f32 %v3396_v25, %v435_v59  ;;  %v422_v5 = vld [vmem:[%s3382_s18 + $0x40] sm:$0xff]  ;;  %v2374_v6 = vld [vmem:[%s4557_s3 + $0x150] sm:$0xff]  ;;  %v3514_v9 = vadd.f32 %v3417_v34, %v492_v61  ;;  %v2389_v14 = vld [vmem:[%s4557_s3 + $0x1c8] sm:$0xff]  ;;  %v534_v15 = vadd.f32 %v3417_v34, %v476_v1 }
  0x1f   : > { %2823 = vmatpush3.msra.mxu1 %v714_v18  ;;  %2780 = vmatprep.subr.mxu0 %v2340_v19  ;;  %v2390_v8 = vld [vmem:[%s4557_s3 + $0x1d0] sm:$0xff]  ;;  %v437_v10 = vld [vmem:[%s3382_s18 + $0xe0] sm:$0xff]  ;;  %v494_v16 = vmul.f32 %v3396_v25, %v436_v4  ;;  %v480_v17 = vmul.f32 %v3396_v25, %v422_v5  ;;  %v536_v21 = vadd.f32 %v3417_v34, %v478_v3  ;;  %v417_v29 = vld [vmem:[%s3382_s18 + $0x18] sm:$0x1] }
  0x20   : > { %2824 = vmatprep.subr.mxu1 %v713_v20  ;;  %2781 = vmatpush3.msra.mxu0 %v2340_v19  ;;  %v424_v11 = vld [vmem:[%s3382_s18 + $0x50] sm:$0xff]  ;;  %v458_v19 = vld [vmem:[%s3382_s18 + $0x1c0] sm:$0xff]  ;;  %v495_v26 = vmul.f32 %v3396_v25, %v437_v10  ;;  %v4568_v32 = vmax.f32 %v3514_v9, 0.0  ;;  %v444_v55 = vld [vmem:[%s3382_s18 + $0x138] sm:$0x1] }
  0x21   : > { %2825 = vmatpush3.msra.mxu1 %v713_v20  ;;  %2782 = vmatprep.subr.mxu0 %v2339_v22  ;;  %v457_v13 = vld [vmem:[%s3382_s18 + $0x1b0] sm:$0xff]  ;;  %v3529_v20 = vadd.f32 %v3417_v34, %v493_v2  ;;  %v2388_v24 = vld [vmem:[%s4557_s3 + $0x1c0] sm:$0xff]  ;;  %v516_v37 = vmul.f32 %v3396_v25, %v458_v19  ;;  %v3588_v59 = vmax.f32 %v536_v21, 0.0  ;;  %v446_v1 = vld [vmem:[%s3382_s18 + $0x148] sm:$0x1] }
  0x22   : > { %2826 = vmatprep.subr.mxu1 %v712_v23  ;;  %2783 = vmatpush3.msra.mxu0 %v2339_v22  ;;  %v438_v18 = vld [vmem:[%s3382_s18 + $0xf0] sm:$0xff]  ;;  %v442_v22 = vld [vmem:[%s3382_s18 + $0x128] sm:$0x1]  ;;  %v460_v57 = vld [vmem:[%s3382_s18 + $0x1e0] sm:$0xff]  ;;  %v3591_v60 = vadd.f32 %v3417_v34, %v495_v26 }
  0x23   : > { %2827 = vmatpush3.msra.mxu1 %v712_v23  ;;  %2784 = vmatprep.subr.mxu0 %v2338_v27  ;;  %v2372_v23 = vld [vmem:[%s4557_s3 + $0x140] sm:$0xff]  ;;  %v496_v33 = vmul.f32 %v3396_v25, %v438_v18  ;;  %v2370_v41 = vld [vmem:[%s4557_s3 + $0x130] sm:$0xff]  ;;  %v518_v62 = vmul.f32 %v3396_v25, %v460_v57  ;;  %v448_v10 = vld [vmem:[%s3382_s18 + $0x158] sm:$0x1] }
  0x24   : > { %2828 = vmatprep.subr.mxu1 %v711_v28  ;;  %2785 = vmatpush3.msra.mxu0 %v2338_v27  ;;  %v482_v27 = vmul.f32 %v3396_v25, %v424_v11  ;;  %v2369_v11 = vld [vmem:[%s4557_s3 + $0x128] sm:$0xff]  ;;  %v2386_v12 = vld [vmem:[%s4557_s3 + $0x1b0] sm:$0xff]  ;;  %v441_v19 = vld [vmem:[%s3382_s18 + $0x120] sm:$0xff]  ;;  %v4564_v26 = vmax.f32 %v3591_v60, 0.0 }
  0x25   : > { %2829 = vmatpush3.msra.mxu1 %v711_v28  ;;  %2786 = vmatprep.subr.mxu0 %v2337_v30  ;;  %v3542_v28 = vrot.slane %v3252_v48, 1  ;;  %v3602_v2 = vadd.f32 %v3417_v34, %v496_v33  ;;  %v450_v33 = vld [vmem:[%s3382_s18 + $0x168] sm:$0x1]  ;;  %vm3697_vm9 = vmand %vm3554_vm6, %vm3608_vm7  ;;  %v2499_v45 = vld [vmem:[%s4557_s3 + $0x438] sm:$0xff] }
  0x26   : > { %2830 = vmatprep.subr.mxu1 %v710_v31  ;;  %2787 = vmatpush3.msra.mxu0 %v2337_v30  ;;  %v515_v30 = vmul.f32 %v3396_v25, %v457_v13  ;;  %v540_v61 = vadd.f32 %v3417_v34, %v482_v27 }
  0x27   : > { %2831 = vmatpush3.msra.mxu1 %v710_v31  ;;  %2788 = vmatprep.subr.mxu0 %v2336_v35  ;;  %v2371_v31 = vld [vmem:[%s4557_s3 + $0x138] sm:$0xff]  ;;  %v4563_v5 = vmax.f32 %v3602_v2, 0.0 }
  0x28   : > { %2832 = vmatprep.subr.mxu1 %v709_v36  ;;  %2789 = vmatpush3.msra.mxu0 %v2336_v35  ;;  %v426_v35 = vld [vmem:[%s3382_s18 + $0x60] sm:$0xff] }
  0x29   : > { %2833 = vmatpush3.msra.mxu1 %v709_v36  ;;  %2790 = vmatprep.subr.mxu0 %v2335_v38  ;;  %v2384_v36 = vld [vmem:[%s4557_s3 + $0x1a0] sm:$0xff] }
  0x2a   : > { %2834 = vmatprep.subr.mxu1 %v708_v39  ;;  %2791 = vmatpush3.msra.mxu0 %v2335_v38  ;;  %v500_v38 = vmul.f32 %v3396_v25, %v442_v22 }
  0x2b   : > { %2835 = vmatpush3.msra.mxu1 %v708_v39  ;;  %2792 = vmatprep.subr.mxu0 %v2334_v42  ;;  %v3560_v39 = vmax.f32 %v534_v15, 0.0 }
  0x2c   : > { %2836 = vmatprep.subr.mxu1 %v707_v43  ;;  %2793 = vmatpush3.msra.mxu0 %v2334_v42  ;;  %v3566_v42 = vadd.f32 %v3417_v34, %v494_v16  ;;  %v421_v16 = vld [vmem:[%s3382_s18 + $0x38] sm:$0x1] }
  0x2d   : > { %2837 = vmatpush3.msra.mxu1 %v707_v43  ;;  %2838 = vmatprep.mubr.f32.mxu1 %v3252_v48  ;;  %v538_v43 = vadd.f32 %v3417_v34, %v480_v17  ;;  %v439_v48 = vld [vmem:[%s3382_s18 + $0x100] sm:$0xff]  ;;  %v504_v17 = vmul.f32 %v3396_v25, %v446_v1  ;;  %v423_v1 = vld [vmem:[%s3382_s18 + $0x48] sm:$0x1] }
  0x2e   : > { %2795 = vmatmul.mubr.msk.f32.vlgmr.msra.gmra.mxu0 %vm3448_vm5, %v4569_v44  ;;  %2839 = vmatmul.mubr.msk.f32.vlgmr.msra.gmra.mxu1 %vm3442_vm4, %v3446_v46  ;;  %v497_v3 = vmul.f32 %v3396_v25, %v439_v48  ;;  %v4566_v13 = vmax.f32 %v3566_v42, 0.0  ;;  %v443_v48 = vld [vmem:[%s3382_s18 + $0x130] sm:$0xff] }
  0x2f   : > { %2850 = vmatprep.subr.mxu0 %v2379_v49  ;;  %2894 = vmatprep.subr.mxu1 %v2395_v50  ;;  %v3642_v18 = vmax.f32 %v538_v43, 0.0 }
  0x30   : > { %2851 = vmatpush3.msra.mxu0 %v2379_v49  ;;  %2895 = vmatpush3.msra.mxu1 %v2395_v50  ;;  %v428_v49 = vld [vmem:[%s3382_s18 + $0x70] sm:$0xff]  ;;  %v3572_v50 = vadd.f32 %v3417_v34, %v515_v30  ;;  %v506_v30 = vmul.f32 %v3396_v25, %v448_v10  ;;  %v445_v10 = vld [vmem:[%s3382_s18 + $0x140] sm:$0xff] }
  0x31   : > { %2852 = vmatprep.subr.mxu0 %v2378_v51  ;;  %2896 = vmatprep.subr.mxu1 %v2394_v52  ;;  %v486_v4 = vmul.f32 %v3396_v25, %v428_v49  ;;  %v479_v49 = vmul.f32 %v3396_v25, %v421_v16 }
  0x32   : > { %2853 = vmatpush3.msra.mxu0 %v2378_v51  ;;  %2897 = vmatpush3.msra.mxu1 %v2394_v52  ;;  %v4567_v51 = vmax.f32 %v3529_v20, 0.0  ;;  %v475_v52 = vmul.f32 %v3396_v25, %v417_v29  ;;  %v3658_v29 = vadd.f32 %v3417_v34, %v504_v17  ;;  %v3683_v57 = vadd.f32 %v3417_v34, %v506_v30 }
  0x33   : > { %2854 = vmatprep.subr.mxu0 %v2377_v53  ;;  %2898 = vmatprep.subr.mxu1 %v2393_v54  ;;  %v544_v43 = vadd.f32 %v3417_v34, %v486_v4  ;;  %v508_v4 = vmul.f32 %v3396_v25, %v450_v33 }
  0x34   : > { %2855 = vmatpush3.msra.mxu0 %v2377_v53  ;;  %2899 = vmatpush3.msra.mxu1 %v2393_v54  ;;  %v3577_v53 = vadd.f32 %v3417_v34, %v516_v37  ;;  %v3580_v54 = vadd.f32 %v3417_v34, %v500_v38  ;;  %v2385_v37 = vld [vmem:[%s4557_s3 + $0x1a8] sm:$0xff]  ;;  %v3669_v38 = vmax.f32 %v540_v61, 0.0 }
  0x35   : > { %2856 = vmatprep.subr.mxu0 %v2376_v56  ;;  %2900 = vmatprep.subr.mxu1 %v2392_v58  ;;  %v3738_v17 = vadd.f32 %v3417_v34, %v508_v4 }
  0x36   : > { %2857 = vmatpush3.msra.mxu0 %v2376_v56  ;;  %2901 = vmatpush3.msra.mxu1 %v2392_v58  ;;  %v459_v56 = vld [vmem:[%s3382_s18 + $0x1d0] sm:$0xff]  ;;  %v2387_v58 = vld [vmem:[%s4557_s3 + $0x1b8] sm:$0xff] }
  0x37   : > { %2858 = vmatprep.subr.mxu0 %v2375_v63  ;;  %2902 = vmatprep.subr.mxu1 %v2391_v0 }
  0x38   : > { %2859 = vmatpush3.msra.mxu0 %v2375_v63  ;;  %2903 = vmatpush3.msra.mxu1 %v2391_v0  ;;  %v484_v63 = vmul.f32 %v3396_v25, %v426_v35  ;;  %v419_v0 = vld [vmem:[%s3382_s18 + $0x28] sm:$0x1]  ;;  %v2368_v35 = vld [vmem:[%s4557_s3 + $0x120] sm:$0xff] }
  0x39   : > { %2860 = vmatprep.subr.mxu0 %v2374_v6  ;;  %2904 = vmatprep.subr.mxu1 %v2390_v8  ;;  %v477_v15 = vmul.f32 %v3396_v25, %v419_v0  ;;  %v653_v0 = vsel %vm3442_vm4, %v3560_v39, 0.0 }
  0x3a   : > { %2861 = vmatpush3.msra.mxu0 %v2374_v6  ;;  %2905 = vmatpush3.msra.mxu1 %v2390_v8  ;;  %v651_v6 = vsel %vm3442_vm4, %v3446_v46, 0.0  ;;  %v517_v8 = vmul.f32 %v3396_v25, %v459_v56  ;;  %v542_v27 = vadd.f32 %v3417_v34, %v484_v63  ;;  %v499_v56 = vmul.f32 %v3396_v25, %v441_v19  ;;  %v463_v19 = vld [vmem:[%s3382_s18 + $0x210] sm:$0xff] }
  0x3b   : > { %2862 = vmatprep.subr.mxu0 %v2373_v7  ;;  %2906 = vmatprep.subr.mxu1 %v2389_v14  ;;  %v3702_v63 = vadd.f32 %v3417_v34, %v477_v15  ;;  %v3732_v15 = vadd.f32 %v3417_v34, %v479_v49  ;;  %v2366_v49 = vld [vmem:[%s4557_s3 + $0x110] sm:$0xff] }
  0x3c   : > { %2863 = vmatpush3.msra.mxu0 %v2373_v7  ;;  %2907 = vmatpush3.msra.mxu1 %v2389_v14  ;;  %v502_v7 = vmul.f32 %v3396_v25, %v444_v55  ;;  %v3630_v14 = vadd.f32 %v3417_v34, %v475_v52  ;;  %v3649_v22 = vadd.f32 %v3417_v34, %v517_v8  ;;  %v2367_v52 = vld [vmem:[%s4557_s3 + $0x118] sm:$0xff]  ;;  %v3715_v8 = vmax.f32 %v542_v27, 0.0 }
  0x3d   : > { %2864 = vmatprep.subr.mxu0 %v2372_v23  ;;  %2908 = vmatprep.subr.mxu1 %v2388_v24  ;;  %v3742_v27 = vmax.f32 %v544_v43, 0.0  ;;  %v586_v43 = vmax.f32 %v3702_v63, 0.0  ;;  %v456_v63 = vld [vmem:[%s3382_s18 + $0x198] sm:$0x1] }
  0x3e   : > { %2865 = vmatpush3.msra.mxu0 %v2372_v23  ;;  %2909 = vmatpush3.msra.mxu1 %v2388_v24  ;;  %v3646_v21 = vadd.f32 %v3417_v34, %v502_v7  ;;  %v3652_v23 = vadd.f32 %v3417_v34, %v518_v62  ;;  %v461_v24 = vld [vmem:[%s3382_s18 + $0x1f0] sm:$0xff]  ;;  %v584_v55 = vmax.f32 %v3630_v14, 0.0  ;;  %v452_v7 = vld [vmem:[%s3382_s18 + $0x178] sm:$0x1]  ;;  %v501_v62 = vmul.f32 %v3396_v25, %v443_v48  ;;  %v454_v48 = vld [vmem:[%s3382_s18 + $0x188] sm:$0x1] }
  0x3f   : > { %2866 = vmatprep.subr.mxu0 %v2371_v31  ;;  %2797 = vmatprep.mubr.msk.f32.mxu0 %vm3448_vm5, %v4568_v32  ;;  %v510_v33 = vmul.f32 %v3396_v25, %v452_v7  ;;  %v588_v7 = vmax.f32 %v3732_v15, 0.0  ;;  %v429_v15 = vld [vmem:[%s3382_s18 + $0x78] sm:$0x1] }
  0x40   : > { %2867 = vmatpush3.msra.mxu0 %v2371_v31  ;;  %2841 = vmatprep.mubr.msk.f32.mxu1 %vm3442_vm4, %v3560_v39  ;;  %v462_v31 = vld [vmem:[%s3382_s18 + $0x200] sm:$0xff]  ;;  %v652_v30 = vsel %vm3697_vm9, %v584_v55, 0.0  ;;  %v503_v55 = vmul.f32 %v3396_v25, %v445_v10  ;;  %v427_v10 = vld [vmem:[%s3382_s18 + $0x68] sm:$0x1] }
  0x41   : > { %2868 = vmatprep.subr.mxu0 %v2370_v41  ;;  %2910 = vmatprep.subr.mxu1 %v2387_v58 }
  0x42   : > { %2798 = vmatmul.mubr.msk.f32.gmra.mxu0 %vm3448_vm5, %v4567_v51  ;;  %2842 = vmatmul.mubr.msk.f32.gmra.mxu1 %vm3442_vm4, %v3588_v59  ;;  %v487_v51 = vmul.f32 %v3396_v25, %v429_v15 }
  0x43   : > { %2869 = vmatpush3.msra.mxu0 %v2370_v41  ;;  %2911 = vmatpush3.msra.mxu1 %v2387_v58  ;;  %v3672_v41 = vadd.f32 %v3417_v34, %v497_v3  ;;  %v519_v58 = vmul.f32 %v3396_v25, %v461_v24  ;;  %v520_v3 = vmul.f32 %v3396_v25, %v462_v31  ;;  %v464_v24 = vld [vmem:[%s3382_s18 + $0x220] sm:$0xff] }
  0x44   : > { %2870 = vmatprep.subr.mxu0 %v2369_v11  ;;  %2912 = vmatprep.subr.mxu1 %v2386_v12  ;;  %v481_v31 = vmul.f32 %v3396_v25, %v423_v1  ;;  %v970_v1 = vrot.slane %v651_v6, 1  ;;  %v522_v4 = vmul.f32 %v3396_v25, %v464_v24  ;;  %v3779_v6 = vadd.f32 %v3417_v34, %v501_v62  ;;  %v2382_v24 = vld [vmem:[%s4557_s3 + $0x190] sm:$0xff] }
  0x45   : > { %4584 = vst [vmem:[#allocation2_spill] sm:$0xff] %v3672_v41  ;;  %2871 = vmatpush3.msra.mxu0 %v2369_v11  ;;  %2913 = vmatpush3.msra.mxu1 %v2386_v12  ;;  %v425_v11 = vld [vmem:[%s3382_s18 + $0x58] sm:$0x1]  ;;  %v3721_v12 = vadd.f32 %v3417_v34, %v519_v58  ;;  %v4565_v14 = vmax.f32 %v3672_v41, 0.0  ;;  %v3735_v16 = vadd.f32 %v3417_v34, %v520_v3  ;;  %v973_v62 = vrot.slane %v653_v0, 1 }
  0x46   : > { %2800 = vmatprep.mubr.msk.f32.mxu0 %vm3448_vm5, %v4566_v13  ;;  %2844 = vmatprep.mubr.msk.f32.mxu1 %vm3442_vm4, %v3642_v18  ;;  %v483_v58 = vmul.f32 %v3396_v25, %v425_v11  ;;  %v3766_v3 = vadd.f32 %v3417_v34, %v510_v33  ;;  %v512_v11 = vmul.f32 %v3396_v25, %v454_v48  ;;  %v654_v0 = vsel %vm3697_vm9, %v586_v43, 0.0  ;;  %v2381_v13 = vld [vmem:[%s4557_s3 + $0x188] sm:$0xff] }
  0x47   : > { %2872 = vmatprep.subr.mxu0 %v2368_v35  ;;  %2914 = vmatprep.subr.mxu1 %v2385_v37  ;;  %v3797_v48 = vadd.f32 %v3417_v34, %v522_v4  ;;  %v514_v4 = vmul.f32 %v3396_v25, %v456_v63  ;;  %v655_v43 = vsel %vm3442_vm4, %v3588_v59, 0.0 }
  0x48   : > { %2801 = vmatmul.mubr.msk.f32.gmra.mxu0 %vm3448_vm5, %v4564_v26  ;;  %2845 = vmatmul.mubr.msk.f32.gmra.mxu1 %vm3442_vm4, %v3669_v38  ;;  %v440_v26 = vld [vmem:[%s3382_s18 + $0x110] sm:$0xff] }
  0x49   : > { %2873 = vmatpush3.msra.mxu0 %v2368_v35  ;;  %2915 = vmatpush3.msra.mxu1 %v2385_v37  ;;  %v2383_v35 = vld [vmem:[%s4557_s3 + $0x198] sm:$0xff]  ;;  %v3756_v37 = vadd.f32 %v3417_v34, %v499_v56  ;;  %v521_v56 = vmul.f32 %v3396_v25, %v463_v19  ;;  %v2365_v19 = vld [vmem:[%s4557_s3 + $0x108] sm:$0xff]  ;;  %v3836_v32 = vadd.f32 %v3417_v34, %v514_v4 }
  0x4a   : > { %2874 = vmatprep.subr.mxu0 %v2367_v52  ;;  %2916 = vmatprep.subr.mxu1 %v2384_v36  ;;  %v498_v44 = vmul.f32 %v3396_v25, %v440_v26 }
  0x4b   : > { %2875 = vmatpush3.msra.mxu0 %v2367_v52  ;;  %2917 = vmatpush3.msra.mxu1 %v2384_v36  ;;  %v971_v52 = vrot.slane %v652_v30, 1  ;;  %v447_v36 = vld [vmem:[%s3382_s18 + $0x150] sm:$0xff]  ;;  %v539_v30 = vadd.f32 %v3417_v34, %v481_v31  ;;  %v3794_v33 = vadd.f32 %v3417_v34, %v521_v56  ;;  %v541_v31 = vadd.f32 %v3417_v34, %v483_v58 }
  0x4c   : > { %2803 = vmatprep.mubr.msk.f32.mxu0 %vm3448_vm5, %v4563_v5  ;;  %2847 = vmatprep.mubr.msk.f32.mxu1 %vm3442_vm4, %v3715_v8  ;;  %v3810_v56 = vadd.f32 %v3417_v34, %v512_v11  ;;  %v430_v5 = vld [vmem:[%s3382_s18 + $0x80] sm:$0xff]  ;;  %v3825_v58 = vadd.f32 %v3417_v34, %v503_v55  ;;  %v505_v63 = vmul.f32 %v3396_v25, %v447_v36  ;;  %v656_v11 = vsel %vm3697_vm9, %v588_v7, 0.0 }
  0x4d   : > { %2876 = vmatprep.subr.mxu0 %v2366_v49  ;;  %2918 = vmatprep.subr.mxu1 %v2383_v35  ;;  %v974_v55 = vrot.slane %v654_v0, 1  ;;  %v590_v36 = vmax.f32 %v539_v30, 0.0  ;;  %v4570_v7 = vmax.f32 %v3756_v37, 0.0  ;;  %v977_v26 = vrot.slane %v656_v11, 1  ;;  %v449_v30 = vld [vmem:[%s3382_s18 + $0x160] sm:$0xff] }
  0x4e   : > { %2804 = vmatmul.mubr.msk.f32.gmra.mxu0 %vm3448_vm5, %v4565_v14  ;;  %2848 = vmatmul.mubr.msk.f32.gmra.mxu1 %vm3442_vm4, %v3742_v27  ;;  %v2364_v14 = vld [vmem:[%s4557_s3 + $0x100] sm:$0xff]  ;;  %v3855_v4 = vadd.f32 %v3417_v34, %v498_v44  ;;  %v2418_v44 = vld [vmem:[%s4557_s3 + $0x270] sm:$0xff] }
  0x4f   : > { %2877 = vmatpush3.msra.mxu0 %v2366_v49  ;;  %2919 = vmatpush3.msra.mxu1 %v2383_v35  ;;  %v485_v49 = vmul.f32 %v3396_v25, %v427_v10  ;;  %v3830_v35 = vsel %vm966_vm8, %v970_v1, %v971_v52  ;;  %v488_v10 = vmul.f32 %v3396_v25, %v430_v5  ;;  %v2380_v1 = vld [vmem:[%s4557_s3 + $0x180] sm:$0xff]  ;;  %v2419_v52 = vld [vmem:[%s4557_s3 + $0x278] sm:$0xff]  ;;  %v592_v5 = vmax.f32 %v541_v31, 0.0 }
  0x50   : > { %2878 = vmatprep.subr.mxu0 %v2365_v19  ;;  %2920 = vmatprep.subr.mxu1 %v2382_v24  ;;  %4587 = vst [vmem:[#allocation3_spill] sm:$0xff] %v3830_v35  ;;  %4588 = vst [vmem:[#allocation4_spill] sm:$0xff] %v3855_v4  ;;  %v545_v31 = vadd.f32 %v3417_v34, %v487_v51  ;;  %v658_v11 = vsel %vm3697_vm9, %v590_v36, 0.0  ;;  %v659_v51 = vsel %vm3442_vm4, %v3669_v38, 0.0  ;;  %v4590_v36 = vmax.f32 %v3779_v6, 0.0 }
  0x51   : > { %2879 = vmatpush3.msra.mxu0 %v2365_v19  ;;  %2921 = vmatpush3.msra.mxu1 %v2382_v24  ;;  %v976_v24 = vrot.slane %v655_v43, 1  ;;  %v543_v15 = vadd.f32 %v3417_v34, %v485_v49  ;;  %v3852_v0 = vadd.f32 %v3417_v34, %v488_v10  ;;  %v3859_v19 = vadd.f32 %v3417_v34, %v505_v63  ;;  %v431_v43 = vld [vmem:[%s3382_s18 + $0x88] sm:$0x1] }
  0x52   : > { %2880 = vmatprep.subr.mxu0 %v2364_v14  ;;  %2922 = vmatprep.subr.mxu1 %v2381_v13  ;;  %v3874_v63 = vsel %vm966_vm8, %v973_v62, %v974_v55  ;;  %v660_v10 = vsel %vm3697_vm9, %v592_v5, 0.0  ;;  %v507_v62 = vmul.f32 %v3396_v25, %v449_v30  ;;  %v489_v49 = vmul.f32 %v3396_v25, %v431_v43  ;;  %v2417_v30 = vld [vmem:[%s4557_s3 + $0x268] sm:$0xff] }
  0x53   : > { %2881 = vmatpush3.msra.mxu0 %v2364_v14  ;;  %2882 = vmatprep.mubr.f32.mxu0 %v3542_v28  ;;  %v657_v28 = vsel %vm3442_vm4, %v3642_v18, 0.0  ;;  %v451_v14 = vld [vmem:[%s3382_s18 + $0x170] sm:$0xff]  ;;  %4589 = vst [vmem:[#allocation5_spill] sm:$0xff] %v3874_v63  ;;  %v4572_v55 = vmax.f32 %v3852_v0, 0.0  ;;  %v594_v5 = vmax.f32 %v543_v15, 0.0  ;;  %v980_v43 = vrot.slane %v658_v11, 1 }
  0x54   : > { %2923 = vmatpush3.msra.mxu1 %v2381_v13  ;;  %2883 = vmatmul.mubr.f32.vlgmr.msra.gmra.mxu0 %v3830_v35  ;;  %v2443_v13 = vld [vmem:[%s4557_s3 + $0x2f8] sm:$0xff]  ;;  %v509_v35 = vmul.f32 %v3396_v25, %v451_v14  ;;  %v982_v15 = vrot.slane %v659_v51, 1  ;;  %v453_v14 = vld [vmem:[%s3382_s18 + $0x180] sm:$0xff]  ;;  %v455_v11 = vld [vmem:[%s3382_s18 + $0x190] sm:$0xff]  ;;  %s2520_s18 = sshll.u32 %s4634_s27, 6 }
  0x55   : > { %2924 = vmatprep.subr.mxu1 %v2380_v1  ;;  %2938 = vmatprep.subr.mxu0 %v2419_v52  ;;  %s4508_s26 = scalar_lea.vmem %s4562_s8, %s2520_s18  ;;  %s4514_s11 = scalar_lea.vmem %s4561_s7, %s2520_s18 }
  0x56   : > { %2925 = vmatpush3.msra.mxu1 %v2380_v1  ;;  %2926 = vmatprep.mubr.msk.f32.mxu1 %vm3442_vm4, %v4570_v7  ;;  %v3896_v1 = vsel %vm966_vm8, %v976_v24, %v977_v26  ;;  %v979_v7 = vrot.slane %v657_v28, 1  ;;  %v547_v24 = vadd.f32 %v3417_v34, %v489_v49  ;;  %v665_v26 = vsel %vm3442_vm4, %v4572_v55, 0.0 }
  0x57   : > { %2939 = vmatpush3.msra.mxu0 %v2419_v52  ;;  %2927 = vmatmul.mubr.msk.f32.vlgmr.msra.gmra.mxu1 %vm3442_vm4, %v4590_v36  ;;  %4591 = vst [vmem:[#allocation6_spill] sm:$0xff] %v3896_v1  ;;  %v2442_v52 = vld [vmem:[%s4557_s3 + $0x2f0] sm:$0xff]  ;;  %v596_v36 = vmax.f32 %v545_v31, 0.0  ;;  %v983_v28 = vrot.slane %v660_v10, 1  ;;  %v2416_v31 = vld [vmem:[%s4557_s3 + $0x260] sm:$0xff]  ;;  %v3918_v49 = vadd.f32 %v3417_v34, %v507_v62  ;;  %v3927_v10 = vadd.f32 %v3417_v34, %v509_v35 }
  0x58   : > { %2940 = vmatprep.subr.mxu0 %v2418_v44  ;;  %2982 = vmatprep.subr.mxu1 %v2443_v13  ;;  %v598_v51 = vmax.f32 %v547_v24, 0.0  ;;  %v662_v55 = vsel %vm3697_vm9, %v594_v5, 0.0  ;;  %v663_v62 = vsel %vm3442_vm4, %v3742_v27, 0.0  ;;  %v4592_v24 = vmax.f32 %v3825_v58, 0.0 }
  0x59   : > { %2885 = vmatprep.mubr.f32.mxu0 %v3874_v63  ;;  %2941 = vmatpush3.msra.mxu0 %v2418_v44  ;;  %v661_v44 = vsel %vm3442_vm4, %v3715_v8, 0.0  ;;  %v3940_v63 = vsel %vm966_vm8, %v979_v7, %v980_v43  ;;  %v664_v35 = vsel %vm3697_vm9, %v596_v36, 0.0  ;;  %v511_v5 = vmul.f32 %v3396_v25, %v453_v14  ;;  %v2415_v7 = vld [vmem:[%s4557_s3 + $0x258] sm:$0xff] }
  0x5a   : > { %2983 = vmatpush3.msra.mxu1 %v2443_v13  ;;  %2886 = vmatmul.mubr.f32.gmra.mxu0 %v3896_v1  ;;  %v2441_v13 = vld [vmem:[%s4557_s3 + $0x2e8] sm:$0xff]  ;;  %v1829_v1 = vrot.slane %v665_v26, 1  ;;  %v666_v41 = vsel %vm3697_vm9, %v598_v51, 0.0  ;;  %v3948_v26 = vsel %vm966_vm8, %v982_v15, %v983_v28  ;;  %v985_v43 = vrot.slane %v661_v44, 1  ;;  %v2414_v44 = vld [vmem:[%s4557_s3 + $0x250] sm:$0xff] }
  0x5b   : > { %2942 = vmatprep.subr.mxu0 %v2417_v30  ;;  %2984 = vmatprep.subr.mxu1 %v2442_v52  ;;  %v1830_v4 = vrot.slane %v666_v41, 1  ;;  %v986_v36 = vrot.slane %v662_v55, 1  ;;  %v513_v41 = vmul.f32 %v3396_v25, %v455_v11  ;;  %v988_v15 = vrot.slane %v663_v62, 1  ;;  %v2439_v25 = vld [vmem:[%s4557_s3 + $0x2d8] sm:$0xff] }
  0x5c   : > { %2929 = vmatprep.mubr.msk.f32.mxu1 %vm3442_vm4, %v4592_v24  ;;  %2943 = vmatpush3.msra.mxu0 %v2417_v30  ;;  %v4593_v24 = vmax.f32 %v3859_v19, 0.0  ;;  %v2440_v30 = vld [vmem:[%s4557_s3 + $0x2e0] sm:$0xff]  ;;  %v989_v28 = vrot.slane %v664_v35, 1  ;;  %v618_v51 = vmax.f32 %v3927_v10, 0.0  ;;  %v3972_v55 = vadd.f32 %v3417_v34, %v511_v5  ;;  %v2437_v5 = vld [vmem:[%s4557_s3 + $0x2c8] sm:$0xff] }
  0x5d   : > { %2985 = vmatpush3.msra.mxu1 %v2442_v52  ;;  %2944 = vmatprep.subr.mxu0 %v2416_v31  ;;  %v616_v52 = vmax.f32 %v3918_v49, 0.0  ;;  %v3964_v14 = vsel %vm966_vm8, %v1829_v1, %v1830_v4  ;;  %v3982_v4 = vsel %vm966_vm8, %v985_v43, %v986_v36  ;;  %v3985_v1 = vadd.f32 %v3417_v34, %v513_v41  ;;  %v2438_v34 = vld [vmem:[%s4557_s3 + $0x2d0] sm:$0xff]  ;;  %v2412_v35 = vld [vmem:[%s4557_s3 + $0x240] sm:$0xff]  ;;  %v2435_v43 = vld [vmem:[%s4557_s3 + $0x2b8] sm:$0xff] }
  0x5e   : > { %2930 = vmatmul.mubr.msk.f32.gmra.mxu1 %vm3442_vm4, %v4593_v24  ;;  %2986 = vmatprep.subr.mxu1 %v2441_v13  ;;  %v3988_v11 = vsel %vm966_vm8, %v988_v15, %v989_v28  ;;  %v2411_v24 = vld [vmem:[%s4557_s3 + $0x238] sm:$0xff]  ;;  %v2409_v36 = vld [vmem:[%s4557_s3 + $0x228] sm:$0xff]  ;;  %v2434_v41 = vld [vmem:[%s4557_s3 + $0x2b0] sm:$0xff] }
  0x5f   : > { %2888 = vmatprep.mubr.f32.mxu0 %v3940_v63  ;;  %2945 = vmatpush3.msra.mxu0 %v2416_v31  ;;  %v2413_v31 = vld [vmem:[%s4557_s3 + $0x248] sm:$0xff]  ;;  %v622_v62 = vmax.f32 %v3985_v1, 0.0  ;;  %v2408_v15 = vld [vmem:[%s4557_s3 + $0x220] sm:$0xff]  ;;  %v631_v1 = vmax.f32 %v3797_v48, 0.0 }
  0x60   : > { %2987 = vmatpush3.msra.mxu1 %v2441_v13  ;;  %2889 = vmatmul.mubr.f32.gmra.mxu0 %v3948_v26  ;;  %v620_v13 = vmax.f32 %v3972_v55, 0.0  ;;  %v2433_v28 = vld [vmem:[%s4557_s3 + $0x2a8] sm:$0xff]  ;;  %v2456_v49 = vld [vmem:[%s4557_s3 + $0x360] sm:$0xff]  ;;  %v2454_v55 = vld [vmem:[%s4557_s3 + $0x350] sm:$0xff] }
  0x61   : > { %2946 = vmatprep.subr.mxu0 %v2415_v7  ;;  %2988 = vmatprep.subr.mxu1 %v2440_v30 }
  0x62   : > { %2932 = vmatprep.mubr.msk.f32.mxu1 %vm3442_vm4, %v616_v52  ;;  %2947 = vmatpush3.msra.mxu0 %v2415_v7  ;;  %v2436_v7 = vld [vmem:[%s4557_s3 + $0x2c0] sm:$0xff] }
  0x63   : > { %2989 = vmatpush3.msra.mxu1 %v2440_v30  ;;  %2948 = vmatprep.subr.mxu0 %v2414_v44  ;;  %v2410_v30 = vld [vmem:[%s4557_s3 + $0x230] sm:$0xff] }
  0x64   : > { %2933 = vmatmul.mubr.msk.f32.gmra.mxu1 %vm3442_vm4, %v618_v51  ;;  %2990 = vmatprep.subr.mxu1 %v2439_v25 }
  0x65   : > { %2891 = vmatprep.mubr.f32.mxu0 %v3982_v4  ;;  %2949 = vmatpush3.msra.mxu0 %v2414_v44  ;;  %v609_v44 = vmax.f32 %v3580_v54, 0.0  ;;  %v2406_v54 = vld [vmem:[%s4557_s3 + $0x210] sm:$0xff] }
  0x66   : > { %2991 = vmatpush3.msra.mxu1 %v2439_v25  ;;  %2892 = vmatmul.mubr.f32.gmra.mxu0 %v3988_v11  ;;  %v2407_v25 = vld [vmem:[%s4557_s3 + $0x218] sm:$0xff] }
  0x67   : > { %2950 = vmatprep.subr.mxu0 %v2413_v31  ;;  %2992 = vmatprep.subr.mxu1 %v2438_v34 }
  0x68   : > { %2935 = vmatprep.mubr.msk.f32.mxu1 %vm3442_vm4, %v620_v13  ;;  %2951 = vmatpush3.msra.mxu0 %v2413_v31  ;;  %v2432_v31 = vld [vmem:[%s4557_s3 + $0x2a0] sm:$0xff] }
  0x69   : > { %2993 = vmatpush3.msra.mxu1 %v2438_v34  ;;  %2952 = vmatprep.subr.mxu0 %v2412_v35  ;;  %v611_v34 = vmax.f32 %v3646_v21, 0.0  ;;  %v684_v21 = vsel %vm3697_vm9, %v609_v44, 0.0 }
  0x6a   : > { %2936 = vmatmul.mubr.msk.f32.gmra.mxu1 %vm3442_vm4, %v622_v62  ;;  %2994 = vmatprep.subr.mxu1 %v2437_v5 }
  0x6b   : > { %2953 = vmatpush3.msra.mxu0 %v2412_v35  ;;  %2995 = vmatpush3.msra.mxu1 %v2437_v5  ;;  %v2431_v35 = vld [vmem:[%s4557_s3 + $0x298] sm:$0xff]  ;;  %v4594_v5 = vmax.f32 %v3756_v37, 0.0 }
  0x6c   : > { %2954 = vmatprep.subr.mxu0 %v2411_v24  ;;  %2996 = vmatprep.subr.mxu1 %v2436_v7 }
  0x6d   : > { %2955 = vmatpush3.msra.mxu0 %v2411_v24  ;;  %2997 = vmatpush3.msra.mxu1 %v2436_v7  ;;  %v683_v24 = vsel %vm3442_vm4, %v4594_v5, 0.0  ;;  %v2405_v7 = vld [vmem:[%s4557_s3 + $0x208] sm:$0xff]  ;;  %v2459_v5 = vld [vmem:[%s4557_s3 + $0x378] sm:$0xff] }
  0x6e   : > { %2956 = vmatprep.subr.mxu0 %v2410_v30  ;;  %2998 = vmatprep.subr.mxu1 %v2435_v43  ;;  %v1405_v44 = vrot.slane %v683_v24, 1  ;;  %v4596_v24 = vmax.f32 %v3825_v58, 0.0 }
  0x6f   : > { %2957 = vmatpush3.msra.mxu0 %v2410_v30  ;;  %2999 = vmatpush3.msra.mxu1 %v2435_v43  ;;  %v2430_v30 = vld [vmem:[%s4557_s3 + $0x290] sm:$0xff]  ;;  %v4595_v43 = vmax.f32 %v3779_v6, 0.0  ;;  %v2429_v6 = vld [vmem:[%s4557_s3 + $0x288] sm:$0xff] }
  0x70   : > { %2958 = vmatprep.subr.mxu0 %v2409_v36  ;;  %3000 = vmatprep.subr.mxu1 %v2434_v41 }
  0x71   : > { %2959 = vmatpush3.msra.mxu0 %v2409_v36  ;;  %3001 = vmatpush3.msra.mxu1 %v2434_v41  ;;  %v685_v37 = vsel %vm3442_vm4, %v4595_v43, 0.0  ;;  %v686_v36 = vsel %vm3697_vm9, %v611_v34, 0.0  ;;  %v613_v41 = vmax.f32 %v3658_v29, 0.0 }
  0x72   : > { %2960 = vmatprep.subr.mxu0 %v2408_v15  ;;  %3002 = vmatprep.subr.mxu1 %v2433_v28  ;;  %v1408_v34 = vrot.slane %v685_v37, 1  ;;  %v1409_v29 = vrot.slane %v686_v36, 1  ;;  %v617_v36 = vmax.f32 %v3738_v17, 0.0  ;;  %v619_v17 = vmax.f32 %v3766_v3, 0.0 }
  0x73   : > { %2961 = vmatpush3.msra.mxu0 %v2408_v15  ;;  %3003 = vmatpush3.msra.mxu1 %v2433_v28  ;;  %v2404_v15 = vld [vmem:[%s4557_s3 + $0x200] sm:$0xff]  ;;  %v624_v28 = vmax.f32 %v3572_v50, 0.0 }
  0x74   : > { %2962 = vmatprep.subr.mxu0 %v2407_v25  ;;  %3004 = vmatprep.subr.mxu1 %v2432_v31  ;;  %v1410_v58 = vsel %vm966_vm8, %v1408_v34, %v1409_v29  ;;  %v692_v3 = vsel %vm3697_vm9, %v617_v36, 0.0 }
  0x75   : > { %2963 = vmatpush3.msra.mxu0 %v2407_v25  ;;  %3005 = vmatpush3.msra.mxu1 %v2432_v31  ;;  %v1406_v25 = vrot.slane %v684_v21, 1  ;;  %v625_v31 = vmax.f32 %v3577_v53, 0.0  ;;  %v687_v21 = vsel %vm3442_vm4, %v4596_v24, 0.0  ;;  %v2482_v24 = vld [vmem:[%s4557_s3 + $0x3f0] sm:$0xff]  ;;  %v1418_v10 = vrot.slane %v692_v3, 1  ;;  %v2453_v3 = vld [vmem:[%s4557_s3 + $0x348] sm:$0xff] }
  0x76   : > { %2964 = vmatprep.subr.mxu0 %v2406_v54  ;;  %3006 = vmatprep.subr.mxu1 %v2431_v35 }
  0x77   : > { %2965 = vmatpush3.msra.mxu0 %v2406_v54  ;;  %3007 = vmatpush3.msra.mxu1 %v2431_v35  ;;  %v615_v54 = vmax.f32 %v3683_v57, 0.0  ;;  %v2428_v35 = vld [vmem:[%s4557_s3 + $0x280] sm:$0xff]  ;;  %v688_v57 = vsel %vm3697_vm9, %v613_v41, 0.0  ;;  %v2458_v41 = vld [vmem:[%s4557_s3 + $0x370] sm:$0xff] }
  0x78   : > { %2966 = vmatprep.subr.mxu0 %v2405_v7  ;;  %3008 = vmatprep.subr.mxu1 %v2430_v30 }
  0x79   : > { %2967 = vmatpush3.msra.mxu0 %v2405_v7  ;;  %3009 = vmatpush3.msra.mxu1 %v2430_v30  ;;  %v1407_v7 = vsel %vm966_vm8, %v1405_v44, %v1406_v25  ;;  %v4597_v30 = vmax.f32 %v3859_v19, 0.0  ;;  %v690_v37 = vsel %vm3697_vm9, %v615_v54, 0.0  ;;  %v626_v19 = vmax.f32 %v3649_v22, 0.0  ;;  %v2457_v54 = vld [vmem:[%s4557_s3 + $0x368] sm:$0xff] }
  0x7a   : > { %2968 = vmatprep.subr.mxu0 %v2404_v15  ;;  %3010 = vmatprep.subr.mxu1 %v2429_v6  ;;  %v1412_v44 = vrot.slane %v688_v57, 1  ;;  %v627_v25 = vmax.f32 %v3652_v23, 0.0  ;;  %v1415_v29 = vrot.slane %v690_v37, 1  ;;  %v621_v57 = vmax.f32 %v3810_v56, 0.0 }
  0x7b   : > { %2969 = vmatpush3.msra.mxu0 %v2404_v15  ;;  %2970 = vmatprep.mubr.msk.f32.mxu0 %vm3448_vm5, %v624_v28  ;;  %v689_v43 = vsel %vm3442_vm4, %v4597_v30, 0.0  ;;  %v2483_v15 = vld [vmem:[%s4557_s3 + $0x3f8] sm:$0xff]  ;;  %v628_v30 = vmax.f32 %v3721_v12, 0.0  ;;  %v623_v37 = vmax.f32 %v3836_v32, 0.0 }
  0x7c   : > { %3011 = vmatpush3.msra.mxu1 %v2429_v6  ;;  %2971 = vmatmul.mubr.msk.f32.vlgmr.msra.gmra.mxu0 %vm3448_vm5, %v625_v31  ;;  %v1411_v6 = vrot.slane %v687_v21, 1  ;;  %v1414_v34 = vrot.slane %v689_v43, 1  ;;  %v694_v21 = vsel %vm3697_vm9, %v619_v17, 0.0  ;;  %v696_v32 = vsel %vm3697_vm9, %v621_v57, 0.0  ;;  %v2477_v57 = vld [vmem:[%s4557_s3 + $0x3c8] sm:$0xff] }
  0x7d   : > { %3012 = vmatprep.subr.mxu1 %v2428_v35  ;;  %3026 = vmatprep.subr.mxu0 %v2459_v5  ;;  %v1421_v36 = vrot.slane %v694_v21, 1  ;;  %v698_v17 = vsel %vm3697_vm9, %v623_v37, 0.0  ;;  %v2449_v37 = vld [vmem:[%s4557_s3 + $0x328] sm:$0xff] }
  0x7e   : > { %3013 = vmatpush3.msra.mxu1 %v2428_v35  ;;  %3014 = vmatprep.mubr.f32.mxu1 %v1407_v7  ;;  %v691_v35 = vsel %vm3442_vm4, %v616_v52, 0.0  ;;  %v693_v52 = vsel %vm3442_vm4, %v618_v51, 0.0  ;;  %v1416_v7 = vsel %vm966_vm8, %v1414_v34, %v1415_v29  ;;  %v629_v51 = vmax.f32 %v3735_v16, 0.0  ;;  %v2479_v29 = vld [vmem:[%s4557_s3 + $0x3d8] sm:$0xff] }
  0x7f   : > { %3027 = vmatpush3.msra.mxu0 %v2459_v5  ;;  %3015 = vmatmul.mubr.f32.vlgmr.msra.gmra.mxu1 %v1410_v58  ;;  %v1413_v5 = vsel %vm966_vm8, %v1411_v6, %v1412_v44  ;;  %v2481_v58 = vld [vmem:[%s4557_s3 + $0x3e8] sm:$0xff]  ;;  %v1417_v43 = vrot.slane %v691_v35, 1  ;;  %v1420_v56 = vrot.slane %v693_v52, 1  ;;  %v695_v6 = vsel %vm3442_vm4, %v620_v13, 0.0  ;;  %v2452_v52 = vld [vmem:[%s4557_s3 + $0x340] sm:$0xff] }
  0x80   : > { %3028 = vmatprep.subr.mxu0 %v2458_v41  ;;  %3070 = vmatprep.subr.mxu1 %v2483_v15  ;;  %v697_v13 = vsel %vm3442_vm4, %v622_v62, 0.0  ;;  %v1424_v35 = vrot.slane %v696_v32, 1  ;;  %v1427_v62 = vrot.slane %v698_v17, 1  ;;  %v2446_v32 = vld [vmem:[%s4557_s3 + $0x310] sm:$0xff]  ;;  %v2444_v17 = vld [vmem:[%s4557_s3 + $0x300] sm:$0xff] }
  0x81   : > { %2973 = vmatprep.mubr.msk.f32.mxu0 %vm3448_vm5, %v626_v19  ;;  %3029 = vmatpush3.msra.mxu0 %v2458_v41  ;;  %v2455_v41 = vld [vmem:[%s4557_s3 + $0x358] sm:$0xff]  ;;  %v1419_v44 = vsel %vm966_vm8, %v1417_v43, %v1418_v10  ;;  %v1422_v34 = vsel %vm966_vm8, %v1420_v56, %v1421_v36  ;;  %v1426_v61 = vrot.slane %v697_v13, 1  ;;  %v2450_v43 = vld [vmem:[%s4557_s3 + $0x330] sm:$0xff]  ;;  %v2448_v36 = vld [vmem:[%s4557_s3 + $0x320] sm:$0xff] }
  0x82   : > { %3071 = vmatpush3.msra.mxu1 %v2483_v15  ;;  %2974 = vmatmul.mubr.msk.f32.gmra.mxu0 %vm3448_vm5, %v627_v25  ;;  %v2480_v15 = vld [vmem:[%s4557_s3 + $0x3e0] sm:$0xff]  ;;  %v2475_v10 = vld [vmem:[%s4557_s3 + $0x3b8] sm:$0xff]  ;;  %v2474_v56 = vld [vmem:[%s4557_s3 + $0x3b0] sm:$0xff] }
  0x83   : > { %3030 = vmatprep.subr.mxu0 %v2457_v54  ;;  %3072 = vmatprep.subr.mxu1 %v2482_v24  ;;  %v1428_v21 = vsel %vm966_vm8, %v1426_v61, %v1427_v62  ;;  %v2470_v13 = vld [vmem:[%s4557_s3 + $0x390] sm:$0xff]  ;;  %v4598_v61 = vmax.f32 %v3432_v40, 0.0  ;;  %v4600_v40 = vmax.f32 %v3529_v20, 0.0  ;;  %v2024_v62 = vld [vmem:[%s4560_s6 + $0x78] sm:$0xff] }
  0x84   : > { %3017 = vmatprep.mubr.f32.mxu1 %v1413_v5  ;;  %3031 = vmatpush3.msra.mxu0 %v2457_v54  ;;  %v630_v54 = vmax.f32 %v3794_v33, 0.0  ;;  %v2478_v5 = vld [vmem:[%s4557_s3 + $0x3d0] sm:$0xff]  ;;  %v2503_v20 = vld [vmem:[%s4557_s3 + $0x458] sm:$0xff] }
  0x85   : > { %3073 = vmatpush3.msra.mxu1 %v2482_v24  ;;  %3032 = vmatprep.subr.mxu0 %v2456_v49  ;;  %v1423_v24 = vrot.slane %v695_v6, 1  ;;  %v2472_v6 = vld [vmem:[%s4557_s3 + $0x3a0] sm:$0xff] }
  0x86   : > { %3018 = vmatmul.mubr.f32.gmra.mxu1 %v1416_v7  ;;  %3074 = vmatprep.subr.mxu1 %v2481_v58  ;;  %v2451_v7 = vld [vmem:[%s4557_s3 + $0x338] sm:$0xff] }
  0x87   : > { %2976 = vmatprep.mubr.msk.f32.mxu0 %vm3448_vm5, %v628_v30  ;;  %3033 = vmatpush3.msra.mxu0 %v2456_v49  ;;  %v1425_v49 = vsel %vm966_vm8, %v1423_v24, %v1424_v35  ;;  %v2507_v24 = vld [vmem:[%s4557_s3 + $0x478] sm:$0xff]  ;;  %v2506_v35 = vld [vmem:[%s4557_s3 + $0x470] sm:$0xff] }
  0x88   : > { %3075 = vmatpush3.msra.mxu1 %v2481_v58  ;;  %2977 = vmatmul.mubr.msk.f32.gmra.mxu0 %vm3448_vm5, %v629_v51  ;;  %v2476_v58 = vld [vmem:[%s4557_s3 + $0x3c0] sm:$0xff] }
  0x89   : > { %3034 = vmatprep.subr.mxu0 %v2455_v41  ;;  %3076 = vmatprep.subr.mxu1 %v2480_v15 }
  0x8a   : > { %3020 = vmatprep.mubr.f32.mxu1 %v1419_v44  ;;  %3035 = vmatpush3.msra.mxu0 %v2455_v41  ;;  %v2473_v41 = vld [vmem:[%s4557_s3 + $0x3a8] sm:$0xff]  ;;  %v2471_v44 = vld [vmem:[%s4557_s3 + $0x398] sm:$0xff] }
  0x8b   : > { %3077 = vmatpush3.msra.mxu1 %v2480_v15  ;;  %3036 = vmatprep.subr.mxu0 %v2454_v55  ;;  %v2447_v15 = vld [vmem:[%s4557_s3 + $0x318] sm:$0xff] }
  0x8c   : > { %3021 = vmatmul.mubr.f32.gmra.mxu1 %v1422_v34  ;;  %3078 = vmatprep.subr.mxu1 %v2479_v29  ;;  %v2469_v34 = vld [vmem:[%s4557_s3 + $0x388] sm:$0xff] }
  0x8d   : > { %2979 = vmatprep.mubr.msk.f32.mxu0 %vm3448_vm5, %v630_v54  ;;  %3037 = vmatpush3.msra.mxu0 %v2454_v55  ;;  %v2445_v55 = vld [vmem:[%s4557_s3 + $0x308] sm:$0xff] }
  0x8e   : > { %3079 = vmatpush3.msra.mxu1 %v2479_v29  ;;  %2980 = vmatmul.mubr.msk.f32.gmra.mxu0 %vm3448_vm5, %v631_v1  ;;  %v2468_v29 = vld [vmem:[%s4557_s3 + $0x380] sm:$0xff] }
  0x8f   : > { %3038 = vmatprep.subr.mxu0 %v2453_v3  ;;  %3080 = vmatprep.subr.mxu1 %v2478_v5 }
  0x90   : > { %3023 = vmatprep.mubr.f32.mxu1 %v1425_v49  ;;  %3039 = vmatpush3.msra.mxu0 %v2453_v3  ;;  %v2023_v3 = vld [vmem:[%s4560_s6 + $0x70] sm:$0xff] }
  0x91   : > { %3081 = vmatpush3.msra.mxu1 %v2478_v5  ;;  %3040 = vmatprep.subr.mxu0 %v2452_v52  ;;  %v4602_v5 = vmax.f32 %v3591_v60, 0.0  ;;  %v2021_v60 = vld [vmem:[%s4560_s6 + $0x60] sm:$0xff]  ;;  %v4605_v49 = vld [vmem:[#allocation4_spill] sm:$0xff] }
  0x92   : > { %3024 = vmatmul.mubr.f32.gmra.mxu1 %v1428_v21  ;;  %3082 = vmatprep.subr.mxu1 %v2477_v57  ;;  %v2500_v21 = vld [vmem:[%s4557_s3 + $0x440] sm:$0xff] }
  0x93   : > { %3041 = vmatpush3.msra.mxu0 %v2452_v52  ;;  %3083 = vmatpush3.msra.mxu1 %v2477_v57  ;;  %v607_v52 = vmax.f32 %v4605_v49, 0.0  ;;  %v2020_v57 = vld [vmem:[%s4560_s6 + $0x58] sm:$0xff] }
  0x94   : > { %3042 = vmatprep.subr.mxu0 %v2451_v7  ;;  %3084 = vmatprep.subr.mxu1 %v2476_v58 }
  0x95   : > { %3043 = vmatpush3.msra.mxu0 %v2451_v7  ;;  %3085 = vmatpush3.msra.mxu1 %v2476_v58  ;;  %v2498_v58 = vld [vmem:[%s4557_s3 + $0x430] sm:$0xff] }
  0x96   : > { %3044 = vmatprep.subr.mxu0 %v2450_v43  ;;  %3086 = vmatprep.subr.mxu1 %v2475_v10 }
  0x97   : > { %3045 = vmatpush3.msra.mxu0 %v2450_v43  ;;  %3087 = vmatpush3.msra.mxu1 %v2475_v10  ;;  %v2018_v43 = vld [vmem:[%s4560_s6 + $0x48] sm:$0xff] }
  0x98   : > { %3046 = vmatprep.subr.mxu0 %v2449_v37  ;;  %3088 = vmatprep.subr.mxu1 %v2474_v56  ;;  %v2497_v10 = vld [vmem:[%s4557_s3 + $0x428] sm:$0xff] }
  0x99   : > { %3047 = vmatpush3.msra.mxu0 %v2449_v37  ;;  %3089 = vmatpush3.msra.mxu1 %v2474_v56  ;;  %v2017_v37 = vld [vmem:[%s4560_s6 + $0x40] sm:$0xff] }
  0x9a   : > { %3048 = vmatprep.subr.mxu0 %v2448_v36  ;;  %3090 = vmatprep.subr.mxu1 %v2473_v41  ;;  %v2496_v56 = vld [vmem:[%s4557_s3 + $0x420] sm:$0xff] }
  0x9b   : > { %3049 = vmatpush3.msra.mxu0 %v2448_v36  ;;  %3091 = vmatpush3.msra.mxu1 %v2473_v41  ;;  %v2016_v36 = vld [vmem:[%s4560_s6 + $0x38] sm:$0xff] }
  0x9c   : > { %3050 = vmatprep.subr.mxu0 %v2447_v15  ;;  %3092 = vmatprep.subr.mxu1 %v2472_v6  ;;  %v2495_v41 = vld [vmem:[%s4557_s3 + $0x418] sm:$0xff] }
  0x9d   : > { %3051 = vmatpush3.msra.mxu0 %v2447_v15  ;;  %3093 = vmatpush3.msra.mxu1 %v2472_v6  ;;  %v2015_v15 = vld [vmem:[%s4560_s6 + $0x30] sm:$0xff] }
  0x9e   : > { %3052 = vmatprep.subr.mxu0 %v2446_v32  ;;  %3094 = vmatprep.subr.mxu1 %v2471_v44  ;;  %v2494_v6 = vld [vmem:[%s4557_s3 + $0x410] sm:$0xff] }
  0x9f   : > { %3053 = vmatpush3.msra.mxu0 %v2446_v32  ;;  %3095 = vmatpush3.msra.mxu1 %v2471_v44  ;;  %v2014_v32 = vld [vmem:[%s4560_s6 + $0x28] sm:$0xff] }
  0xa0   : > { %3054 = vmatprep.subr.mxu0 %v2445_v55  ;;  %3096 = vmatprep.subr.mxu1 %v2470_v13  ;;  %v2493_v44 = vld [vmem:[%s4557_s3 + $0x408] sm:$0xff] }
  0xa1   : > { %3055 = vmatpush3.msra.mxu0 %v2445_v55  ;;  %3097 = vmatpush3.msra.mxu1 %v2470_v13  ;;  %v2013_v55 = vld [vmem:[%s4560_s6 + $0x20] sm:$0xff] }
  0xa2   : > { %3056 = vmatprep.subr.mxu0 %v2444_v17  ;;  %3098 = vmatprep.subr.mxu1 %v2469_v34  ;;  %v2492_v13 = vld [vmem:[%s4557_s3 + $0x400] sm:$0xff] }
  0xa3   : > { %3057 = vmatpush3.msra.mxu0 %v2444_v17  ;;  %3058 = vmatprep.mubr.msk.f32.mxu0 %vm3442_vm4, %v3446_v46  ;;  %v4599_v46 = vmax.f32 %v3514_v9, 0.0  ;;  %v2504_v9 = vld [vmem:[%s4557_s3 + $0x460] sm:$0xff]  ;;  %v2012_v17 = vld [vmem:[%s4560_s6 + $0x18] sm:$0xff] }
  0xa4   : > { %3099 = vmatpush3.msra.mxu1 %v2469_v34  ;;  %3059 = vmatmul.mubr.msk.f32.vlgmr.msra.gmra.mxu0 %vm3442_vm4, %v3560_v39  ;;  %v2505_v39 = vld [vmem:[%s4557_s3 + $0x468] sm:$0xff]  ;;  %v2011_v34 = vld [vmem:[%s4560_s6 + $0x10] sm:$0xff] }
  0xa5   : > { %3100 = vmatprep.subr.mxu1 %v2468_v29  ;;  %3114 = vmatprep.subr.mxu0 %v2507_v24 }
  0xa6   : > { %3101 = vmatpush3.msra.mxu1 %v2468_v29  ;;  %3102 = vmatprep.mubr.msk.f32.mxu1 %vm3448_vm5, %v4598_v61  ;;  %v4608_v29 = vld [vmem:[#allocation3_spill] sm:$0xff]  ;;  %v4610_v61 = vld [vmem:[#allocation6_spill] sm:$0xff] }
  0xa7   : > { %3115 = vmatpush3.msra.mxu0 %v2507_v24  ;;  %3103 = vmatmul.mubr.msk.f32.vlgmr.msra.gmra.mxu1 %vm3448_vm5, %v4599_v46  ;;  %v4609_v24 = vld [vmem:[#allocation5_spill] sm:$0xff]  ;;  %v2009_v46 = vld [vmem:[%s4560_s6] sm:$0xff] }
  0xa8   : > { %3116 = vmatprep.subr.mxu0 %v2506_v35  ;;  %3061 = vmatprep.mubr.msk.f32.mxu0 %vm3442_vm4, %v3588_v59  ;;  %v4601_v59 = vmax.f32 %v3566_v42, 0.0  ;;  %v2502_v42 = vld [vmem:[%s4557_s3 + $0x450] sm:$0xff] }
  0xa9   : > { %3117 = vmatpush3.msra.mxu0 %v2506_v35  ;;  %3105 = vmatprep.mubr.msk.f32.mxu1 %vm3448_vm5, %v4600_v40  ;;  %v2010_v35 = vld [vmem:[%s4560_s6 + $0x8] sm:$0xff] }
  0xaa   : > { %3062 = vmatmul.mubr.msk.f32.gmra.mxu0 %vm3442_vm4, %v3642_v18  ;;  %3118 = vmatprep.subr.mxu0 %v2505_v39  ;;  %v2022_v18 = vld [vmem:[%s4560_s6 + $0x68] sm:$0xff] }
  0xab   : > { %3119 = vmatpush3.msra.mxu0 %v2505_v39  ;;  %3106 = vmatmul.mubr.msk.f32.gmra.mxu1 %vm3448_vm5, %v4601_v59 }
  0xac   : > { %3120 = vmatprep.subr.mxu0 %v2504_v9  ;;  %3158 = vmatprep.subr.mxu1 %v2024_v62 }
  0xad   : > { %3064 = vmatprep.mubr.msk.f32.mxu0 %vm3442_vm4, %v3669_v38  ;;  %3121 = vmatpush3.msra.mxu0 %v2504_v9  ;;  %v4603_v38 = vmax.f32 %v3602_v2, 0.0  ;;  %v4604_v2 = vmax.f32 %v3852_v0, 0.0  ;;  %v2019_v0 = vld [vmem:[%s4560_s6 + $0x50] sm:$0xff] }
  0xae   : > { %3159 = vmatpush3.msra.mxu1 %v2024_v62  ;;  %3065 = vmatmul.mubr.msk.f32.gmra.mxu0 %vm3442_vm4, %v3715_v8  ;;  %v2501_v8 = vld [vmem:[%s4557_s3 + $0x448] sm:$0xff] }
  0xaf   : > { %3122 = vmatprep.subr.mxu0 %v2503_v20  ;;  %3160 = vmatprep.subr.mxu1 %v2023_v3 }
  0xb0   : > { %3108 = vmatprep.mubr.msk.f32.mxu1 %vm3448_vm5, %v4602_v5  ;;  %3123 = vmatpush3.msra.mxu0 %v2503_v20 }
  0xb1   : > { %3161 = vmatpush3.msra.mxu1 %v2023_v3  ;;  %3124 = vmatprep.subr.mxu0 %v2502_v42 }
  0xb2   : > { %3109 = vmatmul.mubr.msk.f32.gmra.mxu1 %vm3448_vm5, %v4603_v38  ;;  %3162 = vmatprep.subr.mxu1 %v2022_v18 }
  0xb3   : > { %3067 = vmatprep.mubr.msk.f32.mxu0 %vm3442_vm4, %v3742_v27  ;;  %3125 = vmatpush3.msra.mxu0 %v2502_v42  ;;  %v4606_v27 = vld [vmem:[#allocation2_spill] sm:$0xff] }
  0xb4   : > { %3163 = vmatpush3.msra.mxu1 %v2022_v18  ;;  %3068 = vmatmul.mubr.msk.f32.gmra.mxu0 %vm3442_vm4, %v4604_v2  ;;  %v4607_v7 = vmax.f32 %v4606_v27, 0.0 }
  0xb5   : > { %3126 = vmatprep.subr.mxu0 %v2501_v8  ;;  %3164 = vmatprep.subr.mxu1 %v2021_v60 }
  0xb6   : > { %3111 = vmatprep.mubr.msk.f32.mxu1 %vm3448_vm5, %v4607_v7  ;;  %3127 = vmatpush3.msra.mxu0 %v2501_v8 }
  0xb7   : > { %3165 = vmatpush3.msra.mxu1 %v2021_v60  ;;  %3128 = vmatprep.subr.mxu0 %v2500_v21 }
  0xb8   : > { %3112 = vmatmul.mubr.msk.f32.gmra.mxu1 %vm3448_vm5, %v607_v52  ;;  %3166 = vmatprep.subr.mxu1 %v2020_v57 }
  0xb9   : > { %3129 = vmatpush3.msra.mxu0 %v2500_v21  ;;  %3167 = vmatpush3.msra.mxu1 %v2020_v57 }
  0xba   : > { %3130 = vmatprep.subr.mxu0 %v2499_v45  ;;  %3168 = vmatprep.subr.mxu1 %v2019_v0 }
  0xbb   : > { %3131 = vmatpush3.msra.mxu0 %v2499_v45  ;;  %3169 = vmatpush3.msra.mxu1 %v2019_v0 }
  0xbc   : > { %3132 = vmatprep.subr.mxu0 %v2498_v58  ;;  %3170 = vmatprep.subr.mxu1 %v2018_v43 }
  0xbd   : > { %3133 = vmatpush3.msra.mxu0 %v2498_v58  ;;  %3171 = vmatpush3.msra.mxu1 %v2018_v43 }
  0xbe   : > { %3134 = vmatprep.subr.mxu0 %v2497_v10  ;;  %3172 = vmatprep.subr.mxu1 %v2017_v37 }
  0xbf   : > { %3135 = vmatpush3.msra.mxu0 %v2497_v10  ;;  %3173 = vmatpush3.msra.mxu1 %v2017_v37 }
  0xc0   : > { %3136 = vmatprep.subr.mxu0 %v2496_v56  ;;  %3174 = vmatprep.subr.mxu1 %v2016_v36 }
  0xc1   : > { %3137 = vmatpush3.msra.mxu0 %v2496_v56  ;;  %3175 = vmatpush3.msra.mxu1 %v2016_v36 }
  0xc2   : > { %3138 = vmatprep.subr.mxu0 %v2495_v41  ;;  %3176 = vmatprep.subr.mxu1 %v2015_v15 }
  0xc3   : > { %3139 = vmatpush3.msra.mxu0 %v2495_v41  ;;  %3177 = vmatpush3.msra.mxu1 %v2015_v15 }
  0xc4   : > { %3140 = vmatprep.subr.mxu0 %v2494_v6  ;;  %3178 = vmatprep.subr.mxu1 %v2014_v32 }
  0xc5   : > { %3141 = vmatpush3.msra.mxu0 %v2494_v6  ;;  %3179 = vmatpush3.msra.mxu1 %v2014_v32 }
  0xc6   : > { %3142 = vmatprep.subr.mxu0 %v2493_v44  ;;  %3180 = vmatprep.subr.mxu1 %v2013_v55 }
  0xc7   : > { %3143 = vmatpush3.msra.mxu0 %v2493_v44  ;;  %3181 = vmatpush3.msra.mxu1 %v2013_v55 }
  0xc8   : > { %3144 = vmatprep.subr.mxu0 %v2492_v13  ;;  %3182 = vmatprep.subr.mxu1 %v2012_v17 }
  0xc9   : > { %3145 = vmatpush3.msra.mxu0 %v2492_v13  ;;  %3146 = vmatprep.mubr.f32.mxu0 %v4608_v29 }
  0xca   : > { %3183 = vmatpush3.msra.mxu1 %v2012_v17  ;;  %3147 = vmatmul.mubr.f32.vlgmr.msra.gmra.mxu0 %v4609_v24 }
  0xcb   : > { %3184 = vmatprep.subr.mxu1 %v2011_v34  ;;  %3149 = vmatprep.mubr.f32.mxu0 %v4610_v61 }
  0xcc   : > { %3185 = vmatpush3.msra.mxu1 %v2011_v34  ;;  %3190 = vmatprep.mubr.msk.f32.mxu1 %vm3448_vm5, %v624_v28 }
  0xcd   : > { %3186 = vmatprep.subr.mxu1 %v2010_v35 }
  0xce   : > { %3187 = vmatpush3.msra.mxu1 %v2010_v35  ;;  %3150 = vmatmul.mubr.f32.gmra.mxu0 %v3940_v63 }
  0xcf   : > { %3188 = vmatprep.subr.mxu1 %v2009_v46  ;;  %3152 = vmatprep.mubr.f32.mxu0 %v3948_v26 }
  0xd0   : > { %3189 = vmatpush3.msra.mxu1 %v2009_v46 }
  0xd1   : > { %3191 = vmatmul.mubr.msk.f32.vlgmr.msra.gmra.mxu1 %vm3448_vm5, %v625_v31 }
  0xd2   : > { %3153 = vmatmul.mubr.f32.gmra.mxu0 %v3982_v4  ;;  %3193 = vmatprep.mubr.msk.f32.mxu1 %vm3448_vm5, %v626_v19 }
  0xd3   : > { %3155 = vmatprep.mubr.f32.mxu0 %v3988_v11 }
  0xd5   : > { %3194 = vmatmul.mubr.msk.f32.gmra.mxu1 %vm3448_vm5, %v627_v25 }
  0xd6   : > { %3156 = vmatmul.mubr.f32.gmra.mxu0 %v3964_v14  ;;  %3196 = vmatprep.mubr.msk.f32.mxu1 %vm3448_vm5, %v628_v30 }
  0xd9   : > { %3197 = vmatmul.mubr.msk.f32.gmra.mxu1 %vm3448_vm5, %v629_v51 }
  0xda   : > { %3199 = vmatprep.mubr.msk.f32.mxu1 %vm3448_vm5, %v630_v54 }
  0xdd   : > { %3200 = vmatmul.mubr.msk.f32.gmra.mxu1 %vm3448_vm5, %v631_v1 }
  0xee   : > { %v2796_v50 = vpop.f32.mrf.mxu0  ;;  %v2840_v23 = vpop.f32.mrf.mxu1 }
  0xef   : > { %v917_v6 = vadd.f32 %v2840_v23, %v2796_v50 }
  0xf0   : > { %v806_v53 = vpop.f32.mrf.mxu0  ;;  %v911_v63 = vpop.f32.mrf.mxu1 }
  0xf1   : > { %v912_v55 = vadd.f32 %v911_v63, %v806_v53 }
 0x102   : > { %v2799_v22 = vpop.f32.mrf.mxu0  ;;  %v2843_v26 = vpop.f32.mrf.mxu1 }
 0x103   : > { %v927_v17 = vadd.f32 %v2843_v26, %v2799_v22 }
 0x104   : > { %v816_v12 = vpop.f32.mrf.mxu0  ;;  %v921_v4 = vpop.f32.mrf.mxu1 }
 0x105   : > { %v922_v35 = vadd.f32 %v921_v4, %v816_v12 }
 0x108   : > { %v2802_v16 = vpop.f32.mrf.mxu0  ;;  %v2846_v33 = vpop.f32.mrf.mxu1 }
 0x10a   : > { %v826_v14 = vpop.f32.mrf.mxu0  ;;  %v931_v31 = vpop.f32.mrf.mxu1 }
 0x10e   : > { %v4461_v11 = vpop.f32.mrf.mxu0  ;;  %v2849_v19 = vpop.f32.mrf.mxu1 }
 0x10f   : > { %v947_v53 = vadd.f32 %v2849_v19, %v4461_v11 }
 0x110   : > { %v4463_v28 = vpop.f32.mrf.mxu0  ;;  %v4465_v25 = vpop.f32.mrf.mxu1 }
 0x111   : > { %4611 = vst [vmem:[#allocation4_spill] sm:$0xff] %v4463_v28  ;;  %4612 = vst [vmem:[#allocation2_spill] sm:$0xff] %v4465_v25 }
 0x114   : > { %v2884_v48 = vpop.f32.mrf.mxu0 }
 0x115   : > { %v1122_v13 = vadd.f32 %v2884_v48, %v917_v6 }
 0x116   : > { %v1082_v47 = vpop.f32.mrf.mxu0 }
 0x117   : > { %v2928_v30 = vpop.f32.mrf.mxu1  ;;  %v1121_v34 = vadd.f32 %v1082_v47, %v912_v55 }
 0x118   : > { %v1252_v61 = vadd.f32 %v2928_v30, %v1122_v13  ;;  %v4619_v4 = vld [vmem:[#allocation4_spill] sm:$0xff]  ;;  %v4620_v47 = vld [vmem:[#allocation2_spill] sm:$0xff] }
 0x119   : > { %v1212_v54 = vpop.f32.mrf.mxu1 }
 0x11a   : > { %v2887_v51 = vpop.f32.mrf.mxu0 }
 0x11b   : > { %v1124_v46 = vadd.f32 %v2887_v51, %v927_v17 }
 0x11c   : > { %v1092_v1 = vpop.f32.mrf.mxu0 }
 0x11e   : > { %v2931_v39 = vpop.f32.mrf.mxu1 }
 0x11f   : > { %v1254_v23 = vadd.f32 %v2931_v39, %v1124_v46 }
 0x120   : > { %v2890_v40 = vpop.f32.mrf.mxu0  ;;  %v1222_v9 = vpop.f32.mrf.mxu1 }
 0x122   : > { %v1102_v62 = vpop.f32.mrf.mxu0 }
 0x124   : > { %v2934_v59 = vpop.f32.mrf.mxu1 }
 0x126   : > { %v2893_v20 = vpop.f32.mrf.mxu0  ;;  %v1232_v3 = vpop.f32.mrf.mxu1 }
 0x127   : > { %v1128_v30 = vadd.f32 %v2893_v20, %v947_v53 }
 0x128   : > { %v1112_v42 = vpop.f32.mrf.mxu0 }
 0x12a   : > { %v4467_v5 = vpop.f32.mrf.mxu1 }
 0x12b   : > { %4613 = vst [vmem:[#allocation3_spill] sm:$0xff] %v4467_v5 }
 0x12c   : > { %v4469_v8 = vpop.f32.mrf.mxu1 }
 0x12d   : > { %4614 = vst [vmem:[#allocation5_spill] sm:$0xff] %v4469_v8 }
 0x13c   : > { %v2972_v18 = vpop.f32.mrf.mxu0 }
 0x13d   : > { %v1382_v8 = vadd.f32 %v2972_v18, %v1252_v61 }
 0x13e   : > { %v1342_v38 = vpop.f32.mrf.mxu0 }
 0x13f   : > { %v3016_v60 = vpop.f32.mrf.mxu1 }
 0x140   : > { %v1560_v26 = vadd.f32 %v3016_v60, %v1382_v8  ;;  %v4622_v60 = vld [vmem:[#allocation5_spill] sm:$0xff] }
 0x141   : > { %v1520_v49 = vpop.f32.mrf.mxu1 }
 0x142   : > { %v2975_v2 = vpop.f32.mrf.mxu0 }
 0x143   : > { %v1384_v48 = vadd.f32 %v2975_v2, %v1254_v23 }
 0x144   : > { %v1352_v52 = vpop.f32.mrf.mxu0 }
 0x146   : > { %v3019_v21 = vpop.f32.mrf.mxu1 }
 0x147   : > { %v1562_v11 = vadd.f32 %v3019_v21, %v1384_v48 }
 0x148   : > { %v2978_v57 = vpop.f32.mrf.mxu0  ;;  %v1530_v27 = vpop.f32.mrf.mxu1 }
 0x14a   : > { %v1362_v7 = vpop.f32.mrf.mxu0 }
 0x14c   : > { %v3022_v45 = vpop.f32.mrf.mxu1 }
 0x14e   : > { %v2981_v0 = vpop.f32.mrf.mxu0  ;;  %v4471_v58 = vpop.f32.mrf.mxu1 }
 0x14f   : > { %4615 = vst [vmem:[#allocation6_spill] sm:$0xff] %v4471_v58  ;;  %v1251_v58 = vadd.f32 %v1212_v54, %v1121_v34 }
 0x150   : > { %v4473_v43 = vpop.f32.mrf.mxu0 }
 0x151   : > { %4616 = vst [vmem:[#allocation7_spill] sm:$0xff] %v4473_v43  ;;  %v937_v43 = vadd.f32 %v2846_v33, %v2802_v16  ;;  %v1381_v28 = vadd.f32 %v1342_v38, %v1251_v58  ;;  %v942_v16 = vadd.f32 %v4620_v47, %v4619_v4 }
 0x152   : > { %v4475_v37 = vpop.f32.mrf.mxu1 }
 0x153   : > { %4617 = vst [vmem:[#allocation8_spill] sm:$0xff] %v4475_v37  ;;  %v1123_v37 = vadd.f32 %v1092_v1, %v922_v35  ;;  %v1126_v25 = vadd.f32 %v2890_v40, %v937_v43  ;;  %v1127_v39 = vadd.f32 %v1112_v42, %v942_v16  ;;  %v4491_v42 = vld [vmem:[%s4558_s4] ss:$0 sm:$0xff] }
 0x154   : > { %v4477_v36 = vpop.f32.mrf.mxu1 }
 0x155   : > { %4618 = vst [vmem:[#allocation9_spill] sm:$0xff] %v4477_v36  ;;  %v932_v36 = vadd.f32 %v931_v31, %v826_v14  ;;  %v1253_v63 = vadd.f32 %v1222_v9, %v1123_v37  ;;  %v1256_v33 = vadd.f32 %v2934_v59, %v1126_v25  ;;  %v1559_v14 = vadd.f32 %v1520_v49, %v1381_v28 }
 0x156   : > { %v1257_v28 = vadd.f32 %v4622_v60, %v1127_v39  ;;  %v4623_v58 = vld [vmem:[#allocation6_spill] sm:$0xff] }
 0x157   : > { %v1125_v22 = vadd.f32 %v1102_v62, %v932_v36  ;;  %v1383_v31 = vadd.f32 %v1352_v52, %v1253_v63  ;;  %v1386_v40 = vadd.f32 %v2978_v57, %v1256_v33  ;;  %v4621_v62 = vld [vmem:[#allocation3_spill] sm:$0xff] }
 0x158   : > { %v1258_v18 = vadd.f32 %v4621_v62, %v1128_v30 }
 0x159   : > { %v1255_v1 = vadd.f32 %v1232_v3, %v1125_v22  ;;  %v1561_v25 = vadd.f32 %v1530_v27, %v1383_v31  ;;  %v1564_v2 = vadd.f32 %v3022_v45, %v1386_v40  ;;  %v4499_v45 = vld [vmem:[%s4559_s5] ss:$0 sm:$0xff] }
 0x15a   : > { %v1388_v49 = vadd.f32 %v2981_v0, %v1258_v18 }
 0x15b   : > { %v1385_v38 = vadd.f32 %v1362_v7, %v1255_v1 }
 0x15d   : > { %v1563_v43 = vadd.f32 %v4623_v58, %v1385_v38 }
 0x164   : > { %v3060_v10 = vpop.f32.mrf.mxu0 }
 0x165   : > { %v1690_v54 = vadd.f32 %v3060_v10, %v1560_v26  ;;  %v4624_v10 = vld [vmem:[#allocation7_spill] sm:$0xff] }
 0x166   : > { %v1650_v56 = vpop.f32.mrf.mxu0  ;;  %v1387_v27 = vadd.f32 %v4624_v10, %v1257_v28 }
 0x167   : > { %v3104_v41 = vpop.f32.mrf.mxu1  ;;  %v1689_v19 = vadd.f32 %v1650_v56, %v1559_v14 }
 0x168   : > { %v1820_v59 = vadd.f32 %v3104_v41, %v1690_v54 }
 0x169   : > { %v1780_v32 = vpop.f32.mrf.mxu1 }
 0x16a   : > { %v3063_v15 = vpop.f32.mrf.mxu0  ;;  %v1819_v52 = vadd.f32 %v1780_v32, %v1689_v19 }
 0x16b   : > { %v3107_v29 = vpop.f32.mrf.mxu1  ;;  %v1692_v20 = vadd.f32 %v3063_v15, %v1562_v11  ;;  %v4625_v15 = vld [vmem:[#allocation8_spill] sm:$0xff] }
 0x16c   : > { %v1660_v44 = vpop.f32.mrf.mxu0  ;;  %v1566_v6 = vadd.f32 %v4625_v15, %v1388_v49 }
 0x16d   : > { %v1790_v5 = vpop.f32.mrf.mxu1  ;;  %v1691_v21 = vadd.f32 %v1660_v44, %v1561_v25  ;;  %v1822_v56 = vadd.f32 %v3107_v29, %v1692_v20  ;;  %v4626_v29 = vld [vmem:[#allocation9_spill] sm:$0xff] }
 0x16e   : > { %v3066_v24 = vpop.f32.mrf.mxu0  ;;  %v1565_v35 = vadd.f32 %v4626_v29, %v1387_v27 }
 0x16f   : > { %v1694_v37 = vadd.f32 %v3066_v24, %v1564_v2  ;;  %v1821_v55 = vadd.f32 %v1790_v5, %v1691_v21 }
 0x170   : > { %v1670_v50 = vpop.f32.mrf.mxu0 }
 0x171   : > { %v1693_v32 = vadd.f32 %v1670_v50, %v1563_v43 }
 0x172   : > { %v3110_v12 = vpop.f32.mrf.mxu1 }
 0x173   : > { %v1824_v61 = vadd.f32 %v3110_v12, %v1694_v37 }
 0x174   : > { %v3069_v51 = vpop.f32.mrf.mxu0  ;;  %v1800_v9 = vpop.f32.mrf.mxu1 }
 0x175   : > { %v1696_v46 = vadd.f32 %v3069_v51, %v1566_v6  ;;  %v1823_v26 = vadd.f32 %v1800_v9, %v1693_v32 }
 0x176   : > { %v1680_v8 = vpop.f32.mrf.mxu0 }
 0x177   : > { %v1695_v48 = vadd.f32 %v1680_v8, %v1565_v35 }
 0x178   : > { %v3113_v57 = vpop.f32.mrf.mxu1 }
 0x179   : > { %v1826_v51 = vadd.f32 %v3113_v57, %v1696_v46 }
 0x17a   : > { %v1810_v13 = vpop.f32.mrf.mxu1 }
 0x17b   : > { %v1825_v11 = vadd.f32 %v1810_v13, %v1695_v48 }
 0x18a   : > { %v3148_v3 = vpop.f32.mrf.mxu0 }
 0x18b   : > { %v1956_v7 = vadd.f32 %v3148_v3, %v1820_v59 }
 0x18c   : > { %v1916_v0 = vpop.f32.mrf.mxu0 }
 0x18d   : > { %v1971_v36 = vmul.f32 %v4491_v42, %v1956_v7  ;;  %v1955_v41 = vadd.f32 %v1916_v0, %v1819_v52 }
 0x18e   : > { %v3151_v44 = vpop.f32.mrf.mxu0 }
 0x18f   : > { %v1986_v17 = vadd.f32 %v4499_v45, %v1971_v36  ;;  %v1970_v34 = vmul.f32 %v4491_v42, %v1955_v41  ;;  %v1958_v24 = vadd.f32 %v3151_v44, %v1822_v56 }
 0x190   : > { %v1926_v5 = vpop.f32.mrf.mxu0 }
 0x191   : > { %v1994_v50 = vmax.f32 %v1986_v17, 0.0  ;;  %v1985_v23 = vadd.f32 %v4499_v45, %v1970_v34  ;;  %v1973_v53 = vmul.f32 %v4491_v42, %v1958_v24  ;;  %v1957_v22 = vadd.f32 %v1926_v5, %v1821_v55  ;;  %v3192_v63 = vpop.f32.mrf.mxu1 }
 0x192   : > { %2131 = vst [vmem:[%s4508_s26 + $0x8] sm:$0xff] %v3192_v63  ;;  %v3154_v12 = vpop.f32.mrf.mxu0 }
 0x193   : > { %2002 = vst [vmem:[%s4514_s11 + $0x8] sm:$0xff] %v1994_v50  ;;  %v1993_v4 = vmax.f32 %v1985_v23, 0.0  ;;  %v1988_v47 = vadd.f32 %v4499_v45, %v1973_v53  ;;  %v1972_v16 = vmul.f32 %v4491_v42, %v1957_v22  ;;  %v1960_v33 = vadd.f32 %v3154_v12, %v1824_v61  ;;  %v2091_v30 = vpop.f32.mrf.mxu1 }
 0x194   : > { %2130 = vst [vmem:[%s4508_s26] sm:$0xff] %v2091_v30  ;;  %v1936_v14 = vpop.f32.mrf.mxu0 }
 0x195   : > { %2001 = vst [vmem:[%s4514_s11] sm:$0xff] %v1993_v4  ;;  %v1996_v31 = vmax.f32 %v1988_v47, 0.0  ;;  %v1987_v54 = vadd.f32 %v4499_v45, %v1972_v16  ;;  %v1975_v1 = vmul.f32 %v4491_v42, %v1960_v33  ;;  %v1959_v39 = vadd.f32 %v1936_v14, %v1823_v26  ;;  %v3195_v40 = vpop.f32.mrf.mxu1 }
 0x196   : > { %2133 = vst [vmem:[%s4508_s26 + $0x18] sm:$0xff] %v3195_v40  ;;  %v3157_v19 = vpop.f32.mrf.mxu0 }
 0x197   : > { %2004 = vst [vmem:[%s4514_s11 + $0x18] sm:$0xff] %v1996_v31  ;;  %v1995_v9 = vmax.f32 %v1987_v54, 0.0  ;;  %v1990_v62 = vadd.f32 %v4499_v45, %v1975_v1  ;;  %v1974_v18 = vmul.f32 %v4491_v42, %v1959_v39  ;;  %v1962_v38 = vadd.f32 %v3157_v19, %v1826_v51  ;;  %v2101_v8 = vpop.f32.mrf.mxu1 }
 0x198   : > { %2132 = vst [vmem:[%s4508_s26 + $0x10] sm:$0xff] %v2101_v8  ;;  %v1946_v25 = vpop.f32.mrf.mxu0 }
 0x199   : > { %2003 = vst [vmem:[%s4514_s11 + $0x10] sm:$0xff] %v1995_v9  ;;  %v1998_v59 = vmax.f32 %v1990_v62, 0.0  ;;  %v1989_v20 = vadd.f32 %v4499_v45, %v1974_v18  ;;  %v1977_v60 = vmul.f32 %v4491_v42, %v1962_v38  ;;  %v1961_v28 = vadd.f32 %v1946_v25, %v1825_v11  ;;  %v3198_v2 = vpop.f32.mrf.mxu1 }
 0x19a   : > { %2135 = vst [vmem:[%s4508_s26 + $0x28] sm:$0xff] %v3198_v2 }
 0x19b   : > { %2006 = vst [vmem:[%s4514_s11 + $0x28] sm:$0xff] %v1998_v59  ;;  %v1997_v49 = vmax.f32 %v1989_v20, 0.0  ;;  %v1992_v3 = vadd.f32 %v4499_v45, %v1977_v60  ;;  %v1976_v52 = vmul.f32 %v4491_v42, %v1961_v28  ;;  %v2111_v21 = vpop.f32.mrf.mxu1 }
 0x19c   : > { %2134 = vst [vmem:[%s4508_s26 + $0x20] sm:$0xff] %v2111_v21 }
 0x19d   : > { %2005 = vst [vmem:[%s4514_s11 + $0x20] sm:$0xff] %v1997_v49  ;;  %v2000_v57 = vmax.f32 %v1992_v3, 0.0  ;;  %v1991_v7 = vadd.f32 %v4499_v45, %v1976_v52  ;;  %v3201_v58 = vpop.f32.mrf.mxu1 }
 0x19e   : > { %2137 = vst [vmem:[%s4508_s26 + $0x38] sm:$0xff] %v3201_v58 }
 0x19f   : > { %2008 = vst [vmem:[%s4514_s11 + $0x38] sm:$0xff] %v2000_v57  ;;  %v1999_v43 = vmax.f32 %v1991_v7, 0.0  ;;  %v2121_v10 = vpop.f32.mrf.mxu1 }
 0x1a0   : > { %2136 = vst [vmem:[%s4508_s26 + $0x30] sm:$0xff] %v2121_v10 }
 0x1a1   : > { %2007 = vst [vmem:[%s4514_s11 + $0x30] sm:$0xff] %v1999_v43 }
 0x1a2 PF: > { %s19_s29 = sadd.s32 1, %s3250_s29   ;;  %s4627_s27 = smov %s3246_s28 }
 0x1a3   : > { %p16_p6 = scmp.ge.s32.totalorder %s19_s29, 4   ;;  %s4628_s28 = smov %s4630_s30 }
 0x1a5   :  { %18 = sbr.rel (!%p16_p6) target bundleno = 2 (0x2), region = 110 }

// kernel: a_call__.5
= control target key start
LH: loop header
LB: loop body
LE: loop exit
PB: predicated region body
PF: predicated region fallthrough
CT: control target
= control target key end

     0   :  { %s2505_s12 = smov 0   ;;  %s2507_s13 = smov 0   ;;  %s3254_s0 = inlined_call_operand.vmem [shape: f32[2,10,10,128], index: 0, kind: input, shape index: {}]   ;;  %s3255_s1 = inlined_call_operand.vmem [shape: f32[3,3,128,128], index: 1, kind: input, shape index: {}]   ;;  %s3256_s2 = inlined_call_operand.vmem [shape: f32[2,8,8,128], index: 2, kind: input, shape index: {}]   ;;  %s3257_s3 = inlined_call_operand.vmem [shape: f32[2,8,8,128], index: 3, kind: output, shape index: {}]  }
   0x1   :  { %s2509_s14 = smov 0  }
   0x2 LB: > { %s25_s15 = sadd.s32 1, %s2479_s13  ;;  %p1654_p0 = scmp.ge.s32.totalorder %s2483_s14, 1  ;;  %s2483_s14 = sphi %s2509_s14, %s13_s14   ;;  %s2479_s13 = sphi %s2507_s13, %s3271_s13   ;;  %s2475_s12 = sphi %s2505_s12, %s3270_s12  }
   0x3   : > { %p27_p1 = scmp.ge.s32.totalorder %s25_s15, 2  ;;  %p175_p2 = scmp.lt.s32.totalorder %s2483_s14, 3 }
   0x5   : > { %s3273_s15 = smov (%p27_p1, %s25_s15), 0  ;;  %p176_p3 = pnand %p1654_p0, %p175_p2 }
   0x7   : > { %179 = sbr.rel (%p176_p3) target bundleno = 411 (0x19b), region = 32 }
   0xc   : > { %v1675_v0 = vld [vmem:[%s3255_s1 + $0xf8] sm:$0xff]  ;;  %v1674_v2 = vld [vmem:[%s3255_s1 + $0xf0] sm:$0xff]  ;;  %v1673_v4 = vld [vmem:[%s3255_s1 + $0xe8] sm:$0xff]  ;;  %p214_p4 = scmp.lt.s32.totalorder %s2475_s12, 1  ;;  %vm291_vm0 = vcmask 1046528   ;;  %vm551_vm1 = vcmask 1045504  }
   0xd   : > { %v274_v1 = vld [vmem:[%s3255_s1 + $0x78] sm:$0xff]  ;;  %2008 = vmatprep.subr.mxu0 %v1675_v0  ;;  %v273_v3 = vld [vmem:[%s3255_s1 + $0x70] sm:$0xff]  ;;  %v272_v5 = vld [vmem:[%s3255_s1 + $0x68] sm:$0xff] }
   0xe   : > { %2052 = vmatprep.subr.mxu1 %v274_v1  ;;  %2009 = vmatpush3.msra.mxu0 %v1675_v0  ;;  %v1672_v6 = vld [vmem:[%s3255_s1 + $0xe0] sm:$0xff]  ;;  %v1671_v8 = vld [vmem:[%s3255_s1 + $0xd8] sm:$0xff]  ;;  %v1670_v10 = vld [vmem:[%s3255_s1 + $0xd0] sm:$0xff]  ;;  %s3275_s12 = smov (!%p214_p4, %s2475_s12), 1 }
   0xf   : > { %2053 = vmatpush3.msra.mxu1 %v274_v1  ;;  %2010 = vmatprep.subr.mxu0 %v1674_v2  ;;  %v271_v7 = vld [vmem:[%s3255_s1 + $0x60] sm:$0xff]  ;;  %v270_v9 = vld [vmem:[%s3255_s1 + $0x58] sm:$0xff]  ;;  %v269_v11 = vld [vmem:[%s3255_s1 + $0x50] sm:$0xff]  ;;  %s2436_s29 = smul.u32 160, %s3275_s12  ;;  %s1790_s7 = sshll.u32 %s3275_s12, 6 }
  0x10   : > { %2054 = vmatprep.subr.mxu1 %v273_v3  ;;  %2011 = vmatpush3.msra.mxu0 %v1674_v2  ;;  %v1669_v12 = vld [vmem:[%s3255_s1 + $0xc8] sm:$0xff]  ;;  %v1668_v14 = vld [vmem:[%s3255_s1 + $0xc0] sm:$0xff]  ;;  %v1667_v16 = vld [vmem:[%s3255_s1 + $0xb8] sm:$0xff]  ;;  %s3215_s10 = scalar_lea.vmem %s3256_s2, %s1790_s7  ;;  %s3228_s18 = scalar_lea.vmem %s3257_s3, %s1790_s7 }
  0x11   : > { %2055 = vmatpush3.msra.mxu1 %v273_v3  ;;  %2012 = vmatprep.subr.mxu0 %v1673_v4  ;;  %v268_v13 = vld [vmem:[%s3255_s1 + $0x48] sm:$0xff]  ;;  %v267_v15 = vld [vmem:[%s3255_s1 + $0x40] sm:$0xff]  ;;  %v266_v17 = vld [vmem:[%s3255_s1 + $0x38] sm:$0xff]  ;;  %s2599_s17 = scalar_lea.vmem %s3254_s0, %s2436_s29 }
  0x12   : > { %2056 = vmatprep.subr.mxu1 %v272_v5  ;;  %2013 = vmatpush3.msra.mxu0 %v1673_v4  ;;  %v1666_v18 = vld [vmem:[%s3255_s1 + $0xb0] sm:$0xff]  ;;  %v1665_v20 = vld [vmem:[%s3255_s1 + $0xa8] sm:$0xff]  ;;  %v1664_v22 = vld [vmem:[%s3255_s1 + $0xa0] sm:$0xff] }
  0x13   : > { %2057 = vmatpush3.msra.mxu1 %v272_v5  ;;  %2014 = vmatprep.subr.mxu0 %v1672_v6  ;;  %v265_v19 = vld [vmem:[%s3255_s1 + $0x30] sm:$0xff]  ;;  %v264_v21 = vld [vmem:[%s3255_s1 + $0x28] sm:$0xff]  ;;  %v263_v23 = vld [vmem:[%s3255_s1 + $0x20] sm:$0xff] }
  0x14   : > { %2058 = vmatprep.subr.mxu1 %v271_v7  ;;  %2015 = vmatpush3.msra.mxu0 %v1672_v6  ;;  %v1663_v24 = vld [vmem:[%s3255_s1 + $0x98] sm:$0xff]  ;;  %v2614_v26 = vld [vmem:[%s2599_s17] sm:$0xff]  ;;  %v2617_v27 = vld [vmem:[%s2599_s17 + $0x8] sm:$0x3] }
  0x15   : > { %2059 = vmatpush3.msra.mxu1 %v271_v7  ;;  %2016 = vmatprep.subr.mxu0 %v1671_v8  ;;  %v262_v25 = vld [vmem:[%s3255_s1 + $0x18] sm:$0xff]  ;;  %v1662_v28 = vld [vmem:[%s3255_s1 + $0x90] sm:$0xff]  ;;  %v292_v32 = vrot.slane %v2614_v26, 1  ;;  %v293_v33 = vrot.slane %v2617_v27, 1  ;;  %v1661_v34 = vld [vmem:[%s3255_s1 + $0x88] sm:$0xff] }
  0x16   : > { %2060 = vmatprep.subr.mxu1 %v270_v9  ;;  %2017 = vmatpush3.msra.mxu0 %v1671_v8  ;;  %v261_v29 = vld [vmem:[%s3255_s1 + $0x10] sm:$0xff]  ;;  %v2629_v31 = vld [vmem:[%s2599_s17 + $0x18] sm:$0x3]  ;;  %v260_v35 = vld [vmem:[%s3255_s1 + $0x8] sm:$0xff] }
  0x17   : > { %2061 = vmatpush3.msra.mxu1 %v270_v9  ;;  %2018 = vmatprep.subr.mxu0 %v1670_v10  ;;  %v2626_v30 = vld [vmem:[%s2599_s17 + $0x10] sm:$0xff]  ;;  %v296_v37 = vrot.slane %v2629_v31, 1  ;;  %v1660_v38 = vld [vmem:[%s3255_s1 + $0x80] sm:$0xff]  ;;  %v294_v40 = vsel %vm291_vm0, %v292_v32, %v293_v33  ;;  %v1691_v42 = vld [vmem:[%s3255_s1 + $0x178] sm:$0xff] }
  0x18   : > { %2062 = vmatprep.subr.mxu1 %v269_v11  ;;  %2019 = vmatpush3.msra.mxu0 %v1670_v10  ;;  %v295_v36 = vrot.slane %v2626_v30, 1  ;;  %v259_v39 = vld [vmem:[%s3255_s1] sm:$0xff]  ;;  %v1707_v43 = vld [vmem:[%s3255_s1 + $0x1f8] sm:$0xff]  ;;  %v1690_v44 = vld [vmem:[%s3255_s1 + $0x170] sm:$0xff] }
  0x19   : > { %2063 = vmatpush3.msra.mxu1 %v269_v11  ;;  %2020 = vmatprep.subr.mxu0 %v1669_v12  ;;  %v1706_v45 = vld [vmem:[%s3255_s1 + $0x1f0] sm:$0xff]  ;;  %v1689_v46 = vld [vmem:[%s3255_s1 + $0x168] sm:$0xff]  ;;  %v1688_v48 = vld [vmem:[%s3255_s1 + $0x160] sm:$0xff] }
  0x1a   : > { %2064 = vmatprep.subr.mxu1 %v268_v13  ;;  %2021 = vmatpush3.msra.mxu0 %v1669_v12  ;;  %v2649_v41 = vsel %vm291_vm0, %v295_v36, %v296_v37  ;;  %v1705_v47 = vld [vmem:[%s3255_s1 + $0x1e8] sm:$0xff]  ;;  %v1704_v49 = vld [vmem:[%s3255_s1 + $0x1e0] sm:$0xff]  ;;  %v1687_v50 = vld [vmem:[%s3255_s1 + $0x158] sm:$0xff] }
  0x1b   : > { %2065 = vmatpush3.msra.mxu1 %v268_v13  ;;  %2022 = vmatprep.subr.mxu0 %v1668_v14  ;;  %v1703_v51 = vld [vmem:[%s3255_s1 + $0x1d8] sm:$0xff]  ;;  %v2685_v52 = vld [vmem:[%s2599_s17 + $0x80] sm:$0xff]  ;;  %v1686_v54 = vld [vmem:[%s3255_s1 + $0x150] sm:$0xff] }
  0x1c   : > { %2066 = vmatprep.subr.mxu1 %v267_v15  ;;  %2023 = vmatpush3.msra.mxu0 %v1668_v14  ;;  %v846_v53 = vrot.slane %v2685_v52, 1  ;;  %v1702_v55 = vld [vmem:[%s3255_s1 + $0x1d0] sm:$0xff]  ;;  %v2695_v56 = vld [vmem:[%s2599_s17 + $0x88] sm:$0x3]  ;;  %v2698_v57 = vld [vmem:[%s2599_s17 + $0x20] sm:$0xff] }
  0x1d   : > { %2067 = vmatpush3.msra.mxu1 %v267_v15  ;;  %2024 = vmatprep.subr.mxu0 %v1667_v16  ;;  %v2701_v58 = vld [vmem:[%s2599_s17 + $0x28] sm:$0x3]  ;;  %v847_v59 = vrot.slane %v2695_v56, 1  ;;  %v2711_v62 = vld [vmem:[%s2599_s17 + $0x30] sm:$0xff]  ;;  %v2714_v63 = vld [vmem:[%s2599_s17 + $0x38] sm:$0x3] }
  0x1e   : > { %2068 = vmatprep.subr.mxu1 %v266_v17  ;;  %2025 = vmatpush3.msra.mxu0 %v1667_v16  ;;  %v1685_v60 = vld [vmem:[%s3255_s1 + $0x148] sm:$0xff]  ;;  %v1684_v1 = vld [vmem:[%s3255_s1 + $0x140] sm:$0xff]  ;;  %v298_v3 = vrot.slane %v2698_v57, 1  ;;  %v299_v4 = vrot.slane %v2701_v58, 1  ;;  %v1683_v5 = vld [vmem:[%s3255_s1 + $0x138] sm:$0xff]  ;;  %v301_v7 = vrot.slane %v2711_v62, 1 }
  0x1f   : > { %2069 = vmatpush3.msra.mxu1 %v266_v17  ;;  %2026 = vmatprep.subr.mxu0 %v1666_v18  ;;  %v1701_v61 = vld [vmem:[%s3255_s1 + $0x1c8] sm:$0xff]  ;;  %v2717_v0 = vsel %vm291_vm0, %v846_v53, %v847_v59  ;;  %v1700_v2 = vld [vmem:[%s3255_s1 + $0x1c0] sm:$0xff]  ;;  %v1699_v6 = vld [vmem:[%s3255_s1 + $0x1b8] sm:$0xff]  ;;  %v302_v8 = vrot.slane %v2714_v63, 1  ;;  %v553_v53 = vrot.slane %v2617_v27, 2 }
  0x20   : > { %2070 = vmatprep.subr.mxu1 %v265_v19  ;;  %2027 = vmatpush3.msra.mxu0 %v1666_v18  ;;  %v2736_v9 = vld [vmem:[%s2599_s17 + $0x40] sm:$0xff]  ;;  %v2739_v10 = vld [vmem:[%s2599_s17 + $0x48] sm:$0x3]  ;;  %v2742_v11 = vsel %vm291_vm0, %v298_v3, %v299_v4  ;;  %v1682_v12 = vld [vmem:[%s3255_s1 + $0x130] sm:$0xff]  ;;  %v558_v4 = vrot.slane %v2698_v57, 2 }
  0x21   : > { %2071 = vmatpush3.msra.mxu1 %v265_v19  ;;  %2028 = vmatprep.subr.mxu0 %v1665_v20  ;;  %v1698_v13 = vld [vmem:[%s3255_s1 + $0x1b0] sm:$0xff]  ;;  %v304_v15 = vrot.slane %v2736_v9, 1  ;;  %v2755_v16 = vld [vmem:[%s2599_s17 + $0x58] sm:$0x3]  ;;  %v2764_v19 = vsel %vm291_vm0, %v301_v7, %v302_v8  ;;  %v2785_v32 = vld [vmem:[%s2599_s17 + $0x60] sm:$0xff]  ;;  %v561_v8 = vrot.slane %v2711_v62, 2 }
  0x22   : > { %2072 = vmatprep.subr.mxu1 %v264_v21  ;;  %2029 = vmatpush3.msra.mxu0 %v1665_v20  ;;  %v2751_v14 = vld [vmem:[%s2599_s17 + $0x50] sm:$0xff]  ;;  %v2761_v18 = vld [vmem:[%s2599_s17 + $0x98] sm:$0x3]  ;;  %v305_v20 = vrot.slane %v2739_v10, 1  ;;  %v2788_v33 = vld [vmem:[%s2599_s17 + $0x68] sm:$0x3] }
  0x23   : > { %2073 = vmatpush3.msra.mxu1 %v264_v21  ;;  %2030 = vmatprep.subr.mxu0 %v1664_v22  ;;  %v2758_v17 = vld [vmem:[%s2599_s17 + $0x90] sm:$0xff]  ;;  %v1696_v36 = vld [vmem:[%s3255_s1 + $0x1a0] sm:$0xff]  ;;  %v1693_v59 = vld [vmem:[%s3255_s1 + $0x188] sm:$0xff]  ;;  %v1381_v27 = vrot.slane %v2761_v18, 2 }
  0x24   : > { %2074 = vmatprep.subr.mxu1 %v263_v23  ;;  %2031 = vmatpush3.msra.mxu0 %v1664_v22  ;;  %v1246_v21 = vrot.slane %v2758_v17, 1  ;;  %v1247_v22 = vrot.slane %v2761_v18, 1  ;;  %v2800_v37 = vld [vmem:[%s2599_s17 + $0x70] sm:$0xff]  ;;  %v1739_v7 = vld [vmem:[%s3255_s1 + $0x2f8] sm:$0xff]  ;;  %v1737_v18 = vld [vmem:[%s3255_s1 + $0x2e8] sm:$0xff] }
  0x25   : > { %2075 = vmatpush3.msra.mxu1 %v263_v23  ;;  %2032 = vmatprep.subr.mxu0 %v1663_v24  ;;  %v1681_v23 = vld [vmem:[%s3255_s1 + $0x128] sm:$0xff] }
  0x26   : > { %2076 = vmatprep.subr.mxu1 %v262_v25  ;;  %2033 = vmatpush3.msra.mxu0 %v1663_v24  ;;  %v1697_v24 = vld [vmem:[%s3255_s1 + $0x1a8] sm:$0xff] }
  0x27   : > { %2077 = vmatpush3.msra.mxu1 %v262_v25  ;;  %2034 = vmatprep.subr.mxu0 %v1662_v28  ;;  %v307_v25 = vrot.slane %v2751_v14, 1 }
  0x28   : > { %2078 = vmatprep.subr.mxu1 %v261_v29  ;;  %2035 = vmatpush3.msra.mxu0 %v1662_v28  ;;  %v308_v28 = vrot.slane %v2755_v16, 1 }
  0x29   : > { %2079 = vmatpush3.msra.mxu1 %v261_v29  ;;  %2036 = vmatprep.subr.mxu0 %v1661_v34  ;;  %v2780_v29 = vsel %vm291_vm0, %v1246_v21, %v1247_v22  ;;  %v565_v21 = vrot.slane %v2739_v10, 2  ;;  %v567_v22 = vrot.slane %v2751_v14, 2  ;;  %v1736_v10 = vld [vmem:[%s3255_s1 + $0x2e0] sm:$0xff] }
  0x2a   : > { %2080 = vmatprep.subr.mxu1 %v260_v35  ;;  %2037 = vmatpush3.msra.mxu0 %v1661_v34  ;;  %v2791_v34 = vsel %vm291_vm0, %v304_v15, %v305_v20  ;;  %v564_v20 = vrot.slane %v2736_v9, 2 }
  0x2b   : > { %2081 = vmatpush3.msra.mxu1 %v260_v35  ;;  %2038 = vmatprep.subr.mxu0 %v1660_v38  ;;  %v1680_v35 = vld [vmem:[%s3255_s1 + $0x120] sm:$0xff] }
  0x2c   : > { %2082 = vmatprep.subr.mxu1 %v259_v39  ;;  %2039 = vmatpush3.msra.mxu0 %v1660_v38  ;;  %v2803_v38 = vld [vmem:[%s2599_s17 + $0x78] sm:$0x3] }
  0x2d   : > { %2040 = vmatprep.mubr.f32.mxu0 %v294_v40  ;;  %2083 = vmatpush3.msra.mxu1 %v259_v39  ;;  %v2806_v39 = vsel %vm291_vm0, %v307_v25, %v308_v28  ;;  %v310_v40 = vrot.slane %v2785_v32, 1  ;;  %v2908_v25 = vsel %vm551_vm1, %v564_v20, %v565_v21  ;;  %v1719_v28 = vld [vmem:[%s3255_s1 + $0x258] sm:$0xff]  ;;  %v1752_v20 = vld [vmem:[%s3255_s1 + $0x360] sm:$0xff] }
  0x2e   : > { %2084 = vmatprep.mubr.f32.mxu1 %v2614_v26  ;;  %2041 = vmatmul.mubr.f32.vlgmr.msra.gmra.mxu0 %v2649_v41  ;;  %v1768_v21 = vld [vmem:[%s3255_s1 + $0x3e0] sm:$0xff] }
  0x2f   : > { %2085 = vmatmul.mubr.f32.vlgmr.msra.gmra.mxu1 %v2626_v30  ;;  %2096 = vmatprep.subr.mxu0 %v1691_v42 }
  0x30   : > { %2140 = vmatprep.subr.mxu1 %v1707_v43  ;;  %2097 = vmatpush3.msra.mxu0 %v1691_v42  ;;  %v311_v42 = vrot.slane %v2788_v33, 1 }
  0x31   : > { %2141 = vmatpush3.msra.mxu1 %v1707_v43  ;;  %2098 = vmatprep.subr.mxu0 %v1690_v44  ;;  %v1679_v43 = vld [vmem:[%s3255_s1 + $0x118] sm:$0xff] }
  0x32   : > { %2142 = vmatprep.subr.mxu1 %v1706_v45  ;;  %2099 = vmatpush3.msra.mxu0 %v1690_v44  ;;  %v1695_v44 = vld [vmem:[%s3255_s1 + $0x198] sm:$0xff] }
  0x33   : > { %2143 = vmatpush3.msra.mxu1 %v1706_v45  ;;  %2100 = vmatprep.subr.mxu0 %v1689_v46  ;;  %v313_v45 = vrot.slane %v2800_v37, 1 }
  0x34   : > { %2144 = vmatprep.subr.mxu1 %v1705_v47  ;;  %2101 = vmatpush3.msra.mxu0 %v1689_v46  ;;  %v314_v46 = vrot.slane %v2803_v38, 1 }
  0x35   : > { %2145 = vmatpush3.msra.mxu1 %v1705_v47  ;;  %2102 = vmatprep.subr.mxu0 %v1688_v48  ;;  %v2823_v47 = vsel %vm291_vm0, %v310_v40, %v311_v42  ;;  %v571_v40 = vrot.slane %v2788_v33, 2  ;;  %v573_v42 = vrot.slane %v2800_v37, 2  ;;  %v1734_v33 = vld [vmem:[%s3255_s1 + $0x2d0] sm:$0xff] }
  0x36   : > { %2146 = vmatprep.subr.mxu1 %v1704_v49  ;;  %2103 = vmatpush3.msra.mxu0 %v1688_v48  ;;  %v1678_v48 = vld [vmem:[%s3255_s1 + $0x110] sm:$0xff] }
  0x37   : > { %2147 = vmatpush3.msra.mxu1 %v1704_v49  ;;  %2104 = vmatprep.subr.mxu0 %v1687_v50  ;;  %v1694_v49 = vld [vmem:[%s3255_s1 + $0x190] sm:$0xff] }
  0x38   : > { %2148 = vmatprep.subr.mxu1 %v1703_v51  ;;  %2105 = vmatpush3.msra.mxu0 %v1687_v50  ;;  %v2832_v50 = vsel %vm291_vm0, %v313_v45, %v314_v46  ;;  %v1717_v46 = vld [vmem:[%s3255_s1 + $0x248] sm:$0xff] }
  0x39   : > { %2149 = vmatpush3.msra.mxu1 %v1703_v51  ;;  %2106 = vmatprep.subr.mxu0 %v1686_v54  ;;  %v552_v51 = vrot.slane %v2614_v26, 2  ;;  %v555_v26 = vrot.slane %v2626_v30, 2 }
  0x3a   : > { %2150 = vmatprep.subr.mxu1 %v1702_v55  ;;  %2107 = vmatpush3.msra.mxu0 %v1686_v54  ;;  %v1380_v54 = vrot.slane %v2758_v17, 2 }
  0x3b   : > { %2151 = vmatpush3.msra.mxu1 %v1702_v55  ;;  %2108 = vmatprep.subr.mxu0 %v1685_v60  ;;  %v1677_v55 = vld [vmem:[%s3255_s1 + $0x108] sm:$0xff] }
  0x3c   : > { %2152 = vmatprep.subr.mxu1 %v1701_v61  ;;  %2109 = vmatpush3.msra.mxu0 %v1685_v60  ;;  %v556_v60 = vrot.slane %v2629_v31, 2  ;;  %v554_v31 = vsel %vm551_vm1, %v552_v51, %v553_v53  ;;  %v1732_v51 = vld [vmem:[%s3255_s1 + $0x2c0] sm:$0xff]  ;;  %v1715_v53 = vld [vmem:[%s3255_s1 + $0x238] sm:$0xff] }
  0x3d   : > { %2153 = vmatpush3.msra.mxu1 %v1701_v61  ;;  %2110 = vmatprep.subr.mxu0 %v1684_v1  ;;  %v1676_v61 = vld [vmem:[%s3255_s1 + $0x100] sm:$0xff] }
  0x3e   : > { %2154 = vmatprep.subr.mxu1 %v1700_v2  ;;  %2111 = vmatpush3.msra.mxu0 %v1684_v1  ;;  %v1692_v1 = vld [vmem:[%s3255_s1 + $0x180] sm:$0xff]  ;;  %v2861_v3 = vsel %vm551_vm1, %v555_v26, %v556_v60  ;;  %v1713_v60 = vld [vmem:[%s3255_s1 + $0x228] sm:$0xff] }
  0x3f   : > { %2155 = vmatpush3.msra.mxu1 %v1700_v2  ;;  %2112 = vmatprep.subr.mxu0 %v1683_v5  ;;  %v2858_v2 = vsel %vm551_vm1, %v1380_v54, %v1381_v27  ;;  %v1731_v54 = vld [vmem:[%s3255_s1 + $0x2b8] sm:$0xff]  ;;  %v1729_v26 = vld [vmem:[%s3255_s1 + $0x2a8] sm:$0xff]  ;;  %v1712_v27 = vld [vmem:[%s3255_s1 + $0x220] sm:$0xff] }
  0x40   : > { %2156 = vmatprep.subr.mxu1 %v1699_v6  ;;  %2113 = vmatpush3.msra.mxu0 %v1683_v5  ;;  %v559_v5 = vrot.slane %v2701_v58, 2  ;;  %v1722_v58 = vld [vmem:[%s3255_s1 + $0x270] sm:$0xff] }
  0x41   : > { %2157 = vmatpush3.msra.mxu1 %v1699_v6  ;;  %2043 = vmatprep.mubr.f32.mxu0 %v2742_v11  ;;  %v1723_v6 = vld [vmem:[%s3255_s1 + $0x278] sm:$0xff] }
  0x42   : > { %2087 = vmatprep.mubr.f32.mxu1 %v2698_v57  ;;  %2114 = vmatprep.subr.mxu0 %v1682_v12  ;;  %v2883_v15 = vsel %vm551_vm1, %v558_v4, %v559_v5  ;;  %v1710_v4 = vld [vmem:[%s3255_s1 + $0x210] sm:$0xff] }
  0x43   : > { %2158 = vmatprep.subr.mxu1 %v1698_v13  ;;  %2044 = vmatmul.mubr.f32.gmra.mxu0 %v2764_v19  ;;  %v1726_v5 = vld [vmem:[%s3255_s1 + $0x290] sm:$0xff] }
  0x44   : > { %2088 = vmatmul.mubr.f32.gmra.mxu1 %v2711_v62  ;;  %2115 = vmatpush3.msra.mxu0 %v1682_v12  ;;  %v562_v12 = vrot.slane %v2714_v63, 2  ;;  %v1721_v63 = vld [vmem:[%s3255_s1 + $0x268] sm:$0xff] }
  0x45   : > { %2159 = vmatpush3.msra.mxu1 %v1698_v13  ;;  %2116 = vmatprep.subr.mxu0 %v1681_v23  ;;  %v1738_v13 = vld [vmem:[%s3255_s1 + $0x2f0] sm:$0xff] }
  0x46   : > { %2160 = vmatprep.subr.mxu1 %v1697_v24  ;;  %2117 = vmatpush3.msra.mxu0 %v1681_v23  ;;  %v568_v23 = vrot.slane %v2755_v16, 2 }
  0x47   : > { %2161 = vmatpush3.msra.mxu1 %v1697_v24  ;;  %2046 = vmatprep.mubr.f32.mxu0 %v2791_v34  ;;  %v1720_v24 = vld [vmem:[%s3255_s1 + $0x260] sm:$0xff] }
  0x48   : > { %2090 = vmatprep.mubr.f32.mxu1 %v2736_v9  ;;  %2118 = vmatprep.subr.mxu0 %v1680_v35  ;;  %v2911_v16 = vsel %vm551_vm1, %v567_v22, %v568_v23  ;;  %v1751_v22 = vld [vmem:[%s3255_s1 + $0x358] sm:$0xff] }
  0x49   : > { %2162 = vmatprep.subr.mxu1 %v1696_v36  ;;  %2047 = vmatmul.mubr.f32.gmra.mxu0 %v2806_v39  ;;  %v1767_v23 = vld [vmem:[%s3255_s1 + $0x3d8] sm:$0xff] }
  0x4a   : > { %2091 = vmatmul.mubr.f32.gmra.mxu1 %v2751_v14  ;;  %2119 = vmatpush3.msra.mxu0 %v1680_v35  ;;  %v1735_v35 = vld [vmem:[%s3255_s1 + $0x2d8] sm:$0xff] }
  0x4b   : > { %2163 = vmatpush3.msra.mxu1 %v1696_v36  ;;  %2120 = vmatprep.subr.mxu0 %v1679_v43  ;;  %v570_v36 = vrot.slane %v2785_v32, 2 }
  0x4c   : > { %2164 = vmatprep.subr.mxu1 %v1695_v44  ;;  %2121 = vmatpush3.msra.mxu0 %v1679_v43  ;;  %v574_v43 = vrot.slane %v2803_v38, 2 }
  0x4d   : > { %2165 = vmatpush3.msra.mxu1 %v1695_v44  ;;  %2049 = vmatprep.mubr.f32.mxu0 %v2823_v47  ;;  %v1718_v44 = vld [vmem:[%s3255_s1 + $0x250] sm:$0xff]  ;;  %v2934_v45 = vsel %vm551_vm1, %v570_v36, %v571_v40  ;;  %v1749_v36 = vld [vmem:[%s3255_s1 + $0x348] sm:$0xff] }
  0x4e   : > { %2093 = vmatprep.mubr.f32.mxu1 %v2785_v32  ;;  %2122 = vmatprep.subr.mxu0 %v1678_v48  ;;  %v2937_v38 = vsel %vm551_vm1, %v573_v42, %v574_v43  ;;  %v1765_v40 = vld [vmem:[%s3255_s1 + $0x3c8] sm:$0xff]  ;;  %v1764_v43 = vld [vmem:[%s3255_s1 + $0x3c0] sm:$0xff] }
  0x4f   : > { %2166 = vmatprep.subr.mxu1 %v1694_v49  ;;  %2050 = vmatmul.mubr.f32.gmra.mxu0 %v2832_v50 }
  0x50   : > { %2094 = vmatmul.mubr.f32.gmra.mxu1 %v2800_v37  ;;  %2123 = vmatpush3.msra.mxu0 %v1678_v48  ;;  %v1733_v48 = vld [vmem:[%s3255_s1 + $0x2c8] sm:$0xff] }
  0x51   : > { %2167 = vmatpush3.msra.mxu1 %v1694_v49  ;;  %2124 = vmatprep.subr.mxu0 %v1677_v55  ;;  %v1716_v49 = vld [vmem:[%s3255_s1 + $0x240] sm:$0xff] }
  0x52   : > { %2168 = vmatprep.subr.mxu1 %v1693_v59  ;;  %2125 = vmatpush3.msra.mxu0 %v1677_v55  ;;  %v1714_v55 = vld [vmem:[%s3255_s1 + $0x230] sm:$0xff] }
  0x53   : > { %2169 = vmatpush3.msra.mxu1 %v1693_v59  ;;  %2126 = vmatprep.subr.mxu0 %v1676_v61  ;;  %v1730_v59 = vld [vmem:[%s3255_s1 + $0x2b0] sm:$0xff] }
  0x54   : > { %2170 = vmatprep.subr.mxu1 %v1692_v1  ;;  %2127 = vmatpush3.msra.mxu0 %v1676_v61  ;;  %v1728_v61 = vld [vmem:[%s3255_s1 + $0x2a0] sm:$0xff] }
  0x55   : > { %2128 = vmatprep.mubr.f32.mxu0 %v554_v31  ;;  %2171 = vmatpush3.msra.mxu1 %v1692_v1  ;;  %v1711_v1 = vld [vmem:[%s3255_s1 + $0x218] sm:$0xff] }
  0x56   : > { %2172 = vmatprep.mubr.f32.mxu1 %v2626_v30  ;;  %2129 = vmatmul.mubr.f32.vlgmr.msra.gmra.mxu0 %v2861_v3  ;;  %v2886_v30 = vsel %vm551_vm1, %v561_v8, %v562_v12  ;;  %v1727_v31 = vld [vmem:[%s3255_s1 + $0x298] sm:$0xff]  ;;  %v1708_v8 = vld [vmem:[%s3255_s1 + $0x200] sm:$0xff] }
  0x57   : > { %2173 = vmatmul.mubr.f32.vlgmr.msra.gmra.mxu1 %v2698_v57  ;;  %2184 = vmatprep.subr.mxu0 %v1723_v6  ;;  %v1724_v12 = vld [vmem:[%s3255_s1 + $0x280] sm:$0xff] }
  0x58   : > { %2228 = vmatprep.subr.mxu1 %v1739_v7  ;;  %2185 = vmatpush3.msra.mxu0 %v1723_v6  ;;  %v1709_v6 = vld [vmem:[%s3255_s1 + $0x208] sm:$0xff] }
  0x59   : > { %2229 = vmatpush3.msra.mxu1 %v1739_v7  ;;  %2186 = vmatprep.subr.mxu0 %v1722_v58  ;;  %v1725_v7 = vld [vmem:[%s3255_s1 + $0x288] sm:$0xff] }
  0x5a   : > { %2230 = vmatprep.subr.mxu1 %v1738_v13  ;;  %2131 = vmatprep.mubr.f32.mxu0 %v2883_v15 }
  0x5b   : > { %2187 = vmatpush3.msra.mxu0 %v1722_v58  ;;  %2231 = vmatpush3.msra.mxu1 %v1738_v13  ;;  %v1755_v58 = vld [vmem:[%s3255_s1 + $0x378] sm:$0xff] }
  0x5c   : > { %2132 = vmatmul.mubr.f32.gmra.mxu0 %v2886_v30  ;;  %2188 = vmatprep.subr.mxu0 %v1721_v63  ;;  %v1771_v13 = vld [vmem:[%s3255_s1 + $0x3f8] sm:$0xff] }
  0x5d   : > { %2232 = vmatprep.subr.mxu1 %v1737_v18  ;;  %2175 = vmatprep.mubr.f32.mxu1 %v2711_v62 }
  0x5e   : > { %2189 = vmatpush3.msra.mxu0 %v1721_v63  ;;  %2233 = vmatpush3.msra.mxu1 %v1737_v18  ;;  %v1754_v63 = vld [vmem:[%s3255_s1 + $0x370] sm:$0xff]  ;;  %v1769_v18 = vld [vmem:[%s3255_s1 + $0x3e8] sm:$0xff] }
  0x5f   : > { %2190 = vmatprep.subr.mxu0 %v1720_v24  ;;  %2176 = vmatmul.mubr.f32.gmra.mxu1 %v2736_v9 }
  0x60   : > { %2234 = vmatprep.subr.mxu1 %v1736_v10  ;;  %2134 = vmatprep.mubr.f32.mxu0 %v2908_v25 }
  0x61   : > { %2191 = vmatpush3.msra.mxu0 %v1720_v24  ;;  %2235 = vmatpush3.msra.mxu1 %v1736_v10  ;;  %v1750_v24 = vld [vmem:[%s3255_s1 + $0x350] sm:$0xff] }
  0x62   : > { %2135 = vmatmul.mubr.f32.gmra.mxu0 %v2911_v16  ;;  %2192 = vmatprep.subr.mxu0 %v1719_v28  ;;  %v1766_v10 = vld [vmem:[%s3255_s1 + $0x3d0] sm:$0xff] }
  0x63   : > { %2236 = vmatprep.subr.mxu1 %v1735_v35  ;;  %2178 = vmatprep.mubr.f32.mxu1 %v2751_v14 }
  0x64   : > { %2193 = vmatpush3.msra.mxu0 %v1719_v28  ;;  %2237 = vmatpush3.msra.mxu1 %v1735_v35  ;;  %v980_v28 = vrot.slane %v2685_v52, 2  ;;  %v981_v35 = vrot.slane %v2695_v56, 2  ;;  %v1748_v56 = vld [vmem:[%s3255_s1 + $0x340] sm:$0xff] }
  0x65   : > { %2194 = vmatprep.subr.mxu0 %v1718_v44  ;;  %2179 = vmatmul.mubr.f32.gmra.mxu1 %v2785_v32 }
  0x66   : > { %2238 = vmatprep.subr.mxu1 %v1734_v33  ;;  %2137 = vmatprep.mubr.f32.mxu0 %v2934_v45  ;;  %v3066_v42 = vsel %vm551_vm1, %v980_v28, %v981_v35 }
  0x67   : > { %2195 = vmatpush3.msra.mxu0 %v1718_v44  ;;  %2239 = vmatpush3.msra.mxu1 %v1734_v33  ;;  %v1747_v44 = vld [vmem:[%s3255_s1 + $0x338] sm:$0xff] }
  0x68   : > { %2138 = vmatmul.mubr.f32.gmra.mxu0 %v2937_v38  ;;  %2196 = vmatprep.subr.mxu0 %v1717_v46  ;;  %v1763_v33 = vld [vmem:[%s3255_s1 + $0x3b8] sm:$0xff] }
  0x69   : > { %2240 = vmatprep.subr.mxu1 %v1733_v48  ;;  %2181 = vmatprep.mubr.f32.mxu1 %v2800_v37 }
  0x6a   : > { %2197 = vmatpush3.msra.mxu0 %v1717_v46  ;;  %2241 = vmatpush3.msra.mxu1 %v1733_v48  ;;  %v1746_v46 = vld [vmem:[%s3255_s1 + $0x330] sm:$0xff] }
  0x6b   : > { %2198 = vmatprep.subr.mxu0 %v1716_v49  ;;  %2182 = vmatmul.mubr.f32.gmra.mxu1 %v2685_v52  ;;  %v1762_v48 = vld [vmem:[%s3255_s1 + $0x3b0] sm:$0xff] }
  0x6c   : > { %2242 = vmatprep.subr.mxu1 %v1732_v51  ;;  %2199 = vmatpush3.msra.mxu0 %v1716_v49  ;;  %v1745_v49 = vld [vmem:[%s3255_s1 + $0x328] sm:$0xff] }
  0x6d   : > { %2243 = vmatpush3.msra.mxu1 %v1732_v51  ;;  %2200 = vmatprep.subr.mxu0 %v1715_v53  ;;  %v1761_v51 = vld [vmem:[%s3255_s1 + $0x3a8] sm:$0xff] }
  0x6e   : > { %2244 = vmatprep.subr.mxu1 %v1731_v54  ;;  %2201 = vmatpush3.msra.mxu0 %v1715_v53  ;;  %v1744_v53 = vld [vmem:[%s3255_s1 + $0x320] sm:$0xff] }
  0x6f   : > { %2245 = vmatpush3.msra.mxu1 %v1731_v54  ;;  %2202 = vmatprep.subr.mxu0 %v1714_v55  ;;  %v1760_v54 = vld [vmem:[%s3255_s1 + $0x3a0] sm:$0xff] }
  0x70   : > { %2246 = vmatprep.subr.mxu1 %v1730_v59  ;;  %2203 = vmatpush3.msra.mxu0 %v1714_v55  ;;  %v1743_v55 = vld [vmem:[%s3255_s1 + $0x318] sm:$0xff] }
  0x71   : > { %2247 = vmatpush3.msra.mxu1 %v1730_v59  ;;  %2204 = vmatprep.subr.mxu0 %v1713_v60  ;;  %v1759_v59 = vld [vmem:[%s3255_s1 + $0x398] sm:$0xff] }
  0x72   : > { %2248 = vmatprep.subr.mxu1 %v1729_v26  ;;  %2205 = vmatpush3.msra.mxu0 %v1713_v60  ;;  %v1742_v60 = vld [vmem:[%s3255_s1 + $0x310] sm:$0xff] }
  0x73   : > { %2249 = vmatpush3.msra.mxu1 %v1729_v26  ;;  %2206 = vmatprep.subr.mxu0 %v1712_v27  ;;  %v1758_v26 = vld [vmem:[%s3255_s1 + $0x390] sm:$0xff] }
  0x74   : > { %2250 = vmatprep.subr.mxu1 %v1728_v61  ;;  %2207 = vmatpush3.msra.mxu0 %v1712_v27  ;;  %v1741_v27 = vld [vmem:[%s3255_s1 + $0x308] sm:$0xff] }
  0x75   : > { %2251 = vmatpush3.msra.mxu1 %v1728_v61  ;;  %2208 = vmatprep.subr.mxu0 %v1711_v1  ;;  %v1757_v61 = vld [vmem:[%s3255_s1 + $0x388] sm:$0xff] }
  0x76   : > { %2252 = vmatprep.subr.mxu1 %v1727_v31  ;;  %2209 = vmatpush3.msra.mxu0 %v1711_v1  ;;  %v1740_v1 = vld [vmem:[%s3255_s1 + $0x300] sm:$0xff] }
  0x77   : > { %2253 = vmatpush3.msra.mxu1 %v1727_v31  ;;  %2210 = vmatprep.subr.mxu0 %v1710_v4  ;;  %v1756_v31 = vld [vmem:[%s3255_s1 + $0x380] sm:$0xff] }
  0x78   : > { %2254 = vmatprep.subr.mxu1 %v1726_v5  ;;  %2211 = vmatpush3.msra.mxu0 %v1710_v4  ;;  %v1787_v4 = vld [vmem:[%s3255_s1 + $0x478] sm:$0xff] }
  0x79   : > { %2255 = vmatpush3.msra.mxu1 %v1726_v5  ;;  %2212 = vmatprep.subr.mxu0 %v1709_v6  ;;  %v1786_v5 = vld [vmem:[%s3255_s1 + $0x470] sm:$0xff] }
  0x7a   : > { %2256 = vmatprep.subr.mxu1 %v1725_v7  ;;  %2213 = vmatpush3.msra.mxu0 %v1709_v6 }
  0x7b   : > { %2257 = vmatpush3.msra.mxu1 %v1725_v7  ;;  %2214 = vmatprep.subr.mxu0 %v1708_v8 }
  0x7c   : > { %2258 = vmatprep.subr.mxu1 %v1724_v12  ;;  %2215 = vmatpush3.msra.mxu0 %v1708_v8 }
  0x7d   : > { %2216 = vmatprep.mubr.f32.mxu0 %v2649_v41  ;;  %2259 = vmatpush3.msra.mxu1 %v1724_v12  ;;  %v1770_v41 = vld [vmem:[%s3255_s1 + $0x3f0] sm:$0xff] }
  0x7e   : > { %2260 = vmatprep.mubr.f32.mxu1 %v2861_v3  ;;  %2217 = vmatmul.mubr.f32.vlgmr.msra.gmra.mxu0 %v2742_v11  ;;  %v1753_v3 = vld [vmem:[%s3255_s1 + $0x368] sm:$0xff] }
  0x7f   : > { %2261 = vmatmul.mubr.f32.vlgmr.msra.gmra.mxu1 %v2883_v15  ;;  %2272 = vmatprep.subr.mxu0 %v1755_v58 }
  0x80   : > { %2316 = vmatprep.subr.mxu1 %v1771_v13  ;;  %2273 = vmatpush3.msra.mxu0 %v1755_v58 }
  0x81   : > { %2317 = vmatpush3.msra.mxu1 %v1771_v13  ;;  %2274 = vmatprep.subr.mxu0 %v1754_v63 }
  0x82   : > { %2318 = vmatprep.subr.mxu1 %v1770_v41  ;;  %2219 = vmatprep.mubr.f32.mxu0 %v2764_v19 }
  0x83   : > { %2275 = vmatpush3.msra.mxu0 %v1754_v63  ;;  %2319 = vmatpush3.msra.mxu1 %v1770_v41 }
  0x84   : > { %2220 = vmatmul.mubr.f32.gmra.mxu0 %v2791_v34  ;;  %2276 = vmatprep.subr.mxu0 %v1753_v3 }
  0x85   : > { %2320 = vmatprep.subr.mxu1 %v1769_v18  ;;  %2263 = vmatprep.mubr.f32.mxu1 %v2886_v30 }
  0x86   : > { %2277 = vmatpush3.msra.mxu0 %v1753_v3  ;;  %2321 = vmatpush3.msra.mxu1 %v1769_v18 }
  0x87   : > { %2278 = vmatprep.subr.mxu0 %v1752_v20  ;;  %2264 = vmatmul.mubr.f32.gmra.mxu1 %v2908_v25 }
  0x88   : > { %2322 = vmatprep.subr.mxu1 %v1768_v21  ;;  %2222 = vmatprep.mubr.f32.mxu0 %v2806_v39 }
  0x89   : > { %2279 = vmatpush3.msra.mxu0 %v1752_v20  ;;  %2323 = vmatpush3.msra.mxu1 %v1768_v21 }
  0x8a   : > { %2223 = vmatmul.mubr.f32.gmra.mxu0 %v2823_v47  ;;  %2280 = vmatprep.subr.mxu0 %v1751_v22 }
  0x8b   : > { %2324 = vmatprep.subr.mxu1 %v1767_v23  ;;  %2266 = vmatprep.mubr.f32.mxu1 %v2911_v16 }
  0x8c   : > { %2281 = vmatpush3.msra.mxu0 %v1751_v22  ;;  %2325 = vmatpush3.msra.mxu1 %v1767_v23 }
  0x8d   : > { %2282 = vmatprep.subr.mxu0 %v1750_v24  ;;  %2267 = vmatmul.mubr.f32.gmra.mxu1 %v2934_v45 }
  0x8e   : > { %2326 = vmatprep.subr.mxu1 %v1766_v10  ;;  %2225 = vmatprep.mubr.f32.mxu0 %v2832_v50 }
  0x8f   : > { %2283 = vmatpush3.msra.mxu0 %v1750_v24  ;;  %2327 = vmatpush3.msra.mxu1 %v1766_v10 }
  0x90   : > { %2226 = vmatmul.mubr.f32.gmra.mxu0 %v2717_v0  ;;  %2284 = vmatprep.subr.mxu0 %v1749_v36 }
  0x91   : > { %2328 = vmatprep.subr.mxu1 %v1765_v40  ;;  %2269 = vmatprep.mubr.f32.mxu1 %v2937_v38 }
  0x92   : > { %2285 = vmatpush3.msra.mxu0 %v1749_v36  ;;  %2329 = vmatpush3.msra.mxu1 %v1765_v40 }
  0x93   : > { %2286 = vmatprep.subr.mxu0 %v1748_v56  ;;  %2270 = vmatmul.mubr.f32.gmra.mxu1 %v3066_v42 }
  0x94   : > { %2330 = vmatprep.subr.mxu1 %v1764_v43  ;;  %2287 = vmatpush3.msra.mxu0 %v1748_v56 }
  0x95   : > { %2331 = vmatpush3.msra.mxu1 %v1764_v43  ;;  %2288 = vmatprep.subr.mxu0 %v1747_v44 }
  0x96   : > { %2332 = vmatprep.subr.mxu1 %v1763_v33  ;;  %2289 = vmatpush3.msra.mxu0 %v1747_v44 }
  0x97   : > { %2333 = vmatpush3.msra.mxu1 %v1763_v33  ;;  %2290 = vmatprep.subr.mxu0 %v1746_v46 }
  0x98   : > { %2334 = vmatprep.subr.mxu1 %v1762_v48  ;;  %2291 = vmatpush3.msra.mxu0 %v1746_v46 }
  0x99   : > { %2335 = vmatpush3.msra.mxu1 %v1762_v48  ;;  %2292 = vmatprep.subr.mxu0 %v1745_v49 }
  0x9a   : > { %2336 = vmatprep.subr.mxu1 %v1761_v51  ;;  %2293 = vmatpush3.msra.mxu0 %v1745_v49 }
  0x9b   : > { %2337 = vmatpush3.msra.mxu1 %v1761_v51  ;;  %2294 = vmatprep.subr.mxu0 %v1744_v53 }
  0x9c   : > { %2338 = vmatprep.subr.mxu1 %v1760_v54  ;;  %2295 = vmatpush3.msra.mxu0 %v1744_v53 }
  0x9d   : > { %2339 = vmatpush3.msra.mxu1 %v1760_v54  ;;  %2296 = vmatprep.subr.mxu0 %v1743_v55 }
  0x9e   : > { %2340 = vmatprep.subr.mxu1 %v1759_v59  ;;  %2297 = vmatpush3.msra.mxu0 %v1743_v55 }
  0x9f   : > { %2341 = vmatpush3.msra.mxu1 %v1759_v59  ;;  %2298 = vmatprep.subr.mxu0 %v1742_v60 }
  0xa0   : > { %2342 = vmatprep.subr.mxu1 %v1758_v26  ;;  %2299 = vmatpush3.msra.mxu0 %v1742_v60 }
  0xa1   : > { %2343 = vmatpush3.msra.mxu1 %v1758_v26  ;;  %2300 = vmatprep.subr.mxu0 %v1741_v27 }
  0xa2   : > { %2344 = vmatprep.subr.mxu1 %v1757_v61  ;;  %2301 = vmatpush3.msra.mxu0 %v1741_v27 }
  0xa3   : > { %2345 = vmatpush3.msra.mxu1 %v1757_v61  ;;  %2302 = vmatprep.subr.mxu0 %v1740_v1 }
  0xa4   : > { %2346 = vmatprep.subr.mxu1 %v1756_v31  ;;  %2303 = vmatpush3.msra.mxu0 %v1740_v1 }
  0xa5   : > { %2304 = vmatprep.mubr.f32.mxu0 %v2698_v57  ;;  %2347 = vmatpush3.msra.mxu1 %v1756_v31  ;;  %v1785_v57 = vld [vmem:[%s3255_s1 + $0x468] sm:$0xff] }
  0xa6   : > { %2348 = vmatprep.mubr.f32.mxu1 %v2742_v11  ;;  %2305 = vmatmul.mubr.f32.vlgmr.msra.gmra.mxu0 %v2711_v62  ;;  %v1784_v62 = vld [vmem:[%s3255_s1 + $0x460] sm:$0xff]  ;;  %v1782_v11 = vld [vmem:[%s3255_s1 + $0x450] sm:$0xff] }
  0xa7   : > { %2349 = vmatmul.mubr.f32.vlgmr.msra.gmra.mxu1 %v2764_v19  ;;  %2360 = vmatprep.subr.mxu0 %v1787_v4  ;;  %v1780_v19 = vld [vmem:[%s3255_s1 + $0x440] sm:$0xff] }
  0xa8   : > { %2404 = vmatprep.subr.mxu1 %v1787_v4  ;;  %2361 = vmatpush3.msra.mxu0 %v1787_v4 }
  0xa9   : > { %2420 = vmatpush3.msra.mxu1 %v1787_v4  ;;  %2362 = vmatprep.subr.mxu0 %v1786_v5 }
  0xaa   : > { %2405 = vmatprep.subr.mxu1 %v1786_v5  ;;  %2307 = vmatprep.mubr.f32.mxu0 %v2736_v9  ;;  %v1783_v9 = vld [vmem:[%s3255_s1 + $0x458] sm:$0xff] }
  0xab   : > { %2363 = vmatpush3.msra.mxu0 %v1786_v5  ;;  %2421 = vmatpush3.msra.mxu1 %v1786_v5 }
  0xac   : > { %2308 = vmatmul.mubr.f32.gmra.mxu0 %v2751_v14  ;;  %2364 = vmatprep.subr.mxu0 %v1785_v57  ;;  %v1781_v14 = vld [vmem:[%s3255_s1 + $0x448] sm:$0xff] }
  0xad   : > { %2406 = vmatprep.subr.mxu1 %v1785_v57  ;;  %2351 = vmatprep.mubr.f32.mxu1 %v2791_v34  ;;  %v1774_v34 = vld [vmem:[%s3255_s1 + $0x410] sm:$0xff] }
  0xae   : > { %2365 = vmatpush3.msra.mxu0 %v1785_v57  ;;  %2422 = vmatpush3.msra.mxu1 %v1785_v57 }
  0xaf   : > { %2366 = vmatprep.subr.mxu0 %v1784_v62  ;;  %2352 = vmatmul.mubr.f32.gmra.mxu1 %v2806_v39  ;;  %v1772_v39 = vld [vmem:[%s3255_s1 + $0x400] sm:$0xff] }
  0xb0   : > { %2407 = vmatprep.subr.mxu1 %v1784_v62  ;;  %2310 = vmatprep.mubr.f32.mxu0 %v2785_v32  ;;  %v1779_v32 = vld [vmem:[%s3255_s1 + $0x438] sm:$0xff] }
  0xb1   : > { %2367 = vmatpush3.msra.mxu0 %v1784_v62  ;;  %2423 = vmatpush3.msra.mxu1 %v1784_v62 }
  0xb2   : > { %2311 = vmatmul.mubr.f32.gmra.mxu0 %v2800_v37  ;;  %2368 = vmatprep.subr.mxu0 %v1783_v9  ;;  %v1773_v37 = vld [vmem:[%s3255_s1 + $0x408] sm:$0xff] }
  0xb3   : > { %2408 = vmatprep.subr.mxu1 %v1783_v9  ;;  %2354 = vmatprep.mubr.f32.mxu1 %v2823_v47 }
  0xb4   : > { %2369 = vmatpush3.msra.mxu0 %v1783_v9  ;;  %2424 = vmatpush3.msra.mxu1 %v1783_v9 }
  0xb5   : > { %2370 = vmatprep.subr.mxu0 %v1782_v11  ;;  %2355 = vmatmul.mubr.f32.gmra.mxu1 %v2832_v50 }
  0xb6   : > { %2409 = vmatprep.subr.mxu1 %v1782_v11  ;;  %2313 = vmatprep.mubr.f32.mxu0 %v2685_v52  ;;  %v1778_v52 = vld [vmem:[%s3255_s1 + $0x430] sm:$0xff] }
  0xb7   : > { %2371 = vmatpush3.msra.mxu0 %v1782_v11  ;;  %2425 = vmatpush3.msra.mxu1 %v1782_v11 }
  0xb8   : > { %2314 = vmatmul.mubr.f32.gmra.mxu0 %v2758_v17  ;;  %2372 = vmatprep.subr.mxu0 %v1781_v14  ;;  %v1776_v17 = vld [vmem:[%s3255_s1 + $0x420] sm:$0xff] }
  0xb9   : > { %2410 = vmatprep.subr.mxu1 %v1781_v14  ;;  %2357 = vmatprep.mubr.f32.mxu1 %v2717_v0  ;;  %v1777_v0 = vld [vmem:[%s3255_s1 + $0x428] sm:$0xff] }
  0xba   : > { %2373 = vmatpush3.msra.mxu0 %v1781_v14  ;;  %2426 = vmatpush3.msra.mxu1 %v1781_v14 }
  0xbb   : > { %2374 = vmatprep.subr.mxu0 %v1780_v19  ;;  %2358 = vmatmul.mubr.f32.gmra.mxu1 %v2780_v29  ;;  %v1775_v29 = vld [vmem:[%s3255_s1 + $0x418] sm:$0xff] }
  0xbc   : > { %2411 = vmatprep.subr.mxu1 %v1780_v19  ;;  %2375 = vmatpush3.msra.mxu0 %v1780_v19 }
  0xbd   : > { %2427 = vmatpush3.msra.mxu1 %v1780_v19  ;;  %2376 = vmatprep.subr.mxu0 %v1779_v32 }
  0xbe   : > { %2412 = vmatprep.subr.mxu1 %v1779_v32  ;;  %2377 = vmatpush3.msra.mxu0 %v1779_v32 }
  0xbf   : > { %2428 = vmatpush3.msra.mxu1 %v1779_v32  ;;  %2378 = vmatprep.subr.mxu0 %v1778_v52 }
  0xc0   : > { %2413 = vmatprep.subr.mxu1 %v1778_v52  ;;  %2379 = vmatpush3.msra.mxu0 %v1778_v52 }
  0xc1   : > { %2429 = vmatpush3.msra.mxu1 %v1778_v52  ;;  %2380 = vmatprep.subr.mxu0 %v1777_v0 }
  0xc2   : > { %2414 = vmatprep.subr.mxu1 %v1777_v0  ;;  %2381 = vmatpush3.msra.mxu0 %v1777_v0 }
  0xc3   : > { %2430 = vmatpush3.msra.mxu1 %v1777_v0  ;;  %2382 = vmatprep.subr.mxu0 %v1776_v17 }
  0xc4   : > { %2415 = vmatprep.subr.mxu1 %v1776_v17  ;;  %2383 = vmatpush3.msra.mxu0 %v1776_v17 }
  0xc5   : > { %2431 = vmatpush3.msra.mxu1 %v1776_v17  ;;  %2384 = vmatprep.subr.mxu0 %v1775_v29 }
  0xc6   : > { %2416 = vmatprep.subr.mxu1 %v1775_v29  ;;  %2385 = vmatpush3.msra.mxu0 %v1775_v29 }
  0xc7   : > { %2432 = vmatpush3.msra.mxu1 %v1775_v29  ;;  %2386 = vmatprep.subr.mxu0 %v1774_v34 }
  0xc8   : > { %2417 = vmatprep.subr.mxu1 %v1774_v34  ;;  %2387 = vmatpush3.msra.mxu0 %v1774_v34 }
  0xc9   : > { %2433 = vmatpush3.msra.mxu1 %v1774_v34  ;;  %2388 = vmatprep.subr.mxu0 %v1773_v37 }
  0xca   : > { %2418 = vmatprep.subr.mxu1 %v1773_v37  ;;  %2389 = vmatpush3.msra.mxu0 %v1773_v37 }
  0xcb   : > { %2434 = vmatpush3.msra.mxu1 %v1773_v37  ;;  %2390 = vmatprep.subr.mxu0 %v1772_v39 }
  0xcc   : > { %2419 = vmatprep.subr.mxu1 %v1772_v39  ;;  %2391 = vmatpush3.msra.mxu0 %v1772_v39 }
  0xcd   : > { %2435 = vmatpush3.msra.mxu1 %v1772_v39  ;;  %2392 = vmatprep.mubr.f32.mxu0 %v2883_v15 }
  0xce   : > { %2398 = vmatprep.mubr.f32.mxu1 %v2934_v45  ;;  %2393 = vmatmul.mubr.f32.vlgmr.msra.gmra.mxu0 %v2886_v30 }
  0xcf   : > { %2399 = vmatmul.mubr.f32.vlgmr.msra.gmra.mxu1 %v2937_v38  ;;  %2395 = vmatprep.mubr.f32.mxu0 %v2908_v25 }
  0xd0   : > { %2401 = vmatprep.mubr.f32.mxu1 %v3066_v42 }
  0xd2   : > { %2396 = vmatmul.mubr.f32.gmra.mxu0 %v2911_v16 }
  0xd3   : > { %2402 = vmatmul.mubr.f32.gmra.mxu1 %v2858_v2 }
  0xee   : > { %v2042_v47 = vpop.f32.mrf.mxu0 }
  0xef   : > { %v2086_v7 = vpop.f32.mrf.mxu1 }
  0xf0   : > { %v407_v50 = vpop.f32.mrf.mxu0  ;;  %v518_v14 = vadd.f32 %v2086_v7, %v2042_v47 }
  0xf1   : > { %v512_v15 = vpop.f32.mrf.mxu1 }
  0xf2   : > { %v513_v0 = vadd.f32 %v512_v15, %v407_v50 }
 0x103   : > { %v2045_v6 = vpop.f32.mrf.mxu0 }
 0x104   : > { %v2089_v45 = vpop.f32.mrf.mxu1 }
 0x105   : > { %v3193_v8 = vpop.f32.mrf.mxu0  ;;  %v528_v37 = vadd.f32 %v2089_v45, %v2045_v6 }
 0x106   : > { %v522_v30 = vpop.f32.mrf.mxu1 }
 0x109   : > { %v2048_v12 = vpop.f32.mrf.mxu0 }
 0x10a   : > { %v2092_v38 = vpop.f32.mrf.mxu1 }
 0x10b   : > { %v427_v58 = vpop.f32.mrf.mxu0  ;;  %v538_v19 = vadd.f32 %v2092_v38, %v2048_v12 }
 0x10c   : > { %v532_v25 = vpop.f32.mrf.mxu1 }
 0x10d   : > { %v533_v17 = vadd.f32 %v532_v25, %v427_v58 }
 0x10f   : > { %v2051_v13 = vpop.f32.mrf.mxu0 }
 0x110   : > { %v2095_v41 = vpop.f32.mrf.mxu1 }
 0x111   : > { %v437_v63 = vpop.f32.mrf.mxu0  ;;  %v548_v39 = vadd.f32 %v2095_v41, %v2051_v13 }
 0x112   : > { %v542_v16 = vpop.f32.mrf.mxu1 }
 0x116   : > { %v2130_v3 = vpop.f32.mrf.mxu0 }
 0x117   : > { %v2174_v2 = vpop.f32.mrf.mxu1  ;;  %v707_v29 = vadd.f32 %v2130_v3, %v518_v14 }
 0x118   : > { %v667_v18 = vpop.f32.mrf.mxu0 }
 0x119   : > { %v797_v21 = vpop.f32.mrf.mxu1  ;;  %v837_v38 = vadd.f32 %v2174_v2, %v707_v29  ;;  %v1514_v29 = vld [vmem:[%s3215_s10] sm:$0xff] }
 0x11c   : > { %v2133_v20 = vpop.f32.mrf.mxu0 }
 0x11d   : > { %v709_v7 = vadd.f32 %v2133_v20, %v528_v37  ;;  %v1518_v37 = vld [vmem:[%s3215_s10 + $0x20] sm:$0xff] }
 0x11e   : > { %v677_v22 = vpop.f32.mrf.mxu0 }
 0x11f   : > { %v2177_v23 = vpop.f32.mrf.mxu1 }
 0x120   : > { %v839_v6 = vadd.f32 %v2177_v23, %v709_v7 }
 0x121   : > { %v807_v10 = vpop.f32.mrf.mxu1 }
 0x122   : > { %v2136_v24 = vpop.f32.mrf.mxu0 }
 0x123   : > { %v711_v34 = vadd.f32 %v2136_v24, %v538_v19 }
 0x124   : > { %v687_v28 = vpop.f32.mrf.mxu0 }
 0x125   : > { %v2180_v35 = vpop.f32.mrf.mxu1 }
 0x127   : > { %v817_v40 = vpop.f32.mrf.mxu1 }
 0x128   : > { %v2139_v36 = vpop.f32.mrf.mxu0 }
 0x129   : > { %v713_v47 = vadd.f32 %v2139_v36, %v548_v39 }
 0x12a   : > { %v697_v56 = vpop.f32.mrf.mxu0 }
 0x12b   : > { %v2183_v42 = vpop.f32.mrf.mxu1 }
 0x12c   : > { %v843_v45 = vadd.f32 %v2183_v42, %v713_v47 }
 0x12d   : > { %v827_v44 = vpop.f32.mrf.mxu1 }
 0x13e   : > { %v2218_v43 = vpop.f32.mrf.mxu0 }
 0x13f   : > { %v2262_v46 = vpop.f32.mrf.mxu1  ;;  %v973_v3 = vadd.f32 %v2218_v43, %v837_v38 }
 0x140   : > { %v933_v33 = vpop.f32.mrf.mxu0 }
 0x141   : > { %v1067_v49 = vpop.f32.mrf.mxu1  ;;  %v1107_v20 = vadd.f32 %v2262_v46, %v973_v3 }
 0x144   : > { %v2221_v48 = vpop.f32.mrf.mxu0 }
 0x146   : > { %v943_v53 = vpop.f32.mrf.mxu0 }
 0x147   : > { %v3195_v51 = vpop.f32.mrf.mxu1 }
 0x148   : > { %3258 = vst [vmem:[#allocation2_spill] sm:$0xff] %v3195_v51  ;;  %v710_v51 = vadd.f32 %v687_v28, %v533_v17 }
 0x149   : > { %v3197_v54 = vpop.f32.mrf.mxu1 }
 0x14a   : > { %3259 = vst [vmem:[#allocation3_spill] sm:$0xff] %v3197_v54  ;;  %v2224_v55 = vpop.f32.mrf.mxu0  ;;  %v706_v54 = vadd.f32 %v667_v18, %v513_v0  ;;  %v840_v58 = vadd.f32 %v817_v40, %v710_v51 }
 0x14c   : > { %v953_v60 = vpop.f32.mrf.mxu0  ;;  %v836_v25 = vadd.f32 %v797_v21, %v706_v54 }
 0x14d   : > { %v2268_v59 = vpop.f32.mrf.mxu1  ;;  %v976_v18 = vadd.f32 %v953_v60, %v840_v58  ;;  %v1517_v58 = vld [vmem:[%s3215_s10 + $0x18] sm:$0xff] }
 0x14e   : > { %v972_v41 = vadd.f32 %v933_v33, %v836_v25 }
 0x14f   : > { %v1087_v26 = vpop.f32.mrf.mxu1  ;;  %v3264_v42 = vld [vmem:[#allocation2_spill] sm:$0xff] }
 0x150   : > { %v2227_v27 = vpop.f32.mrf.mxu0  ;;  %v1106_v36 = vadd.f32 %v1067_v49, %v972_v41  ;;  %v1110_v40 = vadd.f32 %v1087_v26, %v976_v18  ;;  %v1516_v18 = vld [vmem:[%s3215_s10 + $0x10] sm:$0xff] }
 0x151   : > { %v3265_v46 = vld [vmem:[#allocation3_spill] sm:$0xff] }
 0x152   : > { %v963_v1 = vpop.f32.mrf.mxu0 }
 0x153   : > { %v2271_v61 = vpop.f32.mrf.mxu1 }
 0x155   : > { %v1097_v4 = vpop.f32.mrf.mxu1 }
 0x166   : > { %v2306_v31 = vpop.f32.mrf.mxu0 }
 0x167   : > { %v3199_v5 = vpop.f32.mrf.mxu1 }
 0x168   : > { %3260 = vst [vmem:[#allocation4_spill] sm:$0xff] %v3199_v5  ;;  %v1197_v57 = vpop.f32.mrf.mxu0 }
 0x169   : > { %v3201_v62 = vpop.f32.mrf.mxu1  ;;  %v1236_v51 = vadd.f32 %v1197_v57, %v1106_v36  ;;  %v1519_v57 = vld [vmem:[%s3215_s10 + $0x28] sm:$0xff] }
 0x16a   : > { %3261 = vst [vmem:[#allocation5_spill] sm:$0xff] %v3201_v62  ;;  %v523_v62 = vadd.f32 %v522_v30, %v3193_v8 }
 0x16c   : > { %v2309_v9 = vpop.f32.mrf.mxu0  ;;  %v708_v15 = vadd.f32 %v677_v22, %v523_v62 }
 0x16e   : > { %v1207_v32 = vpop.f32.mrf.mxu0  ;;  %v838_v8 = vadd.f32 %v807_v10, %v708_v15 }
 0x16f   : > { %v3203_v11 = vpop.f32.mrf.mxu1 }
 0x170   : > { %3262 = vst [vmem:[#allocation6_spill] sm:$0xff] %v3203_v11  ;;  %v543_v11 = vadd.f32 %v542_v16, %v437_v63  ;;  %v975_v63 = vadd.f32 %v2221_v48, %v839_v6  ;;  %v979_v16 = vadd.f32 %v2227_v27, %v843_v45  ;;  %v974_v28 = vadd.f32 %v943_v53, %v838_v8 }
 0x171   : > { %v3205_v52 = vpop.f32.mrf.mxu1  ;;  %v3267_v62 = vld [vmem:[#allocation5_spill] sm:$0xff] }
 0x172   : > { %3263 = vst [vmem:[#allocation7_spill] sm:$0xff] %v3205_v52  ;;  %v2312_v5 = vpop.f32.mrf.mxu0  ;;  %v841_v52 = vadd.f32 %v2180_v35, %v711_v34  ;;  %v712_v50 = vadd.f32 %v697_v56, %v543_v11  ;;  %v1237_v56 = vadd.f32 %v2306_v31, %v1107_v20  ;;  %v1109_v43 = vadd.f32 %v3264_v42, %v975_v63  ;;  %v1515_v31 = vld [vmem:[%s3215_s10 + $0x8] sm:$0xff] }
 0x173   : > { %v1113_v33 = vadd.f32 %v2271_v61, %v979_v16  ;;  %v1108_v48 = vadd.f32 %v3265_v46, %v974_v28  ;;  %v1372_v11 = vadd.f32 %v3267_v62, %v1236_v51 }
 0x174   : > { %v977_v14 = vadd.f32 %v2224_v55, %v841_v52  ;;  %v1217_v24 = vpop.f32.mrf.mxu0  ;;  %v842_v30 = vadd.f32 %v827_v44, %v712_v50  ;;  %v1239_v53 = vadd.f32 %v2309_v9, %v1109_v43 }
 0x175   : > { %v2356_v12 = vpop.f32.mrf.mxu1  ;;  %v1240_v10 = vadd.f32 %v1217_v24, %v1110_v40  ;;  %v1238_v27 = vadd.f32 %v1207_v32, %v1108_v48 }
 0x176   : > { %v1111_v2 = vadd.f32 %v2268_v59, %v977_v14  ;;  %v978_v21 = vadd.f32 %v963_v1, %v842_v30  ;;  %v3266_v59 = vld [vmem:[#allocation4_spill] sm:$0xff]  ;;  %v1521_v14 = vld [vmem:[%s3215_s10 + $0x38] sm:$0xff] }
 0x177   : > { %v1353_v13 = vpop.f32.mrf.mxu1  ;;  %v1373_v60 = vadd.f32 %v3266_v59, %v1237_v56  ;;  %v3268_v9 = vld [vmem:[#allocation6_spill] sm:$0xff]  ;;  %v1520_v30 = vld [vmem:[%s3215_s10 + $0x30] sm:$0xff] }
 0x178   : > { %v2315_v22 = vpop.f32.mrf.mxu0  ;;  %v1241_v23 = vadd.f32 %v2312_v5, %v1111_v2  ;;  %v1112_v49 = vadd.f32 %v1097_v4, %v978_v21  ;;  %v1376_v19 = vadd.f32 %v1353_v13, %v1240_v10  ;;  %v1375_v0 = vadd.f32 %v3268_v9, %v1239_v53 }
 0x179   : > { %v1243_v54 = vadd.f32 %v2315_v22, %v1113_v33  ;;  %v3269_v38 = vld [vmem:[#allocation7_spill] sm:$0xff] }
 0x17a   : > { %v1227_v44 = vpop.f32.mrf.mxu0  ;;  %v1377_v26 = vadd.f32 %v2356_v12, %v1241_v23  ;;  %v1374_v15 = vadd.f32 %v3269_v38, %v1238_v27 }
 0x17b   : > { %v2359_v35 = vpop.f32.mrf.mxu1  ;;  %v1242_v61 = vadd.f32 %v1227_v44, %v1112_v49 }
 0x17c   : > { %v1379_v17 = vadd.f32 %v2359_v35, %v1243_v54 }
 0x17d   : > { %v1363_v55 = vpop.f32.mrf.mxu1 }
 0x17e   : > { %v1378_v50 = vadd.f32 %v1363_v55, %v1242_v61 }
 0x18e   : > { %v2394_v1 = vpop.f32.mrf.mxu0 }
 0x18f   : > { %v2400_v5 = vpop.f32.mrf.mxu1  ;;  %v1507_v52 = vadd.f32 %v2394_v1, %v1373_v60 }
 0x190   : > { %v1511_v4 = vadd.f32 %v2400_v5, %v1377_v26  ;;  %v1467_v32 = vpop.f32.mrf.mxu0 }
 0x191   : > { %v1487_v34 = vpop.f32.mrf.mxu1  ;;  %v1523_v39 = vadd.f32 %v1515_v31, %v1507_v52  ;;  %v1506_v47 = vadd.f32 %v1467_v32, %v1372_v11 }
 0x192   : > { %v1527_v7 = vadd.f32 %v1519_v57, %v1511_v4  ;;  %v1510_v12 = vadd.f32 %v1487_v34, %v1376_v19  ;;  %v2397_v25 = vpop.f32.mrf.mxu0 }
 0x193   : > { %v2403_v3 = vpop.f32.mrf.mxu1  ;;  %1531 = vst [vmem:[%s3228_s18 + $0x8] sm:$0xff] %v1523_v39  ;;  %v1522_v24 = vadd.f32 %v1514_v29, %v1506_v47  ;;  %v1509_v45 = vadd.f32 %v2397_v25, %v1375_v0 }
 0x194   : > { %1535 = vst [vmem:[%s3228_s18 + $0x28] sm:$0xff] %v1527_v7  ;;  %v1526_v6 = vadd.f32 %v1518_v37, %v1510_v12  ;;  %v1513_v13 = vadd.f32 %v2403_v3, %v1379_v17  ;;  %v1477_v41 = vpop.f32.mrf.mxu0 }
 0x195   : > { %v1497_v8 = vpop.f32.mrf.mxu1  ;;  %1530 = vst [vmem:[%s3228_s18] sm:$0xff] %v1522_v24  ;;  %v1525_v63 = vadd.f32 %v1517_v58, %v1509_v45  ;;  %v1508_v20 = vadd.f32 %v1477_v41, %v1374_v15 }
 0x196   : > { %1534 = vst [vmem:[%s3228_s18 + $0x20] sm:$0xff] %v1526_v6  ;;  %v1529_v16 = vadd.f32 %v1521_v14, %v1513_v13  ;;  %v1512_v2 = vadd.f32 %v1497_v8, %v1378_v50 }
 0x197   : > { %1533 = vst [vmem:[%s3228_s18 + $0x18] sm:$0xff] %v1525_v63  ;;  %v1524_v22 = vadd.f32 %v1516_v18, %v1508_v20 }
 0x198   : > { %1537 = vst [vmem:[%s3228_s18 + $0x38] sm:$0xff] %v1529_v16  ;;  %v1528_v28 = vadd.f32 %v1520_v30, %v1512_v2 }
 0x199   : > { %1532 = vst [vmem:[%s3228_s18 + $0x10] sm:$0xff] %v1524_v22 }
 0x19a   : > { %1536 = vst [vmem:[%s3228_s18 + $0x30] sm:$0xff] %v1528_v28 }
 0x19b PF: > { %s13_s14 = sadd.s32 1, %s2483_s14   ;;  %s3270_s12 = smov %s2479_s13 }
 0x19c   : > { %p10_p5 = scmp.ge.s32.totalorder %s13_s14, 4   ;;  %s3271_s13 = smov %s3273_s15 }
 0x19e   :  { %12 = sbr.rel (!%p10_p5) target bundleno = 2 (0x2), region = 76 }

// kernel: a_call__.6
= control target key start
LH: loop header
LB: loop body
LE: loop exit
PB: predicated region body
PF: predicated region fallthrough
CT: control target
= control target key end

     0   :  { %s2762_s21 = smov 0   ;;  %s2764_s22 = smov 0   ;;  %s3628_s0 = inlined_call_operand.vmem [shape: f32[2,10,10,128], index: 0, kind: input, shape index: {}]   ;;  %s3629_s1 = inlined_call_operand.vmem [shape: f32[1,128], index: 1, kind: input, shape index: {}]   ;;  %s3630_s2 = inlined_call_operand.vmem [shape: f32[1,128], index: 2, kind: input, shape index: {}]   ;;  %s3631_s3 = inlined_call_operand.vmem [shape: f32[3,3,128,128], index: 3, kind: input, shape index: {}]   ;;  %s3632_s4 = inlined_call_operand.vmem [shape: f32[1,128], index: 4, kind: input, shape index: {}]   ;;  %s3633_s5 = inlined_call_operand.vmem [shape: f32[1,128], index: 5, kind: input, shape index: {}]   ;;  %s3634_s6 = inlined_call_operand.vmem [shape: f32[2,8,8,128], index: 6, kind: output, shape index: {}]  }
   0x1   :  { %s2766_s23 = smov 0  }
   0x2 LB: > { %s28_s24 = sadd.s32 1, %s2720_s22  ;;  %p1871_p0 = scmp.ge.s32.totalorder %s2724_s23, 1  ;;  %s2724_s23 = sphi %s2766_s23, %s16_s23   ;;  %s2720_s22 = sphi %s2764_s22, %s3652_s22   ;;  %s2716_s21 = sphi %s2762_s21, %s3651_s21  }
   0x3   : > { %p30_p1 = scmp.ge.s32.totalorder %s28_s24, 2  ;;  %p251_p2 = scmp.lt.s32.totalorder %s2724_s23, 3 }
   0x5   : > { %s3654_s24 = smov (%p30_p1, %s28_s24), 0  ;;  %p252_p3 = pnand %p1871_p0, %p251_p2 }
   0x7   : > { %255 = sbr.rel (%p252_p3) target bundleno = 415 (0x19f), region = 44 }
   0xc   : > { %v1892_v0 = vld [vmem:[%s3631_s3 + $0xf8] sm:$0xff]  ;;  %v1891_v2 = vld [vmem:[%s3631_s3 + $0xf0] sm:$0xff]  ;;  %p294_p4 = scmp.lt.s32.totalorder %s2716_s21, 1  ;;  %v1890_v4 = vld [vmem:[%s3631_s3 + $0xe8] sm:$0xff]  ;;  %v411_v12 = vlaneseq  ;;  %v2726_v50 = vmov 0.0   ;;  %vm478_vm2 = vcmask 1046528  }
   0xd   : > { %v461_v1 = vld [vmem:[%s3631_s3 + $0x78] sm:$0xff]  ;;  %2248 = vmatprep.subr.mxu0 %v1892_v0  ;;  %v460_v3 = vld [vmem:[%s3631_s3 + $0x70] sm:$0xff]  ;;  %v459_v5 = vld [vmem:[%s3631_s3 + $0x68] sm:$0xff]  ;;  %v2922_v51 = vrot.slane %v2726_v50, 1  ;;  %2324 = vmatprep.mubr.f32.mxu1 %v2726_v50  ;;  %vm738_vm3 = vcmask 1045504  }
   0xe   : > { %2292 = vmatprep.subr.mxu1 %v461_v1  ;;  %2249 = vmatpush3.msra.mxu0 %v1892_v0  ;;  %s3656_s21 = smov (!%p294_p4, %s2716_s21), 1  ;;  %v1889_v6 = vld [vmem:[%s3631_s3 + $0xe0] sm:$0xff]  ;;  %v1888_v8 = vld [vmem:[%s3631_s3 + $0xd8] sm:$0xff]  ;;  %v1887_v10 = vld [vmem:[%s3631_s3 + $0xd0] sm:$0xff]  ;;  %v2850_v23 = vshrl.u32 %v411_v12, 7 }
   0xf   : > { %2293 = vmatpush3.msra.mxu1 %v461_v1  ;;  %2250 = vmatprep.subr.mxu0 %v1891_v2  ;;  %v458_v7 = vld [vmem:[%s3631_s3 + $0x60] sm:$0xff]  ;;  %s2676_s17 = smul.u32 160, %s3656_s21  ;;  %v457_v9 = vld [vmem:[%s3631_s3 + $0x58] sm:$0xff]  ;;  %v456_v11 = vld [vmem:[%s3631_s3 + $0x50] sm:$0xff] }
  0x10   : > { %2294 = vmatprep.subr.mxu1 %v460_v3  ;;  %2251 = vmatpush3.msra.mxu0 %v1891_v2  ;;  %v1886_v13 = vld [vmem:[%s3631_s3 + $0xc8] sm:$0xff]  ;;  %v2835_v17 = vld [vmem:[%s3629_s1] ss:$0 sm:$0xff]  ;;  %v1884_v24 = vld [vmem:[%s3631_s3 + $0xb8] sm:$0xff]  ;;  %v2867_v30 = vadd.s32 8, %v2850_v23  ;;  %vm414_vm0 = vcmp.ge.s32.totalorder %v2850_v23, 1 }
  0x11   : > { %2295 = vmatpush3.msra.mxu1 %v460_v3  ;;  %2252 = vmatprep.subr.mxu0 %v1890_v4  ;;  %s2816_s28 = scalar_lea.vmem %s3628_s0, %s2676_s17  ;;  %v455_v14 = vld [vmem:[%s3631_s3 + $0x48] sm:$0xff]  ;;  %v1885_v18 = vld [vmem:[%s3631_s3 + $0xc0] sm:$0xff]  ;;  %v453_v25 = vld [vmem:[%s3631_s3 + $0x38] sm:$0xff] }
  0x12   : > { %2296 = vmatprep.subr.mxu1 %v459_v5  ;;  %2253 = vmatpush3.msra.mxu0 %v1890_v4  ;;  %v319_v15 = vld [vmem:[%s2816_s28 + $0x10] sm:$0xff]  ;;  %v320_v16 = vld [vmem:[%s2816_s28 + $0x18] sm:$0x3]  ;;  %v454_v19 = vld [vmem:[%s3631_s3 + $0x40] sm:$0xff]  ;;  %vm421_vm1 = vcmp.le.s32.totalorder %v2867_v30, 8 }
  0x13   : > { %2297 = vmatpush3.msra.mxu1 %v459_v5  ;;  %2254 = vmatprep.subr.mxu0 %v1889_v6  ;;  %v346_v20 = vmul.f32 %v2835_v17, %v319_v15  ;;  %v347_v21 = vmul.f32 %v2835_v17, %v320_v16  ;;  %v2848_v22 = vld [vmem:[%s3630_s2] ss:$0 sm:$0xff]  ;;  %v1883_v26 = vld [vmem:[%s3631_s3 + $0xb0] sm:$0xff]  ;;  %v1882_v31 = vld [vmem:[%s3631_s3 + $0xa8] sm:$0xff] }
  0x14   : > { %2298 = vmatprep.subr.mxu1 %v458_v7  ;;  %2255 = vmatpush3.msra.mxu0 %v1889_v6  ;;  %v452_v27 = vld [vmem:[%s3631_s3 + $0x30] sm:$0xff]  ;;  %v451_v32 = vld [vmem:[%s3631_s3 + $0x28] sm:$0xff]  ;;  %v1881_v33 = vld [vmem:[%s3631_s3 + $0xa0] sm:$0xff] }
  0x15   : > { %2299 = vmatpush3.msra.mxu1 %v458_v7  ;;  %2256 = vmatprep.subr.mxu0 %v1888_v8  ;;  %v373_v28 = vadd.f32 %v2848_v22, %v346_v20  ;;  %v374_v29 = vadd.f32 %v2848_v22, %v347_v21  ;;  %v450_v34 = vld [vmem:[%s3631_s3 + $0x20] sm:$0xff]  ;;  %v1880_v37 = vld [vmem:[%s3631_s3 + $0x98] sm:$0xff]  ;;  %v1879_v39 = vld [vmem:[%s3631_s3 + $0x90] sm:$0xff] }
  0x16   : > { %2300 = vmatprep.subr.mxu1 %v457_v9  ;;  %2257 = vmatpush3.msra.mxu0 %v1888_v8  ;;  %v449_v38 = vld [vmem:[%s3631_s3 + $0x18] sm:$0xff]  ;;  %v448_v40 = vld [vmem:[%s3631_s3 + $0x10] sm:$0xff]  ;;  %v1878_v43 = vld [vmem:[%s3631_s3 + $0x88] sm:$0xff] }
  0x17   : > { %2301 = vmatpush3.msra.mxu1 %v457_v9  ;;  %2258 = vmatprep.subr.mxu0 %v1887_v10  ;;  %v2881_v35 = vmax.f32 %v373_v28, 0.0  ;;  %v394_v36 = vmax.f32 %v374_v29, 0.0  ;;  %v447_v44 = vld [vmem:[%s3631_s3 + $0x8] sm:$0xff]  ;;  %v321_v47 = vld [vmem:[%s2816_s28 + $0x20] sm:$0xff]  ;;  %v323_v53 = vld [vmem:[%s2816_s28 + $0x30] sm:$0xff] }
  0x18   : > { %2302 = vmatprep.subr.mxu1 %v456_v11  ;;  %2259 = vmatpush3.msra.mxu0 %v1887_v10  ;;  %v1877_v48 = vld [vmem:[%s3631_s3 + $0x80] sm:$0xff]  ;;  %v322_v52 = vld [vmem:[%s2816_s28 + $0x28] sm:$0x3]  ;;  %v324_v54 = vld [vmem:[%s2816_s28 + $0x38] sm:$0x3]  ;;  %v348_v55 = vmul.f32 %v2835_v17, %v321_v47  ;;  %v350_v60 = vmul.f32 %v2835_v17, %v323_v53 }
  0x19   : > { %2303 = vmatpush3.msra.mxu1 %v456_v11  ;;  %2260 = vmatprep.subr.mxu0 %v1886_v13  ;;  %v2900_v41 = vsel %vm414_vm0, %v2881_v35, 0.0  ;;  %v2904_v42 = vsel %vm421_vm1, %v394_v36, 0.0  ;;  %v446_v49 = vld [vmem:[%s3631_s3] sm:$0xff]  ;;  %v349_v57 = vmul.f32 %v2835_v17, %v322_v52  ;;  %v1915_v58 = vld [vmem:[%s3631_s3 + $0x178] sm:$0xff]  ;;  %v351_v61 = vmul.f32 %v2835_v17, %v324_v54  ;;  %v1914_v63 = vld [vmem:[%s3631_s3 + $0x170] sm:$0xff] }
  0x1a   : > { %2304 = vmatprep.subr.mxu1 %v455_v14  ;;  %2261 = vmatpush3.msra.mxu0 %v1886_v13  ;;  %v482_v45 = vrot.slane %v2900_v41, 1  ;;  %v483_v46 = vrot.slane %v2904_v42, 1  ;;  %v1931_v59 = vld [vmem:[%s3631_s3 + $0x1f8] sm:$0xff]  ;;  %v325_v62 = vld [vmem:[%s2816_s28 + $0x40] sm:$0xff]  ;;  %v1930_v0 = vld [vmem:[%s3631_s3 + $0x1f0] sm:$0xff]  ;;  %v375_v1 = vadd.f32 %v2848_v22, %v348_v55  ;;  %v377_v8 = vadd.f32 %v2848_v22, %v350_v60 }
  0x1b   : > { %2305 = vmatpush3.msra.mxu1 %v455_v14  ;;  %2262 = vmatprep.subr.mxu0 %v1885_v18  ;;  %v326_v2 = vld [vmem:[%s2816_s28 + $0x48] sm:$0x3]  ;;  %v376_v3 = vadd.f32 %v2848_v22, %v349_v57  ;;  %v327_v4 = vld [vmem:[%s2816_s28 + $0x50] sm:$0xff]  ;;  %v328_v5 = vld [vmem:[%s2816_s28 + $0x58] sm:$0x3]  ;;  %v378_v9 = vadd.f32 %v2848_v22, %v351_v61  ;;  %v352_v10 = vmul.f32 %v2835_v17, %v325_v62 }
  0x1c   : > { %2306 = vmatprep.subr.mxu1 %v454_v19  ;;  %2263 = vmatpush3.msra.mxu0 %v1885_v18  ;;  %v2929_v56 = vsel %vm478_vm2, %v482_v45, %v483_v46  ;;  %v1913_v6 = vld [vmem:[%s3631_s3 + $0x168] sm:$0xff]  ;;  %v353_v11 = vmul.f32 %v2835_v17, %v326_v2  ;;  %v1912_v12 = vld [vmem:[%s3631_s3 + $0x160] sm:$0xff]  ;;  %v2974_v14 = vmax.f32 %v375_v1, 0.0  ;;  %v354_v15 = vmul.f32 %v2835_v17, %v327_v4  ;;  %v1927_v21 = vld [vmem:[%s3631_s3 + $0x1d8] sm:$0xff] }
  0x1d   : > { %2307 = vmatpush3.msra.mxu1 %v454_v19  ;;  %2264 = vmatprep.subr.mxu0 %v1884_v24  ;;  %v1929_v7 = vld [vmem:[%s3631_s3 + $0x1e8] sm:$0xff]  ;;  %v1928_v13 = vld [vmem:[%s3631_s3 + $0x1e0] sm:$0xff]  ;;  %v355_v16 = vmul.f32 %v2835_v17, %v328_v5  ;;  %v1911_v19 = vld [vmem:[%s3631_s3 + $0x158] sm:$0xff]  ;;  %v396_v20 = vmax.f32 %v376_v3, 0.0 }
  0x1e   : > { %2308 = vmatprep.subr.mxu1 %v453_v25  ;;  %2265 = vmatpush3.msra.mxu0 %v1884_v24  ;;  %v333_v18 = vld [vmem:[%s2816_s28 + $0x80] sm:$0xff]  ;;  %v2985_v24 = vmax.f32 %v377_v8, 0.0  ;;  %v330_v28 = vld [vmem:[%s2816_s28 + $0x68] sm:$0x3]  ;;  %v1910_v29 = vld [vmem:[%s3631_s3 + $0x150] sm:$0xff]  ;;  %v381_v36 = vadd.f32 %v2848_v22, %v354_v15 }
  0x1f   : > { %2309 = vmatpush3.msra.mxu1 %v453_v25  ;;  %2266 = vmatprep.subr.mxu0 %v1883_v26  ;;  %v398_v25 = vmax.f32 %v378_v9, 0.0  ;;  %v334_v46 = vld [vmem:[%s2816_s28 + $0x88] sm:$0x3]  ;;  %v1908_v60 = vld [vmem:[%s3631_s3 + $0x140] sm:$0xff]  ;;  %v1907_v5 = vld [vmem:[%s3631_s3 + $0x138] sm:$0xff] }
  0x20   : > { %2310 = vmatprep.subr.mxu1 %v452_v27  ;;  %2267 = vmatpush3.msra.mxu0 %v1883_v26  ;;  %v379_v26 = vadd.f32 %v2848_v22, %v352_v10  ;;  %v1909_v47 = vld [vmem:[%s3631_s3 + $0x148] sm:$0xff]  ;;  %v361_v54 = vmul.f32 %v2835_v17, %v334_v46  ;;  %v1924_v61 = vld [vmem:[%s3631_s3 + $0x1c0] sm:$0xff]  ;;  %v1903_v30 = vld [vmem:[%s3631_s3 + $0x118] sm:$0xff] }
  0x21   : > { %2311 = vmatpush3.msra.mxu1 %v452_v27  ;;  %2268 = vmatprep.subr.mxu0 %v1882_v31  ;;  %v329_v27 = vld [vmem:[%s2816_s28 + $0x60] sm:$0xff]  ;;  %v3028_v52 = vsel %vm421_vm1, %v398_v25, 0.0  ;;  %v2018_v23 = vld [vmem:[%s3631_s3 + $0x438] sm:$0xff] }
  0x22   : > { %2312 = vmatprep.subr.mxu1 %v451_v32  ;;  %2269 = vmatpush3.msra.mxu0 %v1882_v31  ;;  %v380_v31 = vadd.f32 %v2848_v22, %v353_v11  ;;  %v3030_v53 = vmax.f32 %v379_v26, 0.0  ;;  %v489_v8 = vrot.slane %v3028_v52, 1 }
  0x23   : > { %2313 = vmatpush3.msra.mxu1 %v451_v32  ;;  %2270 = vmatprep.subr.mxu0 %v1881_v33  ;;  %v360_v32 = vmul.f32 %v2835_v17, %v333_v18 }
  0x24   : > { %2314 = vmatprep.subr.mxu1 %v450_v34  ;;  %2271 = vmatpush3.msra.mxu0 %v1881_v33  ;;  %v1926_v33 = vld [vmem:[%s3631_s3 + $0x1d0] sm:$0xff]  ;;  %v400_v55 = vmax.f32 %v380_v31, 0.0  ;;  %v3066_v9 = vsel %vm414_vm0, %v3030_v53, 0.0 }
  0x25   : > { %2315 = vmatpush3.msra.mxu1 %v450_v34  ;;  %2272 = vmatprep.subr.mxu0 %v1880_v37  ;;  %v3001_v34 = vsel %vm414_vm0, %v2974_v14, 0.0  ;;  %v387_v45 = vadd.f32 %v2848_v22, %v360_v32 }
  0x26   : > { %2316 = vmatprep.subr.mxu1 %v449_v38  ;;  %2273 = vmatpush3.msra.mxu0 %v1880_v37  ;;  %v382_v37 = vadd.f32 %v2848_v22, %v355_v16  ;;  %v485_v62 = vrot.slane %v3001_v34, 1  ;;  %v3070_v11 = vsel %vm421_vm1, %v400_v55, 0.0 }
  0x27   : > { %2317 = vmatpush3.msra.mxu1 %v449_v38  ;;  %2274 = vmatprep.subr.mxu0 %v1879_v39  ;;  %v331_v38 = vld [vmem:[%s2816_s28 + $0x70] sm:$0xff]  ;;  %v492_v31 = vrot.slane %v3070_v11, 1 }
  0x28   : > { %2318 = vmatprep.subr.mxu1 %v448_v40  ;;  %2275 = vmatpush3.msra.mxu0 %v1879_v39  ;;  %v332_v39 = vld [vmem:[%s2816_s28 + $0x78] sm:$0x3]  ;;  %v358_v57 = vmul.f32 %v2835_v17, %v331_v38  ;;  %v402_v1 = vmax.f32 %v382_v37, 0.0  ;;  %v1905_v37 = vld [vmem:[%s3631_s3 + $0x128] sm:$0xff]  ;;  %s2031_s28 = sshll.u32 %s3656_s21, 6 }
  0x29   : > { %2319 = vmatpush3.msra.mxu1 %v448_v40  ;;  %2276 = vmatprep.subr.mxu0 %v1878_v43  ;;  %v3009_v40 = vsel %vm421_vm1, %v396_v20, 0.0  ;;  %v1922_v20 = vld [vmem:[%s3631_s3 + $0x1b0] sm:$0xff]  ;;  %v1921_v38 = vld [vmem:[%s3631_s3 + $0x1a8] sm:$0xff]  ;;  %s3609_s21 = scalar_lea.vmem %s3634_s6, %s2031_s28 }
  0x2a   : > { %2320 = vmatprep.subr.mxu1 %v447_v44  ;;  %2277 = vmatpush3.msra.mxu0 %v1878_v43  ;;  %v356_v43 = vmul.f32 %v2835_v17, %v329_v27 }
  0x2b   : > { %2321 = vmatpush3.msra.mxu1 %v447_v44  ;;  %2278 = vmatprep.subr.mxu0 %v1877_v48  ;;  %v357_v44 = vmul.f32 %v2835_v17, %v330_v28 }
  0x2c   : > { %2322 = vmatprep.subr.mxu1 %v446_v49  ;;  %2279 = vmatpush3.msra.mxu0 %v1877_v48  ;;  %v1925_v48 = vld [vmem:[%s3631_s3 + $0x1c8] sm:$0xff]  ;;  %v383_v2 = vadd.f32 %v2848_v22, %v356_v43 }
  0x2d   : > { %2280 = vmatprep.mubr.f32.mxu0 %v2922_v51  ;;  %2323 = vmatpush3.msra.mxu1 %v446_v49  ;;  %v3024_v49 = vsel %vm414_vm0, %v2985_v24, 0.0  ;;  %v384_v3 = vadd.f32 %v2848_v22, %v357_v44 }
  0x2e   : > { %2281 = vmatmul.mubr.f32.vlgmr.msra.gmra.mxu0 %v2929_v56  ;;  %2325 = vmatmul.mubr.msk.f32.vlgmr.msra.gmra.mxu1 %vm414_vm0, %v2881_v35  ;;  %v3097_v25 = vmax.f32 %v383_v2, 0.0  ;;  %v1918_v2 = vld [vmem:[%s3631_s3 + $0x190] sm:$0xff] }
  0x2f   : > { %2336 = vmatprep.subr.mxu0 %v1915_v58  ;;  %2380 = vmatprep.subr.mxu1 %v1931_v59  ;;  %v404_v26 = vmax.f32 %v384_v3, 0.0 }
  0x30   : > { %2337 = vmatpush3.msra.mxu0 %v1915_v58  ;;  %2381 = vmatpush3.msra.mxu1 %v1931_v59  ;;  %v359_v58 = vmul.f32 %v2835_v17, %v332_v39  ;;  %v3035_v59 = vmax.f32 %v387_v45, 0.0  ;;  %v388_v17 = vadd.f32 %v2848_v22, %v361_v54  ;;  %v3129_v44 = vsel %vm414_vm0, %v3097_v25, 0.0 }
  0x31   : > { %2338 = vmatprep.subr.mxu0 %v1914_v63  ;;  %2382 = vmatprep.subr.mxu1 %v1930_v0  ;;  %v3133_v45 = vsel %vm421_vm1, %v404_v26, 0.0  ;;  %v748_v26 = vrot.slane %v3024_v49, 2 }
  0x32   : > { %2339 = vmatpush3.msra.mxu0 %v1914_v63  ;;  %2383 = vmatpush3.msra.mxu1 %v1930_v0  ;;  %v486_v63 = vrot.slane %v3009_v40, 1  ;;  %v3045_v0 = vmax.f32 %v381_v36, 0.0  ;;  %v3053_v4 = vsel %vm414_vm0, %v3035_v59, 0.0  ;;  %v408_v10 = vmax.f32 %v388_v17, 0.0 }
  0x33   : > { %2340 = vmatprep.subr.mxu0 %v1913_v6  ;;  %2384 = vmatprep.subr.mxu1 %v1929_v7  ;;  %v1033_v15 = vrot.slane %v3053_v4, 1 }
  0x34   : > { %2341 = vmatpush3.msra.mxu0 %v1913_v6  ;;  %2385 = vmatpush3.msra.mxu1 %v1929_v7  ;;  %v1923_v6 = vld [vmem:[%s3631_s3 + $0x1b8] sm:$0xff]  ;;  %v488_v7 = vrot.slane %v3024_v49, 1  ;;  %v3076_v16 = vsel %vm478_vm2, %v485_v62, %v486_v63  ;;  %v3081_v18 = vsel %vm414_vm0, %v3045_v0, 0.0 }
  0x35   : > { %2342 = vmatprep.subr.mxu0 %v1912_v12  ;;  %2386 = vmatprep.subr.mxu1 %v1928_v13  ;;  %v494_v39 = vrot.slane %v3081_v18, 1 }
  0x36   : > { %2343 = vmatpush3.msra.mxu0 %v1912_v12  ;;  %2387 = vmatpush3.msra.mxu1 %v1928_v13  ;;  %v385_v12 = vadd.f32 %v2848_v22, %v358_v57  ;;  %v386_v13 = vadd.f32 %v2848_v22, %v359_v58  ;;  %v1906_v22 = vld [vmem:[%s3631_s3 + $0x130] sm:$0xff]  ;;  %v3101_v28 = vsel %vm478_vm2, %v488_v7, %v489_v8  ;;  %v497_v58 = vrot.slane %v3129_v44, 1 }
  0x37   : > { %2344 = vmatprep.subr.mxu0 %v1911_v19  ;;  %2388 = vmatprep.subr.mxu1 %v1927_v21  ;;  %v742_v7 = vrot.slane %v2900_v41, 2  ;;  %v743_v8 = vrot.slane %v2904_v42, 2  ;;  %v3209_v41 = vrot.slane %v2726_v50, 2 }
  0x38   : > { %2345 = vmatpush3.msra.mxu0 %v1911_v19  ;;  %2389 = vmatpush3.msra.mxu1 %v1927_v21  ;;  %v3085_v19 = vsel %vm421_vm1, %v408_v10, 0.0  ;;  %v3095_v21 = vsel %vm421_vm1, %v402_v1, 0.0  ;;  %v3109_v32 = vmax.f32 %v385_v12, 0.0  ;;  %v1902_v1 = vld [vmem:[%s3631_s3 + $0x110] sm:$0xff]  ;;  %v1900_v10 = vld [vmem:[%s3631_s3 + $0x100] sm:$0xff] }
  0x39   : > { %2346 = vmatprep.subr.mxu0 %v1910_v29  ;;  %2390 = vmatprep.subr.mxu1 %v1926_v33  ;;  %v1034_v27 = vrot.slane %v3085_v19, 1  ;;  %v495_v43 = vrot.slane %v3095_v21, 1  ;;  %v1916_v12 = vld [vmem:[%s3631_s3 + $0x180] sm:$0xff]  ;;  %v3212_v42 = vsel %vm738_vm3, %v742_v7, %v743_v8  ;;  %v1945_v7 = vld [vmem:[%s3631_s3 + $0x228] sm:$0xff] }
  0x3a   : > { %2347 = vmatpush3.msra.mxu0 %v1910_v29  ;;  %2391 = vmatpush3.msra.mxu1 %v1926_v33  ;;  %v491_v29 = vrot.slane %v3066_v9, 1  ;;  %v406_v33 = vmax.f32 %v386_v13, 0.0  ;;  %v3147_v54 = vsel %vm414_vm0, %v3109_v32, 0.0  ;;  %v745_v13 = vrot.slane %v3001_v34, 2  ;;  %v1954_v34 = vld [vmem:[%s3631_s3 + $0x270] sm:$0xff]  ;;  %v1961_v8 = vld [vmem:[%s3631_s3 + $0x2a8] sm:$0xff] }
  0x3b   : > { %2348 = vmatprep.subr.mxu0 %v1909_v47  ;;  %2392 = vmatprep.subr.mxu1 %v1925_v48  ;;  %v3112_v36 = vsel %vm478_vm2, %v1033_v15, %v1034_v27  ;;  %v3154_v57 = vsel %vm478_vm2, %v494_v39, %v495_v43  ;;  %v500_v62 = vrot.slane %v3147_v54, 1  ;;  %v746_v15 = vrot.slane %v3009_v40, 2  ;;  %v1970_v40 = vld [vmem:[%s3631_s3 + $0x2f0] sm:$0xff]  ;;  %v1952_v39 = vld [vmem:[%s3631_s3 + $0x260] sm:$0xff]  ;;  %v1967_v43 = vld [vmem:[%s3631_s3 + $0x2d8] sm:$0xff] }
  0x3c   : > { %2349 = vmatpush3.msra.mxu0 %v1909_v47  ;;  %2393 = vmatpush3.msra.mxu1 %v1925_v48  ;;  %v3136_v46 = vsel %vm478_vm2, %v491_v29, %v492_v31  ;;  %v1904_v47 = vld [vmem:[%s3631_s3 + $0x120] sm:$0xff]  ;;  %v3151_v55 = vsel %vm421_vm1, %v406_v33, 0.0  ;;  %v749_v27 = vrot.slane %v3028_v52, 2  ;;  %v1953_v52 = vld [vmem:[%s3631_s3 + $0x268] sm:$0xff]  ;;  %v751_v31 = vrot.slane %v3066_v9, 2 }
  0x3d   : > { %2350 = vmatprep.subr.mxu0 %v1908_v60  ;;  %2394 = vmatprep.subr.mxu1 %v1924_v61  ;;  %v1920_v48 = vld [vmem:[%s3631_s3 + $0x1a0] sm:$0xff]  ;;  %v501_v63 = vrot.slane %v3151_v55, 1  ;;  %v3239_v49 = vsel %vm738_vm3, %v745_v13, %v746_v15  ;;  %v1969_v29 = vld [vmem:[%s3631_s3 + $0x2e8] sm:$0xff]  ;;  %v752_v33 = vrot.slane %v3070_v11, 2  ;;  %v1943_v13 = vld [vmem:[%s3631_s3 + $0x218] sm:$0xff] }
  0x3e   : > { %2351 = vmatpush3.msra.mxu0 %v1908_v60  ;;  %2395 = vmatpush3.msra.mxu1 %v1924_v61  ;;  %v498_v60 = vrot.slane %v3133_v45, 1  ;;  %v1919_v61 = vld [vmem:[%s3631_s3 + $0x198] sm:$0xff]  ;;  %v1968_v9 = vld [vmem:[%s3631_s3 + $0x2e0] sm:$0xff] }
  0x3f   : > { %2352 = vmatprep.subr.mxu0 %v1907_v5  ;;  %2396 = vmatprep.subr.mxu1 %v1923_v6  ;;  %v3184_v3 = vsel %vm478_vm2, %v500_v62, %v501_v63  ;;  %v3266_v11 = vsel %vm738_vm3, %v751_v31, %v752_v33  ;;  %v1948_v62 = vld [vmem:[%s3631_s3 + $0x240] sm:$0xff]  ;;  %v1959_v15 = vld [vmem:[%s3631_s3 + $0x298] sm:$0xff]  ;;  %v1986_v31 = vld [vmem:[%s3631_s3 + $0x370] sm:$0xff] }
  0x40   : > { %2353 = vmatpush3.msra.mxu0 %v1907_v5  ;;  %2397 = vmatpush3.msra.mxu1 %v1923_v6  ;;  %v3175_v17 = vsel %vm478_vm2, %v497_v58, %v498_v60  ;;  %v1901_v5 = vld [vmem:[%s3631_s3 + $0x108] sm:$0xff]  ;;  %v760_v58 = vrot.slane %v3147_v54, 2  ;;  %v761_v60 = vrot.slane %v3151_v55, 2  ;;  %v1964_v63 = vld [vmem:[%s3631_s3 + $0x2c0] sm:$0xff] }
  0x41   : > { %2283 = vmatprep.mubr.f32.mxu0 %v3076_v16  ;;  %2327 = vmatprep.mubr.msk.f32.mxu1 %vm414_vm0, %v2974_v14  ;;  %v1917_v6 = vld [vmem:[%s3631_s3 + $0x188] sm:$0xff] }
  0x42   : > { %2354 = vmatprep.subr.mxu0 %v1906_v22  ;;  %2398 = vmatprep.subr.mxu1 %v1922_v20  ;;  %v3299_v54 = vsel %vm738_vm3, %v760_v58, %v761_v60  ;;  %v1949_v55 = vld [vmem:[%s3631_s3 + $0x248] sm:$0xff] }
  0x43   : > { %2284 = vmatmul.mubr.f32.gmra.mxu0 %v3101_v28  ;;  %2328 = vmatmul.mubr.msk.f32.gmra.mxu1 %vm414_vm0, %v2985_v24  ;;  %v2008_v33 = vld [vmem:[%s3631_s3 + $0x3e8] sm:$0xff] }
  0x44   : > { %2355 = vmatpush3.msra.mxu0 %v1906_v22  ;;  %2399 = vmatpush3.msra.mxu1 %v1922_v20  ;;  %v1955_v22 = vld [vmem:[%s3631_s3 + $0x278] sm:$0xff]  ;;  %v1981_v58 = vld [vmem:[%s3631_s3 + $0x348] sm:$0xff] }
  0x45   : > { %2356 = vmatprep.subr.mxu0 %v1905_v37  ;;  %2400 = vmatprep.subr.mxu1 %v1921_v38  ;;  %v1971_v20 = vld [vmem:[%s3631_s3 + $0x2f8] sm:$0xff]  ;;  %v2004_v60 = vld [vmem:[%s3631_s3 + $0x3c8] sm:$0xff] }
  0x46   : > { %2357 = vmatpush3.msra.mxu0 %v1905_v37  ;;  %2401 = vmatpush3.msra.mxu1 %v1921_v38  ;;  %v754_v37 = vrot.slane %v3081_v18, 2  ;;  %v755_v38 = vrot.slane %v3095_v21, 2  ;;  %v1951_v21 = vld [vmem:[%s3631_s3 + $0x258] sm:$0xff] }
  0x47   : > { %2286 = vmatprep.mubr.f32.mxu0 %v3136_v46  ;;  %2330 = vmatprep.mubr.msk.f32.mxu1 %vm414_vm0, %v3030_v53 }
  0x48   : > { %2358 = vmatprep.subr.mxu0 %v1904_v47  ;;  %2402 = vmatprep.subr.mxu1 %v1920_v48  ;;  %v3269_v18 = vsel %vm738_vm3, %v754_v37, %v755_v38  ;;  %v1984_v37 = vld [vmem:[%s3631_s3 + $0x360] sm:$0xff] }
  0x49   : > { %2287 = vmatmul.mubr.f32.gmra.mxu0 %v3154_v57  ;;  %2331 = vmatmul.mubr.msk.f32.gmra.mxu1 %vm414_vm0, %v3045_v0  ;;  %v2007_v38 = vld [vmem:[%s3631_s3 + $0x3e0] sm:$0xff] }
  0x4a   : > { %2359 = vmatpush3.msra.mxu0 %v1904_v47  ;;  %2403 = vmatpush3.msra.mxu1 %v1920_v48  ;;  %v757_v47 = vrot.slane %v3129_v44, 2  ;;  %v758_v48 = vrot.slane %v3133_v45, 2  ;;  %v1966_v44 = vld [vmem:[%s3631_s3 + $0x2d0] sm:$0xff] }
  0x4b   : > { %2360 = vmatprep.subr.mxu0 %v1903_v30  ;;  %2404 = vmatprep.subr.mxu1 %v1919_v61 }
  0x4c   : > { %2361 = vmatpush3.msra.mxu0 %v1903_v30  ;;  %2405 = vmatpush3.msra.mxu1 %v1919_v61  ;;  %v1950_v30 = vld [vmem:[%s3631_s3 + $0x250] sm:$0xff]  ;;  %v3296_v45 = vsel %vm738_vm3, %v757_v47, %v758_v48  ;;  %v1965_v61 = vld [vmem:[%s3631_s3 + $0x2c8] sm:$0xff]  ;;  %v1167_v47 = vrot.slane %v3053_v4, 2  ;;  %v1168_v48 = vrot.slane %v3085_v19, 2  ;;  %v1980_v4 = vld [vmem:[%s3631_s3 + $0x340] sm:$0xff] }
  0x4d   : > { %2289 = vmatprep.mubr.f32.mxu0 %v3175_v17  ;;  %2333 = vmatprep.mubr.msk.f32.mxu1 %vm414_vm0, %v3097_v25 }
  0x4e   : > { %2362 = vmatprep.subr.mxu0 %v1902_v1  ;;  %2406 = vmatprep.subr.mxu1 %v1918_v2  ;;  %v3434_v19 = vsel %vm738_vm3, %v1167_v47, %v1168_v48 }
  0x4f   : > { %2290 = vmatmul.mubr.f32.gmra.mxu0 %v3184_v3  ;;  %2334 = vmatmul.mubr.msk.f32.gmra.mxu1 %vm414_vm0, %v3109_v32 }
  0x50   : > { %2363 = vmatpush3.msra.mxu0 %v1902_v1  ;;  %2407 = vmatpush3.msra.mxu1 %v1918_v2  ;;  %v1947_v1 = vld [vmem:[%s3631_s3 + $0x238] sm:$0xff] }
  0x51   : > { %2364 = vmatprep.subr.mxu0 %v1901_v5  ;;  %2408 = vmatprep.subr.mxu1 %v1917_v6  ;;  %v1963_v2 = vld [vmem:[%s3631_s3 + $0x2b8] sm:$0xff] }
  0x52   : > { %2365 = vmatpush3.msra.mxu0 %v1901_v5  ;;  %2409 = vmatpush3.msra.mxu1 %v1917_v6  ;;  %v1946_v5 = vld [vmem:[%s3631_s3 + $0x230] sm:$0xff] }
  0x53   : > { %2366 = vmatprep.subr.mxu0 %v1900_v10  ;;  %2410 = vmatprep.subr.mxu1 %v1916_v12  ;;  %v1962_v6 = vld [vmem:[%s3631_s3 + $0x2b0] sm:$0xff] }
  0x54   : > { %2367 = vmatpush3.msra.mxu0 %v1900_v10  ;;  %2368 = vmatprep.mubr.f32.mxu0 %v3209_v41  ;;  %v1944_v10 = vld [vmem:[%s3631_s3 + $0x220] sm:$0xff] }
  0x55   : > { %2411 = vmatpush3.msra.mxu1 %v1916_v12  ;;  %2412 = vmatprep.mubr.msk.f32.mxu1 %vm414_vm0, %v2881_v35  ;;  %v3242_v35 = vsel %vm738_vm3, %v748_v26, %v749_v27  ;;  %v1960_v12 = vld [vmem:[%s3631_s3 + $0x2a0] sm:$0xff]  ;;  %v1941_v26 = vld [vmem:[%s3631_s3 + $0x208] sm:$0xff] }
  0x56   : > { %2369 = vmatmul.mubr.f32.vlgmr.msra.gmra.mxu0 %v3212_v42  ;;  %2413 = vmatmul.mubr.msk.f32.vlgmr.msra.gmra.mxu1 %vm414_vm0, %v2974_v14  ;;  %v1957_v27 = vld [vmem:[%s3631_s3 + $0x288] sm:$0xff] }
  0x57   : > { %2424 = vmatprep.subr.mxu0 %v1955_v22  ;;  %2468 = vmatprep.subr.mxu1 %v1971_v20 }
  0x58   : > { %2425 = vmatpush3.msra.mxu0 %v1955_v22  ;;  %2469 = vmatpush3.msra.mxu1 %v1971_v20  ;;  %v1942_v22 = vld [vmem:[%s3631_s3 + $0x210] sm:$0xff] }
  0x59   : > { %2426 = vmatprep.subr.mxu0 %v1954_v34  ;;  %2470 = vmatprep.subr.mxu1 %v1970_v40  ;;  %v1958_v20 = vld [vmem:[%s3631_s3 + $0x290] sm:$0xff] }
  0x5a   : > { %2371 = vmatprep.mubr.f32.mxu0 %v3239_v49  ;;  %2427 = vmatpush3.msra.mxu0 %v1954_v34  ;;  %v1940_v34 = vld [vmem:[%s3631_s3 + $0x200] sm:$0xff] }
  0x5b   : > { %2471 = vmatpush3.msra.mxu1 %v1970_v40  ;;  %2372 = vmatmul.mubr.f32.gmra.mxu0 %v3242_v35  ;;  %v1956_v40 = vld [vmem:[%s3631_s3 + $0x280] sm:$0xff] }
  0x5c   : > { %2428 = vmatprep.subr.mxu0 %v1953_v52  ;;  %2472 = vmatprep.subr.mxu1 %v1969_v29 }
  0x5d   : > { %2415 = vmatprep.mubr.msk.f32.mxu1 %vm414_vm0, %v2985_v24  ;;  %2429 = vmatpush3.msra.mxu0 %v1953_v52  ;;  %v1987_v52 = vld [vmem:[%s3631_s3 + $0x378] sm:$0xff] }
  0x5e   : > { %2473 = vmatpush3.msra.mxu1 %v1969_v29  ;;  %2430 = vmatprep.subr.mxu0 %v1952_v39  ;;  %v2010_v29 = vld [vmem:[%s3631_s3 + $0x3f8] sm:$0xff] }
  0x5f   : > { %2416 = vmatmul.mubr.msk.f32.gmra.mxu1 %vm414_vm0, %v3030_v53  ;;  %2474 = vmatprep.subr.mxu1 %v1968_v9 }
  0x60   : > { %2374 = vmatprep.mubr.f32.mxu0 %v3266_v11  ;;  %2431 = vmatpush3.msra.mxu0 %v1952_v39  ;;  %v1983_v39 = vld [vmem:[%s3631_s3 + $0x358] sm:$0xff] }
  0x61   : > { %2475 = vmatpush3.msra.mxu1 %v1968_v9  ;;  %2375 = vmatmul.mubr.f32.gmra.mxu0 %v3269_v18  ;;  %v2006_v9 = vld [vmem:[%s3631_s3 + $0x3d8] sm:$0xff] }
  0x62   : > { %2432 = vmatprep.subr.mxu0 %v1951_v21  ;;  %2476 = vmatprep.subr.mxu1 %v1967_v43 }
  0x63   : > { %2418 = vmatprep.mubr.msk.f32.mxu1 %vm414_vm0, %v3045_v0  ;;  %2433 = vmatpush3.msra.mxu0 %v1951_v21  ;;  %v1982_v21 = vld [vmem:[%s3631_s3 + $0x350] sm:$0xff] }
  0x64   : > { %2477 = vmatpush3.msra.mxu1 %v1967_v43  ;;  %2434 = vmatprep.subr.mxu0 %v1950_v30  ;;  %v2005_v43 = vld [vmem:[%s3631_s3 + $0x3d0] sm:$0xff] }
  0x65   : > { %2419 = vmatmul.mubr.msk.f32.gmra.mxu1 %vm414_vm0, %v3097_v25  ;;  %2478 = vmatprep.subr.mxu1 %v1966_v44 }
  0x66   : > { %2377 = vmatprep.mubr.f32.mxu0 %v3296_v45  ;;  %2435 = vmatpush3.msra.mxu0 %v1950_v30  ;;  %v2003_v30 = vld [vmem:[%s3631_s3 + $0x3c0] sm:$0xff] }
  0x67   : > { %2479 = vmatpush3.msra.mxu1 %v1966_v44  ;;  %2378 = vmatmul.mubr.f32.gmra.mxu0 %v3299_v54  ;;  %v1979_v44 = vld [vmem:[%s3631_s3 + $0x338] sm:$0xff] }
  0x68   : > { %2436 = vmatprep.subr.mxu0 %v1949_v55  ;;  %2480 = vmatprep.subr.mxu1 %v1965_v61 }
  0x69   : > { %2421 = vmatprep.mubr.msk.f32.mxu1 %vm414_vm0, %v3109_v32  ;;  %2437 = vmatpush3.msra.mxu0 %v1949_v55  ;;  %v2002_v55 = vld [vmem:[%s3631_s3 + $0x3b8] sm:$0xff] }
  0x6a   : > { %2481 = vmatpush3.msra.mxu1 %v1965_v61  ;;  %2438 = vmatprep.subr.mxu0 %v1948_v62  ;;  %v1978_v61 = vld [vmem:[%s3631_s3 + $0x330] sm:$0xff] }
  0x6b   : > { %2422 = vmatmul.mubr.msk.f32.gmra.mxu1 %vm414_vm0, %v3035_v59  ;;  %2482 = vmatprep.subr.mxu1 %v1964_v63 }
  0x6c   : > { %2439 = vmatpush3.msra.mxu0 %v1948_v62  ;;  %2483 = vmatpush3.msra.mxu1 %v1964_v63  ;;  %v2001_v62 = vld [vmem:[%s3631_s3 + $0x3b0] sm:$0xff]  ;;  %v1977_v63 = vld [vmem:[%s3631_s3 + $0x328] sm:$0xff] }
  0x6d   : > { %2440 = vmatprep.subr.mxu0 %v1947_v1  ;;  %2484 = vmatprep.subr.mxu1 %v1963_v2 }
  0x6e   : > { %2441 = vmatpush3.msra.mxu0 %v1947_v1  ;;  %2485 = vmatpush3.msra.mxu1 %v1963_v2  ;;  %v2000_v1 = vld [vmem:[%s3631_s3 + $0x3a8] sm:$0xff]  ;;  %v1976_v2 = vld [vmem:[%s3631_s3 + $0x320] sm:$0xff] }
  0x6f   : > { %2442 = vmatprep.subr.mxu0 %v1946_v5  ;;  %2486 = vmatprep.subr.mxu1 %v1962_v6 }
  0x70   : > { %2443 = vmatpush3.msra.mxu0 %v1946_v5  ;;  %2487 = vmatpush3.msra.mxu1 %v1962_v6  ;;  %v1999_v5 = vld [vmem:[%s3631_s3 + $0x3a0] sm:$0xff]  ;;  %v1975_v6 = vld [vmem:[%s3631_s3 + $0x318] sm:$0xff] }
  0x71   : > { %2444 = vmatprep.subr.mxu0 %v1945_v7  ;;  %2488 = vmatprep.subr.mxu1 %v1961_v8 }
  0x72   : > { %2445 = vmatpush3.msra.mxu0 %v1945_v7  ;;  %2489 = vmatpush3.msra.mxu1 %v1961_v8  ;;  %v1998_v7 = vld [vmem:[%s3631_s3 + $0x398] sm:$0xff]  ;;  %v1974_v8 = vld [vmem:[%s3631_s3 + $0x310] sm:$0xff] }
  0x73   : > { %2446 = vmatprep.subr.mxu0 %v1944_v10  ;;  %2490 = vmatprep.subr.mxu1 %v1960_v12 }
  0x74   : > { %2447 = vmatpush3.msra.mxu0 %v1944_v10  ;;  %2491 = vmatpush3.msra.mxu1 %v1960_v12  ;;  %v1997_v10 = vld [vmem:[%s3631_s3 + $0x390] sm:$0xff]  ;;  %v1973_v12 = vld [vmem:[%s3631_s3 + $0x308] sm:$0xff] }
  0x75   : > { %2448 = vmatprep.subr.mxu0 %v1943_v13  ;;  %2492 = vmatprep.subr.mxu1 %v1959_v15 }
  0x76   : > { %2449 = vmatpush3.msra.mxu0 %v1943_v13  ;;  %2493 = vmatpush3.msra.mxu1 %v1959_v15  ;;  %v1996_v13 = vld [vmem:[%s3631_s3 + $0x388] sm:$0xff]  ;;  %v1972_v15 = vld [vmem:[%s3631_s3 + $0x300] sm:$0xff] }
  0x77   : > { %2450 = vmatprep.subr.mxu0 %v1942_v22  ;;  %2494 = vmatprep.subr.mxu1 %v1958_v20 }
  0x78   : > { %2451 = vmatpush3.msra.mxu0 %v1942_v22  ;;  %2495 = vmatpush3.msra.mxu1 %v1958_v20  ;;  %v1995_v22 = vld [vmem:[%s3631_s3 + $0x380] sm:$0xff]  ;;  %v2026_v20 = vld [vmem:[%s3631_s3 + $0x478] sm:$0xff] }
  0x79   : > { %2452 = vmatprep.subr.mxu0 %v1941_v26  ;;  %2496 = vmatprep.subr.mxu1 %v1957_v27 }
  0x7a   : > { %2453 = vmatpush3.msra.mxu0 %v1941_v26  ;;  %2497 = vmatpush3.msra.mxu1 %v1957_v27  ;;  %v2025_v26 = vld [vmem:[%s3631_s3 + $0x470] sm:$0xff] }
  0x7b   : > { %2454 = vmatprep.subr.mxu0 %v1940_v34  ;;  %2498 = vmatprep.subr.mxu1 %v1956_v40 }
  0x7c   : > { %2455 = vmatpush3.msra.mxu0 %v1940_v34  ;;  %2456 = vmatprep.mubr.f32.mxu0 %v2929_v56  ;;  %v2009_v56 = vld [vmem:[%s3631_s3 + $0x3f0] sm:$0xff] }
  0x7d   : > { %2499 = vmatpush3.msra.mxu1 %v1956_v40  ;;  %2500 = vmatprep.mubr.f32.mxu1 %v3212_v42  ;;  %v1985_v42 = vld [vmem:[%s3631_s3 + $0x368] sm:$0xff] }
  0x7e   : > { %2457 = vmatmul.mubr.f32.vlgmr.msra.gmra.mxu0 %v3076_v16  ;;  %2501 = vmatmul.mubr.f32.vlgmr.msra.gmra.mxu1 %v3239_v49 }
  0x7f   : > { %2512 = vmatprep.subr.mxu0 %v1987_v52  ;;  %2556 = vmatprep.subr.mxu1 %v2010_v29 }
  0x80   : > { %2513 = vmatpush3.msra.mxu0 %v1987_v52  ;;  %2557 = vmatpush3.msra.mxu1 %v2010_v29 }
  0x81   : > { %2514 = vmatprep.subr.mxu0 %v1986_v31  ;;  %2558 = vmatprep.subr.mxu1 %v2009_v56 }
  0x82   : > { %2459 = vmatprep.mubr.f32.mxu0 %v3101_v28  ;;  %2515 = vmatpush3.msra.mxu0 %v1986_v31 }
  0x83   : > { %2559 = vmatpush3.msra.mxu1 %v2009_v56  ;;  %2460 = vmatmul.mubr.f32.gmra.mxu0 %v3136_v46 }
  0x84   : > { %2516 = vmatprep.subr.mxu0 %v1985_v42  ;;  %2560 = vmatprep.subr.mxu1 %v2008_v33 }
  0x85   : > { %2503 = vmatprep.mubr.f32.mxu1 %v3242_v35  ;;  %2517 = vmatpush3.msra.mxu0 %v1985_v42 }
  0x86   : > { %2561 = vmatpush3.msra.mxu1 %v2008_v33  ;;  %2518 = vmatprep.subr.mxu0 %v1984_v37 }
  0x87   : > { %2504 = vmatmul.mubr.f32.gmra.mxu1 %v3266_v11  ;;  %2562 = vmatprep.subr.mxu1 %v2007_v38 }
  0x88   : > { %2462 = vmatprep.mubr.f32.mxu0 %v3154_v57  ;;  %2519 = vmatpush3.msra.mxu0 %v1984_v37 }
  0x89   : > { %2563 = vmatpush3.msra.mxu1 %v2007_v38  ;;  %2463 = vmatmul.mubr.f32.gmra.mxu0 %v3175_v17 }
  0x8a   : > { %2520 = vmatprep.subr.mxu0 %v1983_v39  ;;  %2564 = vmatprep.subr.mxu1 %v2006_v9 }
  0x8b   : > { %2506 = vmatprep.mubr.f32.mxu1 %v3269_v18  ;;  %2521 = vmatpush3.msra.mxu0 %v1983_v39 }
  0x8c   : > { %2565 = vmatpush3.msra.mxu1 %v2006_v9  ;;  %2522 = vmatprep.subr.mxu0 %v1982_v21 }
  0x8d   : > { %2507 = vmatmul.mubr.f32.gmra.mxu1 %v3296_v45  ;;  %2566 = vmatprep.subr.mxu1 %v2005_v43 }
  0x8e   : > { %2465 = vmatprep.mubr.f32.mxu0 %v3184_v3  ;;  %2523 = vmatpush3.msra.mxu0 %v1982_v21 }
  0x8f   : > { %2567 = vmatpush3.msra.mxu1 %v2005_v43  ;;  %2466 = vmatmul.mubr.f32.gmra.mxu0 %v3112_v36 }
  0x90   : > { %2524 = vmatprep.subr.mxu0 %v1981_v58  ;;  %2568 = vmatprep.subr.mxu1 %v2004_v60 }
  0x91   : > { %2509 = vmatprep.mubr.f32.mxu1 %v3299_v54  ;;  %2525 = vmatpush3.msra.mxu0 %v1981_v58 }
  0x92   : > { %2569 = vmatpush3.msra.mxu1 %v2004_v60  ;;  %2526 = vmatprep.subr.mxu0 %v1980_v4 }
  0x93   : > { %2510 = vmatmul.mubr.f32.gmra.mxu1 %v3434_v19  ;;  %2570 = vmatprep.subr.mxu1 %v2003_v30 }
  0x94   : > { %2527 = vmatpush3.msra.mxu0 %v1980_v4  ;;  %2571 = vmatpush3.msra.mxu1 %v2003_v30 }
  0x95   : > { %2528 = vmatprep.subr.mxu0 %v1979_v44  ;;  %2572 = vmatprep.subr.mxu1 %v2002_v55 }
  0x96   : > { %2529 = vmatpush3.msra.mxu0 %v1979_v44  ;;  %2573 = vmatpush3.msra.mxu1 %v2002_v55 }
  0x97   : > { %2530 = vmatprep.subr.mxu0 %v1978_v61  ;;  %2574 = vmatprep.subr.mxu1 %v2001_v62 }
  0x98   : > { %2531 = vmatpush3.msra.mxu0 %v1978_v61  ;;  %2575 = vmatpush3.msra.mxu1 %v2001_v62 }
  0x99   : > { %2532 = vmatprep.subr.mxu0 %v1977_v63  ;;  %2576 = vmatprep.subr.mxu1 %v2000_v1 }
  0x9a   : > { %2533 = vmatpush3.msra.mxu0 %v1977_v63  ;;  %2577 = vmatpush3.msra.mxu1 %v2000_v1 }
  0x9b   : > { %2534 = vmatprep.subr.mxu0 %v1976_v2  ;;  %2578 = vmatprep.subr.mxu1 %v1999_v5 }
  0x9c   : > { %2535 = vmatpush3.msra.mxu0 %v1976_v2  ;;  %2579 = vmatpush3.msra.mxu1 %v1999_v5 }
  0x9d   : > { %2536 = vmatprep.subr.mxu0 %v1975_v6  ;;  %2580 = vmatprep.subr.mxu1 %v1998_v7 }
  0x9e   : > { %2537 = vmatpush3.msra.mxu0 %v1975_v6  ;;  %2581 = vmatpush3.msra.mxu1 %v1998_v7 }
  0x9f   : > { %2538 = vmatprep.subr.mxu0 %v1974_v8  ;;  %2582 = vmatprep.subr.mxu1 %v1997_v10 }
  0xa0   : > { %2539 = vmatpush3.msra.mxu0 %v1974_v8  ;;  %2583 = vmatpush3.msra.mxu1 %v1997_v10 }
  0xa1   : > { %2540 = vmatprep.subr.mxu0 %v1973_v12  ;;  %2584 = vmatprep.subr.mxu1 %v1996_v13 }
  0xa2   : > { %2541 = vmatpush3.msra.mxu0 %v1973_v12  ;;  %2585 = vmatpush3.msra.mxu1 %v1996_v13 }
  0xa3   : > { %2542 = vmatprep.subr.mxu0 %v1972_v15  ;;  %2586 = vmatprep.subr.mxu1 %v1995_v22 }
  0xa4   : > { %2543 = vmatpush3.msra.mxu0 %v1972_v15  ;;  %2544 = vmatprep.mubr.msk.f32.mxu0 %vm414_vm0, %v2974_v14  ;;  %v2024_v14 = vld [vmem:[%s3631_s3 + $0x468] sm:$0xff] }
  0xa5   : > { %2587 = vmatpush3.msra.mxu1 %v1995_v22  ;;  %2588 = vmatprep.mubr.f32.mxu1 %v3076_v16  ;;  %v2020_v16 = vld [vmem:[%s3631_s3 + $0x448] sm:$0xff] }
  0xa6   : > { %2545 = vmatmul.mubr.msk.f32.vlgmr.msra.gmra.mxu0 %vm414_vm0, %v2985_v24  ;;  %2589 = vmatmul.mubr.f32.vlgmr.msra.gmra.mxu1 %v3101_v28  ;;  %v2023_v24 = vld [vmem:[%s3631_s3 + $0x460] sm:$0xff]  ;;  %v2014_v28 = vld [vmem:[%s3631_s3 + $0x418] sm:$0xff] }
  0xa7   : > { %2600 = vmatprep.subr.mxu0 %v2026_v20  ;;  %2644 = vmatprep.subr.mxu1 %v2026_v20 }
  0xa8   : > { %2601 = vmatpush3.msra.mxu0 %v2026_v20  ;;  %2660 = vmatpush3.msra.mxu1 %v2026_v20 }
  0xa9   : > { %2602 = vmatprep.subr.mxu0 %v2025_v26  ;;  %2645 = vmatprep.subr.mxu1 %v2025_v26 }
  0xaa   : > { %2547 = vmatprep.mubr.msk.f32.mxu0 %vm414_vm0, %v3030_v53  ;;  %2603 = vmatpush3.msra.mxu0 %v2025_v26  ;;  %v2022_v53 = vld [vmem:[%s3631_s3 + $0x458] sm:$0xff] }
  0xab   : > { %2661 = vmatpush3.msra.mxu1 %v2025_v26  ;;  %2548 = vmatmul.mubr.msk.f32.gmra.mxu0 %vm414_vm0, %v3045_v0  ;;  %v2021_v0 = vld [vmem:[%s3631_s3 + $0x450] sm:$0xff] }
  0xac   : > { %2604 = vmatprep.subr.mxu0 %v2024_v14  ;;  %2646 = vmatprep.subr.mxu1 %v2024_v14 }
  0xad   : > { %2591 = vmatprep.mubr.f32.mxu1 %v3136_v46  ;;  %2605 = vmatpush3.msra.mxu0 %v2024_v14  ;;  %v2011_v46 = vld [vmem:[%s3631_s3 + $0x400] sm:$0xff] }
  0xae   : > { %2662 = vmatpush3.msra.mxu1 %v2024_v14  ;;  %2606 = vmatprep.subr.mxu0 %v2023_v24 }
  0xaf   : > { %2592 = vmatmul.mubr.f32.gmra.mxu1 %v3154_v57  ;;  %2647 = vmatprep.subr.mxu1 %v2023_v24 }
  0xb0   : > { %2550 = vmatprep.mubr.msk.f32.mxu0 %vm414_vm0, %v3097_v25  ;;  %2607 = vmatpush3.msra.mxu0 %v2023_v24  ;;  %v2019_v25 = vld [vmem:[%s3631_s3 + $0x440] sm:$0xff] }
  0xb1   : > { %2663 = vmatpush3.msra.mxu1 %v2023_v24  ;;  %2551 = vmatmul.mubr.msk.f32.gmra.mxu0 %vm414_vm0, %v3109_v32  ;;  %v2013_v32 = vld [vmem:[%s3631_s3 + $0x410] sm:$0xff] }
  0xb2   : > { %2608 = vmatprep.subr.mxu0 %v2022_v53  ;;  %2648 = vmatprep.subr.mxu1 %v2022_v53 }
  0xb3   : > { %2594 = vmatprep.mubr.f32.mxu1 %v3175_v17  ;;  %2609 = vmatpush3.msra.mxu0 %v2022_v53 }
  0xb4   : > { %2664 = vmatpush3.msra.mxu1 %v2022_v53  ;;  %2610 = vmatprep.subr.mxu0 %v2021_v0 }
  0xb5   : > { %2595 = vmatmul.mubr.f32.gmra.mxu1 %v3184_v3  ;;  %2649 = vmatprep.subr.mxu1 %v2021_v0 }
  0xb6   : > { %2553 = vmatprep.mubr.msk.f32.mxu0 %vm414_vm0, %v3035_v59  ;;  %2611 = vmatpush3.msra.mxu0 %v2021_v0  ;;  %v2016_v59 = vld [vmem:[%s3631_s3 + $0x428] sm:$0xff] }
  0xb7   : > { %2665 = vmatpush3.msra.mxu1 %v2021_v0  ;;  %2554 = vmatmul.mubr.f32.gmra.mxu0 %v2726_v50  ;;  %v2017_v50 = vld [vmem:[%s3631_s3 + $0x430] sm:$0xff] }
  0xb8   : > { %2612 = vmatprep.subr.mxu0 %v2020_v16  ;;  %2650 = vmatprep.subr.mxu1 %v2020_v16 }
  0xb9   : > { %2597 = vmatprep.mubr.f32.mxu1 %v3112_v36  ;;  %2613 = vmatpush3.msra.mxu0 %v2020_v16  ;;  %v2012_v36 = vld [vmem:[%s3631_s3 + $0x408] sm:$0xff] }
  0xba   : > { %2666 = vmatpush3.msra.mxu1 %v2020_v16  ;;  %2614 = vmatprep.subr.mxu0 %v2019_v25 }
  0xbb   : > { %2598 = vmatmul.mubr.f32.gmra.mxu1 %v2922_v51  ;;  %2651 = vmatprep.subr.mxu1 %v2019_v25  ;;  %v2015_v51 = vld [vmem:[%s3631_s3 + $0x420] sm:$0xff] }
  0xbc   : > { %2615 = vmatpush3.msra.mxu0 %v2019_v25  ;;  %2667 = vmatpush3.msra.mxu1 %v2019_v25 }
  0xbd   : > { %2616 = vmatprep.subr.mxu0 %v2018_v23  ;;  %2652 = vmatprep.subr.mxu1 %v2018_v23 }
  0xbe   : > { %2617 = vmatpush3.msra.mxu0 %v2018_v23  ;;  %2668 = vmatpush3.msra.mxu1 %v2018_v23 }
  0xbf   : > { %2618 = vmatprep.subr.mxu0 %v2017_v50  ;;  %2653 = vmatprep.subr.mxu1 %v2017_v50 }
  0xc0   : > { %2619 = vmatpush3.msra.mxu0 %v2017_v50  ;;  %2669 = vmatpush3.msra.mxu1 %v2017_v50 }
  0xc1   : > { %2620 = vmatprep.subr.mxu0 %v2016_v59  ;;  %2654 = vmatprep.subr.mxu1 %v2016_v59 }
  0xc2   : > { %2621 = vmatpush3.msra.mxu0 %v2016_v59  ;;  %2670 = vmatpush3.msra.mxu1 %v2016_v59 }
  0xc3   : > { %2622 = vmatprep.subr.mxu0 %v2015_v51  ;;  %2655 = vmatprep.subr.mxu1 %v2015_v51 }
  0xc4   : > { %2623 = vmatpush3.msra.mxu0 %v2015_v51  ;;  %2671 = vmatpush3.msra.mxu1 %v2015_v51 }
  0xc5   : > { %2624 = vmatprep.subr.mxu0 %v2014_v28  ;;  %2656 = vmatprep.subr.mxu1 %v2014_v28 }
  0xc6   : > { %2625 = vmatpush3.msra.mxu0 %v2014_v28  ;;  %2672 = vmatpush3.msra.mxu1 %v2014_v28 }
  0xc7   : > { %2626 = vmatprep.subr.mxu0 %v2013_v32  ;;  %2657 = vmatprep.subr.mxu1 %v2013_v32 }
  0xc8   : > { %2627 = vmatpush3.msra.mxu0 %v2013_v32  ;;  %2673 = vmatpush3.msra.mxu1 %v2013_v32 }
  0xc9   : > { %2628 = vmatprep.subr.mxu0 %v2012_v36  ;;  %2658 = vmatprep.subr.mxu1 %v2012_v36 }
  0xca   : > { %2629 = vmatpush3.msra.mxu0 %v2012_v36  ;;  %2674 = vmatpush3.msra.mxu1 %v2012_v36 }
  0xcb   : > { %2630 = vmatprep.subr.mxu0 %v2011_v46  ;;  %2659 = vmatprep.subr.mxu1 %v2011_v46 }
  0xcc   : > { %2631 = vmatpush3.msra.mxu0 %v2011_v46  ;;  %2675 = vmatpush3.msra.mxu1 %v2011_v46 }
  0xcd   : > { %2632 = vmatprep.mubr.f32.mxu0 %v3239_v49  ;;  %2638 = vmatprep.mubr.f32.mxu1 %v3296_v45 }
  0xce   : > { %2633 = vmatmul.mubr.f32.vlgmr.msra.gmra.mxu0 %v3242_v35  ;;  %2639 = vmatmul.mubr.f32.vlgmr.msra.gmra.mxu1 %v3299_v54 }
  0xcf   : > { %2635 = vmatprep.mubr.f32.mxu0 %v3266_v11  ;;  %2641 = vmatprep.mubr.f32.mxu1 %v3434_v19 }
  0xd2   : > { %2636 = vmatmul.mubr.f32.gmra.mxu0 %v3269_v18  ;;  %2642 = vmatmul.mubr.f32.gmra.mxu1 %v3209_v41 }
  0xee   : > { %v2282_v57 = vpop.f32.mrf.mxu0  ;;  %v2326_v3 = vpop.f32.mrf.mxu1 }
  0xef   : > { %v705_v16 = vadd.f32 %v2326_v3, %v2282_v57 }
  0xf0   : > { %v594_v17 = vpop.f32.mrf.mxu0  ;;  %v699_v34 = vpop.f32.mrf.mxu1 }
  0xf1   : > { %v700_v59 = vadd.f32 %v699_v34, %v594_v17 }
 0x103   : > { %v2285_v27 = vpop.f32.mrf.mxu0  ;;  %v2329_v45 = vpop.f32.mrf.mxu1 }
 0x105   : > { %v3575_v49 = vpop.f32.mrf.mxu0  ;;  %v709_v35 = vpop.f32.mrf.mxu1 }
 0x106   : > { %3635 = vst [vmem:[#allocation2_spill] sm:$0xff] %v3575_v49 }
 0x109   : > { %v2288_v40 = vpop.f32.mrf.mxu0  ;;  %v2332_v54 = vpop.f32.mrf.mxu1 }
 0x10a   : > { %v725_v25 = vadd.f32 %v2332_v54, %v2288_v40 }
 0x10b   : > { %v614_v52 = vpop.f32.mrf.mxu0  ;;  %v719_v11 = vpop.f32.mrf.mxu1 }
 0x10c   : > { %v720_v51 = vadd.f32 %v719_v11, %v614_v52 }
 0x10d   : > { %v3643_v3 = vld [vmem:[#allocation2_spill] sm:$0xff] }
 0x10e   : > { %v710_v57 = vadd.f32 %v709_v35, %v3643_v3 }
 0x10f   : > { %v2291_v29 = vpop.f32.mrf.mxu0  ;;  %v2335_v56 = vpop.f32.mrf.mxu1 }
 0x111   : > { %v624_v31 = vpop.f32.mrf.mxu0  ;;  %v729_v18 = vpop.f32.mrf.mxu1 }
 0x112   : > { %v730_v40 = vadd.f32 %v729_v18, %v624_v31 }
 0x116   : > { %v2370_v42 = vpop.f32.mrf.mxu0  ;;  %v2414_v41 = vpop.f32.mrf.mxu1 }
 0x117   : > { %v894_v28 = vadd.f32 %v2370_v42, %v705_v16 }
 0x118   : > { %v854_v33 = vpop.f32.mrf.mxu0  ;;  %v984_v38 = vpop.f32.mrf.mxu1 }
 0x119   : > { %v893_v36 = vadd.f32 %v854_v33, %v700_v59 }
 0x11b   : > { %v2373_v37 = vpop.f32.mrf.mxu0 }
 0x11d   : > { %v864_v39 = vpop.f32.mrf.mxu0 }
 0x11e   : > { %v895_v52 = vadd.f32 %v864_v39, %v710_v57 }
 0x11f   : > { %v2417_v9 = vpop.f32.mrf.mxu1 }
 0x121   : > { %v2376_v21 = vpop.f32.mrf.mxu0  ;;  %v3577_v43 = vpop.f32.mrf.mxu1 }
 0x122   : > { %3636 = vst [vmem:[#allocation3_spill] sm:$0xff] %v3577_v43  ;;  %v898_v32 = vadd.f32 %v2376_v21, %v725_v25 }
 0x123   : > { %v874_v47 = vpop.f32.mrf.mxu0 }
 0x124   : > { %v897_v46 = vadd.f32 %v874_v47, %v720_v51 }
 0x125   : > { %v2420_v48 = vpop.f32.mrf.mxu1 }
 0x127   : > { %v2379_v58 = vpop.f32.mrf.mxu0  ;;  %v1004_v60 = vpop.f32.mrf.mxu1 }
 0x128   : > { %v1027_v17 = vadd.f32 %v1004_v60, %v897_v46 }
 0x129   : > { %v884_v4 = vpop.f32.mrf.mxu0 }
 0x12a   : > { %v899_v42 = vadd.f32 %v884_v4, %v730_v40 }
 0x12b   : > { %v2423_v19 = vpop.f32.mrf.mxu1 }
 0x12d   : > { %v1014_v44 = vpop.f32.mrf.mxu1 }
 0x12e   : > { %v1029_v35 = vadd.f32 %v1014_v44, %v899_v42 }
 0x13e   : > { %v2458_v30 = vpop.f32.mrf.mxu0  ;;  %v2502_v55 = vpop.f32.mrf.mxu1 }
 0x140   : > { %v1120_v61 = vpop.f32.mrf.mxu0  ;;  %v1254_v62 = vpop.f32.mrf.mxu1 }
 0x143   : > { %v2461_v63 = vpop.f32.mrf.mxu0 }
 0x145   : > { %v1130_v2 = vpop.f32.mrf.mxu0 }
 0x147   : > { %v3579_v1 = vpop.f32.mrf.mxu1 }
 0x148   : > { %3637 = vst [vmem:[#allocation4_spill] sm:$0xff] %v3579_v1  ;;  %v735_v1 = vadd.f32 %v2335_v56, %v2291_v29 }
 0x149   : > { %v3581_v5 = vpop.f32.mrf.mxu1  ;;  %v2464_v6 = vpop.f32.mrf.mxu0 }
 0x14a   : > { %3638 = vst [vmem:[#allocation5_spill] sm:$0xff] %v3581_v5  ;;  %v715_v5 = vadd.f32 %v2329_v45, %v2285_v27 }
 0x14b   : > { %v1140_v8 = vpop.f32.mrf.mxu0 }
 0x14c   : > { %v896_v54 = vadd.f32 %v2373_v37, %v715_v5  ;;  %v1163_v27 = vadd.f32 %v1140_v8, %v1027_v17 }
 0x14d   : > { %v2508_v7 = vpop.f32.mrf.mxu1 }
 0x14e   : > { %v1026_v45 = vadd.f32 %v2417_v9, %v896_v54 }
 0x14f   : > { %v1274_v10 = vpop.f32.mrf.mxu1  ;;  %v2467_v12 = vpop.f32.mrf.mxu0 }
 0x150   : > { %v1162_v31 = vadd.f32 %v2461_v63, %v1026_v45  ;;  %v1297_v60 = vadd.f32 %v1274_v10, %v1163_v27 }
 0x151   : > { %v1150_v15 = vpop.f32.mrf.mxu0  ;;  %v3646_v44 = vld [vmem:[#allocation5_spill] sm:$0xff] }
 0x153   : > { %v2511_v13 = vpop.f32.mrf.mxu1 }
 0x155   : > { %v1284_v22 = vpop.f32.mrf.mxu1 }
 0x166   : > { %v2546_v20 = vpop.f32.mrf.mxu0  ;;  %v2590_v26 = vpop.f32.mrf.mxu1 }
 0x168   : > { %v1384_v14 = vpop.f32.mrf.mxu0  ;;  %v3583_v24 = vpop.f32.mrf.mxu1 }
 0x169   : > { %3639 = vst [vmem:[#allocation6_spill] sm:$0xff] %v3583_v24  ;;  %v1024_v24 = vadd.f32 %v2414_v41, %v894_v28 }
 0x16b   : > { %v2549_v53 = vpop.f32.mrf.mxu0  ;;  %v1160_v34 = vadd.f32 %v2458_v30, %v1024_v24 }
 0x16d   : > { %v3587_v23 = vpop.f32.mrf.mxu0  ;;  %v1294_v56 = vadd.f32 %v2502_v55, %v1160_v34 }
 0x16e   : > { %3641 = vst [vmem:[#allocation8_spill] sm:$0xff] %v3587_v23  ;;  %v900_v23 = vadd.f32 %v2379_v58, %v735_v1  ;;  %v1165_v1 = vadd.f32 %v1150_v15, %v1029_v35 }
 0x16f   : > { %v3585_v0 = vpop.f32.mrf.mxu1  ;;  %v1424_v30 = vadd.f32 %v2546_v20, %v1294_v56 }
 0x170   : > { %3640 = vst [vmem:[#allocation7_spill] sm:$0xff] %v3585_v0  ;;  %v1028_v0 = vadd.f32 %v2420_v48, %v898_v32  ;;  %v1030_v29 = vadd.f32 %v2423_v19, %v900_v23  ;;  %v3644_v48 = vld [vmem:[#allocation3_spill] sm:$0xff]  ;;  %v3647_v15 = vld [vmem:[#allocation6_spill] sm:$0xff] }
 0x171   : > { %v3589_v50 = vpop.f32.mrf.mxu1  ;;  %v2552_v43 = vpop.f32.mrf.mxu0  ;;  %v1025_v16 = vadd.f32 %v3644_v48, %v895_v52  ;;  %v1560_v8 = vadd.f32 %v2590_v26, %v1424_v30 }
 0x172   : > { %3642 = vst [vmem:[#allocation9_spill] sm:$0xff] %v3589_v50  ;;  %v1023_v50 = vadd.f32 %v984_v38, %v893_v36  ;;  %v1164_v11 = vadd.f32 %v2464_v6, %v1028_v0  ;;  %v1166_v18 = vadd.f32 %v2467_v12, %v1030_v29  ;;  %v3645_v6 = vld [vmem:[#allocation4_spill] sm:$0xff]  ;;  %v1299_v12 = vadd.f32 %v1284_v22, %v1165_v1  ;;  %v2028_v22 = vld [vmem:[%s3633_s5] ss:$0 sm:$0xff] }
 0x173   : > { %v1404_v21 = vpop.f32.mrf.mxu0  ;;  %v1161_v4 = vadd.f32 %v1130_v2, %v1025_v16  ;;  %v1296_v9 = vadd.f32 %v3645_v6, %v1162_v31 }
 0x174   : > { %v1159_v47 = vadd.f32 %v1120_v61, %v1023_v50  ;;  %v1298_v41 = vadd.f32 %v2508_v7, %v1164_v11  ;;  %v1427_v61 = vadd.f32 %v1404_v21, %v1297_v60  ;;  %v1300_v19 = vadd.f32 %v2511_v13, %v1166_v18 }
 0x175   : > { %v2596_v49 = vpop.f32.mrf.mxu1  ;;  %v1295_v63 = vadd.f32 %v3646_v44, %v1161_v4  ;;  %v1426_v0 = vadd.f32 %v2549_v53, %v1296_v9  ;;  %v3648_v23 = vld [vmem:[#allocation8_spill] sm:$0xff] }
 0x176   : > { %v1293_v58 = vadd.f32 %v1254_v62, %v1159_v47  ;;  %v1428_v39 = vadd.f32 %v2552_v43, %v1298_v41  ;;  %v2027_v43 = vld [vmem:[%s3632_s4] ss:$0 sm:$0xff] }
 0x177   : > { %v1540_v33 = vpop.f32.mrf.mxu1  ;;  %v2555_v37 = vpop.f32.mrf.mxu0  ;;  %v1425_v26 = vadd.f32 %v3648_v23, %v1295_v63  ;;  %v3649_v36 = vld [vmem:[#allocation7_spill] sm:$0xff] }
 0x178   : > { %v1423_v5 = vadd.f32 %v1384_v14, %v1293_v58  ;;  %v1564_v24 = vadd.f32 %v2596_v49, %v1428_v39  ;;  %v1430_v62 = vadd.f32 %v2555_v37, %v1300_v19  ;;  %v1563_v14 = vadd.f32 %v1540_v33, %v1427_v61 }
 0x179   : > { %v1414_v55 = vpop.f32.mrf.mxu0  ;;  %v1562_v46 = vadd.f32 %v3649_v36, %v1426_v0  ;;  %v3650_v52 = vld [vmem:[#allocation9_spill] sm:$0xff] }
 0x17a   : > { %v1559_v20 = vadd.f32 %v3647_v15, %v1423_v5  ;;  %v1429_v49 = vadd.f32 %v1414_v55, %v1299_v12  ;;  %v1561_v42 = vadd.f32 %v3650_v52, %v1425_v26 }
 0x17b   : > { %v2599_v38 = vpop.f32.mrf.mxu1 }
 0x17c   : > { %v1566_v3 = vadd.f32 %v2599_v38, %v1430_v62 }
 0x17d   : > { %v1550_v7 = vpop.f32.mrf.mxu1 }
 0x17e   : > { %v1565_v21 = vadd.f32 %v1550_v7, %v1429_v49 }
 0x18e   : > { %v2634_v10 = vpop.f32.mrf.mxu0  ;;  %v2640_v2 = vpop.f32.mrf.mxu1 }
 0x18f   : > { %v1694_v13 = vadd.f32 %v2634_v10, %v1560_v8  ;;  %v1698_v25 = vadd.f32 %v2640_v2, %v1564_v24 }
 0x190   : > { %v1654_v53 = vpop.f32.mrf.mxu0  ;;  %v1674_v50 = vpop.f32.mrf.mxu1 }
 0x191   : > { %v1709_v59 = vmul.f32 %v2027_v43, %v1694_v13  ;;  %v1713_v51 = vmul.f32 %v2027_v43, %v1698_v25  ;;  %v1693_v28 = vadd.f32 %v1654_v53, %v1559_v20  ;;  %v1697_v32 = vadd.f32 %v1674_v50, %v1563_v14 }
 0x192   : > { %v2637_v57 = vpop.f32.mrf.mxu0  ;;  %v2643_v40 = vpop.f32.mrf.mxu1 }
 0x193   : > { %v1724_v54 = vadd.f32 %v2028_v22, %v1709_v59  ;;  %v1728_v17 = vadd.f32 %v2028_v22, %v1713_v51  ;;  %v1708_v34 = vmul.f32 %v2027_v43, %v1693_v28  ;;  %v1712_v11 = vmul.f32 %v2027_v43, %v1697_v32 }
 0x194   : > { %v1696_v33 = vadd.f32 %v2637_v57, %v1562_v46  ;;  %v1700_v47 = vadd.f32 %v2643_v40, %v1566_v3  ;;  %v1664_v27 = vpop.f32.mrf.mxu0  ;;  %v1684_v45 = vpop.f32.mrf.mxu1 }
 0x195   : > { %v1732_v29 = vmax.f32 %v1724_v54, 0.0  ;;  %v1736_v56 = vmax.f32 %v1728_v17, 0.0  ;;  %v1723_v41 = vadd.f32 %v2028_v22, %v1708_v34  ;;  %v1727_v48 = vadd.f32 %v2028_v22, %v1712_v11 }
 0x196   : > { %v1711_v16 = vmul.f32 %v2027_v43, %v1696_v33  ;;  %v1715_v35 = vmul.f32 %v2027_v43, %v1700_v47  ;;  %v1695_v31 = vadd.f32 %v1664_v27, %v1561_v42  ;;  %v1699_v18 = vadd.f32 %v1684_v45, %v1565_v21 }
 0x197   : > { %1740 = vst [vmem:[%s3609_s21 + $0x8] sm:$0xff] %v1732_v29  ;;  %1744 = vst [vmem:[%s3609_s21 + $0x28] sm:$0xff] %v1736_v56  ;;  %v1731_v37 = vmax.f32 %v1723_v41, 0.0  ;;  %v1735_v38 = vmax.f32 %v1727_v48, 0.0 }
 0x198   : > { %v1726_v58 = vadd.f32 %v2028_v22, %v1711_v16  ;;  %v1730_v60 = vadd.f32 %v2028_v22, %v1715_v35  ;;  %v1710_v30 = vmul.f32 %v2027_v43, %v1695_v31  ;;  %v1714_v39 = vmul.f32 %v2027_v43, %v1699_v18 }
 0x199   : > { %1739 = vst [vmem:[%s3609_s21] sm:$0xff] %v1731_v37  ;;  %1743 = vst [vmem:[%s3609_s21 + $0x20] sm:$0xff] %v1735_v38 }
 0x19a   : > { %v1734_v4 = vmax.f32 %v1726_v58, 0.0  ;;  %v1738_v1 = vmax.f32 %v1730_v60, 0.0  ;;  %v1725_v5 = vadd.f32 %v2028_v22, %v1710_v30  ;;  %v1729_v61 = vadd.f32 %v2028_v22, %v1714_v39 }
 0x19c   : > { %1742 = vst [vmem:[%s3609_s21 + $0x18] sm:$0xff] %v1734_v4  ;;  %1746 = vst [vmem:[%s3609_s21 + $0x38] sm:$0xff] %v1738_v1  ;;  %v1733_v6 = vmax.f32 %v1725_v5, 0.0  ;;  %v1737_v9 = vmax.f32 %v1729_v61, 0.0 }
 0x19e   : > { %1741 = vst [vmem:[%s3609_s21 + $0x10] sm:$0xff] %v1733_v6  ;;  %1745 = vst [vmem:[%s3609_s21 + $0x30] sm:$0xff] %v1737_v9 }
 0x19f PF: > { %s16_s23 = sadd.s32 1, %s2724_s23   ;;  %s3651_s21 = smov %s2720_s22 }
 0x1a0   : > { %p13_p5 = scmp.ge.s32.totalorder %s16_s23, 4   ;;  %s3652_s22 = smov %s3654_s24 }
 0x1a2   :  { %15 = sbr.rel (!%p13_p5) target bundleno = 2 (0x2), region = 91 }

</bundles_post_ra>
